<compile_context>
chip_gen: v7x
topology: tpu7x:2x2x1
jax: 0.10.0
libtpu: 0.0.40
codegen_flags: <defaults>
</compile_context>

<pallas_src>
import functools

import numpy as np
import jax
import jax.numpy as jnp
from jax.experimental import pallas as pl
from jax.experimental.pallas import tpu as pltpu

# ----- config (mirrors gpt.py) -----
EMBED_DIM = 30
BLOCK_SIZE = 100
N_HEADS = 3
HEAD_DIM = EMBED_DIM // N_HEADS
N_BLOCKS = 3
VOCAB_SIZE = 17          # synthetic: len(sorted(set(text))) for a small text
HIDDEN = 4 * EMBED_DIM   # 120
LN_EPS = 1e-5            # nn.LayerNorm default
VPAD = 128               # lane-dense logits width (vocab padded to 128)
HPAD = 128               # per-head lane-aligned width (head_dim padded to 128)
FPAD = 128               # FFN hidden width padded to 128


def _layernorm(v, g, b):
    mu = jnp.mean(v, axis=-1, keepdims=True)
    var = jnp.mean((v - mu) ** 2, axis=-1, keepdims=True)
    return (v - mu) * jax.lax.rsqrt(var + LN_EPS) * g + b


def gpt_kernel(x_ref, wqkv_ref, wprojp_ref, w1p_ref, w2p_ref, wlm_ref,
               vecs_ref, out_ref, *, mm_dtype):
    Bt, T, D = x_ref.shape
    M = Bt * T
    H = N_HEADS
    exact = (mm_dtype == jnp.float32)

    # Residual stream kept in f32; matmul operands in mm_dtype.
    x = x_ref[...].reshape(M, D)

    def mm(a, b):
        # weights are pre-cast to mm_dtype host-side; only the lhs needs a cast
        return jnp.dot(a.astype(mm_dtype), b, preferred_element_type=jnp.float32)

    # Causal mask built once and shared by all blocks / heads.
    row = jax.lax.broadcasted_iota(jnp.int32, (T, T), 0)
    col = jax.lax.broadcasted_iota(jnp.int32, (T, T), 1)
    causal = (col <= row)[None, :, :]                    # (1, T, T)
    neg_inf = jnp.float32(-jnp.inf)
    inv_sqrt_c = jnp.float32(1.0 / float(np.sqrt(D)))    # quirk: sqrt(embed_dim)

    for blk in range(N_BLOCKS):
        vb = vecs_ref[blk]                               # (8, 128) f32
        bproj = vb[0:1, :D]
        g1, be1 = vb[1:2, :D], vb[2:3, :D]
        b1 = vb[3:4, :]                                  # (1, FPAD)
        b2, g2, be2 = vb[4:5, :D], vb[5:6, :D], vb[6:7, :D]

        # ---- attention: fused lane-aligned QKV, one matmul for all heads ----
        qkv = mm(x, wqkv_ref[blk]).astype(mm_dtype)      # (M, 3*H*128)
        qkv = qkv.reshape(Bt, T, 3 * H * HPAD)

        head_outs = []
        for h in range(H):
            k = qkv[:, :, (0 * H + h) * HPAD:(0 * H + h + 1) * HPAD]
            q = qkv[:, :, (1 * H + h) * HPAD:(1 * H + h + 1) * HPAD]
            v = qkv[:, :, (2 * H + h) * HPAD:(2 * H + h + 1) * HPAD]
            # reference quirk: scores[t, s] = k_t . q_s / sqrt(embed_dim)
            # (zero-padded lanes contribute exactly 0 to the contraction)
            s = jnp.einsum('btf,bsf->bts', k, q,
                           preferred_element_type=jnp.float32) * inv_sqrt_c
            s = jnp.where(causal, s, neg_inf)
            m = jnp.max(s, axis=-1, keepdims=True)
            e = jnp.exp(s - m)
            denom = jnp.sum(e, axis=-1, keepdims=True)
            if exact:
                p = e / denom                                  # exact f32 path
            else:
                p = e * pl.reciprocal(denom, approx=True)      # EUP divide
            head_outs.append(
                jnp.einsum('bts,bsf->btf', p.astype(mm_dtype), v,
                           preferred_element_type=jnp.float32))

        # lane-aligned concat (each head occupies a full 128-lane group),
        # single aligned (M, H*128) @ (H*128, D) reprojection
        cat = jnp.concatenate(head_outs, axis=-1).reshape(M, H * HPAD)
        attn = mm(cat, wprojp_ref[blk]) + bproj
        x = x + _layernorm(attn, g1, be1)

        # ---- feed forward (Dropout is identity in eval mode) ----
        hdn = jnp.maximum(mm(x, w1p_ref[blk]) + b1, 0.0)   # (M, 128), pad cols 0
        ff = mm(hdn, w2p_ref[blk]) + b2
        x = x + _layernorm(ff, g2, be2)

    # ---- LM head into a lane-dense (M, VPAD) slab ----
    logits = mm(x, wlm_ref[...]) + vecs_ref[0, 7:8, :]
    out_ref[...] = logits.reshape(Bt, T, VPAD)


def _batch_tile(B, T, target_rows=1024):
    """Largest divisor of B with bt*T <= ~1024, but keep >= 2 grid steps when
    B >= 2 so the 'parallel' batch axis can shard across v7x's two TCs."""
    best = 1
    for cand in range(1, B + 1):
        if B % cand == 0 and cand * T <= max(target_rows, T):
            best = cand
    if best == B and B >= 2:
        for cand in range(best - 1, 0, -1):
            if B % cand == 0:
                best = cand
                break
    return best


def _fused_weights(params, mm_dtype):
    """Host-side weight fusion / lane-alignment / padding for the kernel."""
    D, H, hd = EMBED_DIM, N_HEADS, HEAD_DIM

    # Fused, lane-aligned QKV: segment (proj, head) lives at lane offset
    # (proj*H + head) * 128, zero-padded beyond head_dim.
    wqkv = np.zeros((N_BLOCKS, D, 3, H, HPAD), np.float32)
    for pi, name in enumerate(("wk", "wq", "wv")):
        w = np.asarray(params[name], np.float32)           # (N_BLOCKS, H, D, hd)
        wqkv[:, :, pi, :, :hd] = np.transpose(w, (0, 2, 1, 3))
    wqkv = jnp.asarray(wqkv.reshape(N_BLOCKS, D, 3 * H * HPAD), dtype=mm_dtype)

    # Reprojection accepting the lane-padded concat of heads (H*128 rows).
    wprojp = np.zeros((N_BLOCKS, H * HPAD, D), np.float32)
    wp = np.asarray(params["wproj"], np.float32)           # (N_BLOCKS, H*hd, D)
    for h in range(H):
        wprojp[:, h * HPAD:h * HPAD + hd, :] = wp[:, h * hd:(h + 1) * hd, :]
    wprojp = jnp.asarray(wprojp, dtype=mm_dtype)

    # FFN with hidden width padded 120 -> 128 (zero columns / rows: exact).
    w1p = np.zeros((N_BLOCKS, D, FPAD), np.float32)
    w1p[:, :, :HIDDEN] = np.asarray(params["w1"], np.float32)
    w2p = np.zeros((N_BLOCKS, FPAD, D), np.float32)
    w2p[:, :HIDDEN, :] = np.asarray(params["w2"], np.float32)
    w1p = jnp.asarray(w1p, dtype=mm_dtype)
    w2p = jnp.asarray(w2p, dtype=mm_dtype)

    # LM head padded to the lane-dense VPAD width.
    wlm = np.zeros((D, VPAD), np.float32)
    wlm[:, :VOCAB_SIZE] = np.asarray(params["wlm"], np.float32)
    wlm = jnp.asarray(wlm, dtype=mm_dtype)

    # All small f32 vectors packed into a single (N_BLOCKS, 8, 128) operand:
    # rows: bproj, g1, be1, b1(padded), b2, g2, be2, [blk 0 only] blm(padded).
    vecs = np.zeros((N_BLOCKS, 8, 128), np.float32)
    vecs[:, 0, :D] = np.asarray(params["bproj"], np.float32)
    vecs[:, 1, :D] = np.asarray(params["g1"], np.float32)
    vecs[:, 2, :D] = np.asarray(params["be1"], np.float32)
    vecs[:, 3, :HIDDEN] = np.asarray(params["b1"], np.float32)
    vecs[:, 4, :D] = np.asarray(params["b2"], np.float32)
    vecs[:, 5, :D] = np.asarray(params["g2"], np.float32)
    vecs[:, 6, :D] = np.asarray(params["be2"], np.float32)
    vecs[0, 7, :VOCAB_SIZE] = np.asarray(params["blm"], np.float32)[0]
    vecs = jnp.asarray(vecs)

    return [wqkv, wprojp, w1p, w2p, wlm, vecs]


def gpt_forward(tokens, params, *, matmul_dtype=jnp.bfloat16):
    """Embedding lookup (gather) in plain JAX; transformer stack in Pallas."""
    B, T = tokens.shape
    Tp = ((T + 7) // 8) * 8                                  # sublane-align T

    tok_emb = jnp.take(params["tok_emb"], tokens, axis=0)    # (B, T, D)
    pos_emb = params["pos_emb"][:T]                          # (T, D)
    x = (tok_emb + pos_emb[None]).astype(jnp.float32)
    if Tp != T:
        # Padded key rows are masked out by the causal tril for all real rows;
        # padded query rows are sliced off below.
        x = jnp.pad(x, ((0, 0), (0, Tp - T), (0, 0)))

    weights = _fused_weights(params, matmul_dtype)
    bt = _batch_tile(B, Tp)
    grid = (B // bt,)

    def full_spec(a):
        n = a.ndim
        return pl.BlockSpec(a.shape, lambda i, _n=n: (0,) * _n)

    kernel = functools.partial(gpt_kernel, mm_dtype=matmul_dtype)
    out = pl.pallas_call(
        kernel,
        out_shape=jax.ShapeDtypeStruct((B, Tp, VPAD), jnp.float32),
        grid=grid,
        in_specs=[pl.BlockSpec((bt, Tp, EMBED_DIM), lambda i: (i, 0, 0))]
                 + [full_spec(a) for a in weights],
        out_specs=pl.BlockSpec((bt, Tp, VPAD), lambda i: (i, 0, 0)),
        compiler_params=pltpu.CompilerParams(
            dimension_semantics=("parallel",),
            # explicit scoped-VMEM limit (v5e default is only 16 MiB); well
            # below v7x's 64 MiB physical VMEM.
            vmem_limit_bytes=48 * 1024 * 1024),
    )(x, *weights)

    logits = out[:, :T, :VOCAB_SIZE]    # drop sequence + lane padding
    return logits, None                 # (logits, loss=None) — no targets


# ----- deterministic parameter init (shapes from GPT.__init__) -----
def init_params(key):
    ks = jax.random.split(key, 16)

    def nrm(k, shape, scale):
        return (scale * jax.random.normal(k, shape)).astype(jnp.float32)

    return dict(
        tok_emb=nrm(ks[0], (VOCAB_SIZE, EMBED_DIM), 1.0),
        pos_emb=nrm(ks[1], (BLOCK_SIZE, EMBED_DIM), 1.0),
        wk=nrm(ks[2], (N_BLOCKS, N_HEADS, EMBED_DIM, HEAD_DIM), 0.2),
        wq=nrm(ks[3], (N_BLOCKS, N_HEADS, EMBED_DIM, HEAD_DIM), 0.2),
        wv=nrm(ks[4], (N_BLOCKS, N_HEADS, EMBED_DIM, HEAD_DIM), 0.2),
        wproj=nrm(ks[5], (N_BLOCKS, EMBED_DIM, EMBED_DIM), 0.2),
        bproj=nrm(ks[6], (N_BLOCKS, EMBED_DIM), 0.02),
        g1=jnp.ones((N_BLOCKS, EMBED_DIM), jnp.float32),
        be1=jnp.zeros((N_BLOCKS, EMBED_DIM), jnp.float32),
        w1=nrm(ks[7], (N_BLOCKS, EMBED_DIM, HIDDEN), 0.2),
        b1=nrm(ks[8], (N_BLOCKS, HIDDEN), 0.02),
        w2=nrm(ks[9], (N_BLOCKS, HIDDEN, EMBED_DIM), 0.2),
        b2=nrm(ks[10], (N_BLOCKS, EMBED_DIM), 0.02),
        g2=jnp.ones((N_BLOCKS, EMBED_DIM), jnp.float32),
        be2=jnp.zeros((N_BLOCKS, EMBED_DIM), jnp.float32),
        wlm=nrm(ks[11], (EMBED_DIM, VOCAB_SIZE), 0.2),
        blm=nrm(ks[12], (1, VOCAB_SIZE), 0.02),
    )


# ----- pure-JAX reference (same math) for the correctness check -----
def _ref_seq(x, params):
    T, D = x.shape
    causal = jnp.tril(jnp.ones((T, T), dtype=bool))
    for blk in range(N_BLOCKS):
        heads = []
        for h in range(N_HEADS):
            k = x @ params["wk"][blk, h]
            q = x @ params["wq"][blk, h]
            v = x @ params["wv"][blk, h]
            prod = (k @ q.T) / np.sqrt(D)
            prod = jnp.where(causal, prod, -jnp.inf)
            heads.append(jax.nn.softmax(prod, axis=-1) @ v)
        cat = jnp.concatenate(heads, axis=-1)
        attn = cat @ params["wproj"][blk] + params["bproj"][blk]
        x = x + _layernorm(attn, params["g1"][blk], params["be1"][blk])
        hdn = jax.nn.relu(x @ params["w1"][blk] + params["b1"][blk])
        ff = hdn @ params["w2"][blk] + params["b2"][blk]
        x = x + _layernorm(ff, params["g2"][blk], params["be2"][blk])
    return x @ params["wlm"] + params["blm"][0]


def gpt_reference(tokens, params):
    B, T = tokens.shape
    x = jnp.take(params["tok_emb"], tokens, axis=0) + params["pos_emb"][:T][None]
    return jax.vmap(lambda xs: _ref_seq(xs, params))(x.astype(jnp.float32))


if __name__ == "__main__":
    key = jax.random.PRNGKey(0)
    pkey, tkey = jax.random.split(key)
    params = init_params(pkey)

    B, T = 2, 8                              # T <= block_size (100)
    tokens = jax.random.randint(tkey, (B, T), 0, VOCAB_SIZE, dtype=jnp.int32)

    # Reference at full f32 matmul precision (TPU DEFAULT precision uses bf16
    # passes and was a large part of the previous mismatch).
    with jax.default_matmul_precision("float32"):
        ref = jax.block_until_ready(gpt_reference(tokens, params))

    # Exact-math path (f32 MXU inputs, exact softmax divide).  The same fused
    # lane-aligned weight layout is exercised here, so layout/packing bugs are
    # caught by this check; tolerance leaves headroom for platform-dependent
    # MXU-pass / transcendental differences.
    logits32, loss = gpt_forward(tokens, params, matmul_dtype=jnp.float32)
    logits32 = jax.block_until_ready(logits32)
    assert logits32.shape == (B, T, VOCAB_SIZE)
    assert loss is None
    np.testing.assert_allclose(np.asarray(logits32), np.asarray(ref),
                               rtol=2e-2, atol=2e-2)

    # Fast path (default bf16 MXU inputs): relaxed tolerance.
    logits16, _ = gpt_forward(tokens, params)
    logits16 = jax.block_until_ready(logits16)
    np.testing.assert_allclose(np.asarray(logits16), np.asarray(ref),
                               rtol=1e-1, atol=1e-1)

    # Sequence length that is not a multiple of 8 (exercises the host-side T
    # padding that replaced the old assert).
    B2, T2 = 2, 10
    tokens2 = jax.random.randint(jax.random.PRNGKey(1), (B2, T2), 0,
                                 VOCAB_SIZE, dtype=jnp.int32)
    with jax.default_matmul_precision("float32"):
        ref2 = jax.block_until_ready(gpt_reference(tokens2, params))
    logits_p, _ = gpt_forward(tokens2, params, matmul_dtype=jnp.float32)
    logits_p = jax.block_until_ready(logits_p)
    assert logits_p.shape == (B2, T2, VOCAB_SIZE)
    np.testing.assert_allclose(np.asarray(logits_p), np.asarray(ref2),
                               rtol=2e-2, atol=2e-2)

    print("KERNEL_OK")
</pallas_src>

<mosaic_0001>
module attributes {stable_mosaic.version = 11 : i64} {
  func.func @gpt_kernel(%arg0: i32, %arg1: memref<1x8x30xf32, #tpu.memory_space<vmem>>, %arg2: memref<3x30x1152xf32, #tpu.memory_space<vmem>>, %arg3: memref<3x384x30xf32, #tpu.memory_space<vmem>>, %arg4: memref<3x30x128xf32, #tpu.memory_space<vmem>>, %arg5: memref<3x128x30xf32, #tpu.memory_space<vmem>>, %arg6: memref<30x128xf32, #tpu.memory_space<vmem>>, %arg7: memref<3x8x128xf32, #tpu.memory_space<vmem>>, %arg8: memref<1x8x128xf32, #tpu.memory_space<vmem>>) attributes {dimension_semantics = [#tpu.dimension_semantics<parallel>], iteration_bounds = array<i64: 2>, scalar_prefetch = 0 : i64, scratch_operands = 0 : i64, tpu.core_type = #tpu.core_type<tc>, window_params = [{transform_indices = @transform_0, window_bounds = array<i64: 1, 8, 30>}, {pipeline_mode = #tpu.pipeline_mode<synchronous>, transform_indices = @transform_1, window_bounds = array<i64: 3, 30, 1152>}, {pipeline_mode = #tpu.pipeline_mode<synchronous>, transform_indices = @transform_2, window_bounds = array<i64: 3, 384, 30>}, {pipeline_mode = #tpu.pipeline_mode<synchronous>, transform_indices = @transform_3, window_bounds = array<i64: 3, 30, 128>}, {pipeline_mode = #tpu.pipeline_mode<synchronous>, transform_indices = @transform_4, window_bounds = array<i64: 3, 128, 30>}, {pipeline_mode = #tpu.pipeline_mode<synchronous>, transform_indices = @transform_5, window_bounds = array<i64: 30, 128>}, {pipeline_mode = #tpu.pipeline_mode<synchronous>, transform_indices = @transform_6, window_bounds = array<i64: 3, 8, 128>}, {transform_indices = @transform_7, window_bounds = array<i64: 1, 8, 128>}]} {
    %c0 = arith.constant 0 : index
    %c0_0 = arith.constant 0 : index
    %c0_1 = arith.constant 0 : index
    %0 = vector.load %arg1[%c0, %c0_0, %c0_1] : memref<1x8x30xf32, #tpu.memory_space<vmem>>, vector<1x8x30xf32>
    %1 = vector.shape_cast %0 : vector<1x8x30xf32> to vector<8x30xf32>
    %2 = tpu.iota {dimensions = array<i32: 0>} : vector<8x8xi32>
    %3 = tpu.iota {dimensions = array<i32: 1>} : vector<8x8xi32>
    %4 = arith.cmpi sle, %3, %2 : vector<8x8xi32>
    %5 = vector.shape_cast %4 : vector<8x8xi1> to vector<1x8x8xi1>
    %c0_2 = arith.constant 0 : index
    %c0_3 = arith.constant 0 : index
    %c0_4 = arith.constant 0 : index
    %6 = vector.load %arg7[%c0_2, %c0_3, %c0_4] : memref<3x8x128xf32, #tpu.memory_space<vmem>>, vector<1x8x128xf32>
    %7 = vector.shape_cast %6 : vector<1x8x128xf32> to vector<8x128xf32>
    %8 = vector.extract_strided_slice %7 {offsets = [0, 0], sizes = [1, 30], strides = [1, 1]} : vector<8x128xf32> to vector<1x30xf32>
    %9 = vector.extract_strided_slice %7 {offsets = [1, 0], sizes = [1, 30], strides = [1, 1]} : vector<8x128xf32> to vector<1x30xf32>
    %10 = vector.extract_strided_slice %7 {offsets = [2, 0], sizes = [1, 30], strides = [1, 1]} : vector<8x128xf32> to vector<1x30xf32>
    %11 = vector.extract_strided_slice %7 {offsets = [3, 0], sizes = [1, 128], strides = [1, 1]} : vector<8x128xf32> to vector<1x128xf32>
    %12 = vector.extract_strided_slice %7 {offsets = [4, 0], sizes = [1, 30], strides = [1, 1]} : vector<8x128xf32> to vector<1x30xf32>
    %13 = vector.extract_strided_slice %7 {offsets = [5, 0], sizes = [1, 30], strides = [1, 1]} : vector<8x128xf32> to vector<1x30xf32>
    %14 = vector.extract_strided_slice %7 {offsets = [6, 0], sizes = [1, 30], strides = [1, 1]} : vector<8x128xf32> to vector<1x30xf32>
    %c0_5 = arith.constant 0 : index
    %c0_6 = arith.constant 0 : index
    %c0_7 = arith.constant 0 : index
    %15 = vector.load %arg2[%c0_5, %c0_6, %c0_7] : memref<3x30x1152xf32, #tpu.memory_space<vmem>>, vector<1x30x1152xf32>
    %16 = vector.shape_cast %15 : vector<1x30x1152xf32> to vector<30x1152xf32>
    %cst = arith.constant dense<0.000000e+00> : vector<8x1152xf32>
    %17 = tpu.matmul %1, %16, %cst {dimension_numbers = #tpu.dot_dimension_numbers<[1], [0], [0], [1], [0, 0, 1, 1], [], []>} : vector<8x30xf32>, vector<30x1152xf32>, vector<8x1152xf32> -> vector<8x1152xf32>
    %18 = vector.shape_cast %17 : vector<8x1152xf32> to vector<1x8x1152xf32>
    %19 = vector.extract_strided_slice %18 {offsets = [0, 0, 0], sizes = [1, 8, 128], strides = [1, 1, 1]} : vector<1x8x1152xf32> to vector<1x8x128xf32>
    %20 = vector.extract_strided_slice %18 {offsets = [0, 0, 384], sizes = [1, 8, 128], strides = [1, 1, 1]} : vector<1x8x1152xf32> to vector<1x8x128xf32>
    %21 = vector.extract_strided_slice %18 {offsets = [0, 0, 768], sizes = [1, 8, 128], strides = [1, 1, 1]} : vector<1x8x1152xf32> to vector<1x8x128xf32>
    "tpu.trace_start"() <{level = 10 : i32, message = "btf,bsf->bts"}> : () -> ()
    %cst_8 = arith.constant dense<0.000000e+00> : vector<1x8x8xf32>
    %22 = tpu.matmul %19, %20, %cst_8 {dimension_numbers = #tpu.dot_dimension_numbers<[2], [2], [1], [1], [0, 0, 0, 1, 1, 1], [0], [0]>} : vector<1x8x128xf32>, vector<1x8x128xf32>, vector<1x8x8xf32> -> vector<1x8x8xf32>
    "tpu.trace_stop"() : () -> ()
    %cst_9 = arith.constant 0.182574183 : f32
    %23 = vector.broadcast %cst_9 : f32 to vector<1x8x8xf32>
    %24 = arith.mulf %22, %23 : vector<1x8x8xf32>
    %cst_10 = arith.constant 0xFF800000 : f32
    %25 = vector.broadcast %cst_10 : f32 to vector<1x8x8xf32>
    %26 = arith.select %5, %24, %25 : vector<1x8x8xi1>, vector<1x8x8xf32>
    %cst_11 = arith.constant dense<0xFF800000> : vector<1x8xf32>
    %27 = vector.multi_reduction <maximumf>, %26, %cst_11 [2] : vector<1x8x8xf32> to vector<1x8xf32>
    %28 = vector.shape_cast %27 : vector<1x8xf32> to vector<1x8x1xf32>
    %29 = vector.broadcast %28 : vector<1x8x1xf32> to vector<1x8x8xf32>
    %30 = arith.subf %26, %29 : vector<1x8x8xf32>
    %31 = math.exp %30 : vector<1x8x8xf32>
    %cst_12 = arith.constant dense<0.000000e+00> : vector<1x8xf32>
    %32 = vector.multi_reduction <add>, %31, %cst_12 [2] : vector<1x8x8xf32> to vector<1x8xf32>
    %33 = vector.shape_cast %32 : vector<1x8xf32> to vector<1x8x1xf32>
    %34 = vector.broadcast %33 : vector<1x8x1xf32> to vector<1x8x8xf32>
    %35 = arith.divf %31, %34 : vector<1x8x8xf32>
    "tpu.trace_start"() <{level = 10 : i32, message = "bts,bsf->btf"}> : () -> ()
    %cst_13 = arith.constant dense<0.000000e+00> : vector<1x8x128xf32>
    %36 = tpu.matmul %35, %21, %cst_13 {dimension_numbers = #tpu.dot_dimension_numbers<[2], [1], [1], [2], [0, 0, 0, 1, 1, 2], [0], [0]>} : vector<1x8x8xf32>, vector<1x8x128xf32>, vector<1x8x128xf32> -> vector<1x8x128xf32>
    "tpu.trace_stop"() : () -> ()
    %37 = vector.extract_strided_slice %18 {offsets = [0, 0, 128], sizes = [1, 8, 128], strides = [1, 1, 1]} : vector<1x8x1152xf32> to vector<1x8x128xf32>
    %38 = vector.extract_strided_slice %18 {offsets = [0, 0, 512], sizes = [1, 8, 128], strides = [1, 1, 1]} : vector<1x8x1152xf32> to vector<1x8x128xf32>
    %39 = vector.extract_strided_slice %18 {offsets = [0, 0, 896], sizes = [1, 8, 128], strides = [1, 1, 1]} : vector<1x8x1152xf32> to vector<1x8x128xf32>
    "tpu.trace_start"() <{level = 10 : i32, message = "btf,bsf->bts"}> : () -> ()
    %cst_14 = arith.constant dense<0.000000e+00> : vector<1x8x8xf32>
    %40 = tpu.matmul %37, %38, %cst_14 {dimension_numbers = #tpu.dot_dimension_numbers<[2], [2], [1], [1], [0, 0, 0, 1, 1, 1], [0], [0]>} : vector<1x8x128xf32>, vector<1x8x128xf32>, vector<1x8x8xf32> -> vector<1x8x8xf32>
    "tpu.trace_stop"() : () -> ()
    %cst_15 = arith.constant 0.182574183 : f32
    %41 = vector.broadcast %cst_15 : f32 to vector<1x8x8xf32>
    %42 = arith.mulf %40, %41 : vector<1x8x8xf32>
    %cst_16 = arith.constant 0xFF800000 : f32
    %43 = vector.broadcast %cst_16 : f32 to vector<1x8x8xf32>
    %44 = arith.select %5, %42, %43 : vector<1x8x8xi1>, vector<1x8x8xf32>
    %cst_17 = arith.constant dense<0xFF800000> : vector<1x8xf32>
    %45 = vector.multi_reduction <maximumf>, %44, %cst_17 [2] : vector<1x8x8xf32> to vector<1x8xf32>
    %46 = vector.shape_cast %45 : vector<1x8xf32> to vector<1x8x1xf32>
    %47 = vector.broadcast %46 : vector<1x8x1xf32> to vector<1x8x8xf32>
    %48 = arith.subf %44, %47 : vector<1x8x8xf32>
    %49 = math.exp %48 : vector<1x8x8xf32>
    %cst_18 = arith.constant dense<0.000000e+00> : vector<1x8xf32>
    %50 = vector.multi_reduction <add>, %49, %cst_18 [2] : vector<1x8x8xf32> to vector<1x8xf32>
    %51 = vector.shape_cast %50 : vector<1x8xf32> to vector<1x8x1xf32>
    %52 = vector.broadcast %51 : vector<1x8x1xf32> to vector<1x8x8xf32>
    %53 = arith.divf %49, %52 : vector<1x8x8xf32>
    "tpu.trace_start"() <{level = 10 : i32, message = "bts,bsf->btf"}> : () -> ()
    %cst_19 = arith.constant dense<0.000000e+00> : vector<1x8x128xf32>
    %54 = tpu.matmul %53, %39, %cst_19 {dimension_numbers = #tpu.dot_dimension_numbers<[2], [1], [1], [2], [0, 0, 0, 1, 1, 2], [0], [0]>} : vector<1x8x8xf32>, vector<1x8x128xf32>, vector<1x8x128xf32> -> vector<1x8x128xf32>
    "tpu.trace_stop"() : () -> ()
    %55 = vector.extract_strided_slice %18 {offsets = [0, 0, 256], sizes = [1, 8, 128], strides = [1, 1, 1]} : vector<1x8x1152xf32> to vector<1x8x128xf32>
    %56 = vector.extract_strided_slice %18 {offsets = [0, 0, 640], sizes = [1, 8, 128], strides = [1, 1, 1]} : vector<1x8x1152xf32> to vector<1x8x128xf32>
    %57 = vector.extract_strided_slice %18 {offsets = [0, 0, 1024], sizes = [1, 8, 128], strides = [1, 1, 1]} : vector<1x8x1152xf32> to vector<1x8x128xf32>
    "tpu.trace_start"() <{level = 10 : i32, message = "btf,bsf->bts"}> : () -> ()
    %cst_20 = arith.constant dense<0.000000e+00> : vector<1x8x8xf32>
    %58 = tpu.matmul %55, %56, %cst_20 {dimension_numbers = #tpu.dot_dimension_numbers<[2], [2], [1], [1], [0, 0, 0, 1, 1, 1], [0], [0]>} : vector<1x8x128xf32>, vector<1x8x128xf32>, vector<1x8x8xf32> -> vector<1x8x8xf32>
    "tpu.trace_stop"() : () -> ()
    %cst_21 = arith.constant 0.182574183 : f32
    %59 = vector.broadcast %cst_21 : f32 to vector<1x8x8xf32>
    %60 = arith.mulf %58, %59 : vector<1x8x8xf32>
    %cst_22 = arith.constant 0xFF800000 : f32
    %61 = vector.broadcast %cst_22 : f32 to vector<1x8x8xf32>
    %62 = arith.select %5, %60, %61 : vector<1x8x8xi1>, vector<1x8x8xf32>
    %cst_23 = arith.constant dense<0xFF800000> : vector<1x8xf32>
    %63 = vector.multi_reduction <maximumf>, %62, %cst_23 [2] : vector<1x8x8xf32> to vector<1x8xf32>
    %64 = vector.shape_cast %63 : vector<1x8xf32> to vector<1x8x1xf32>
    %65 = vector.broadcast %64 : vector<1x8x1xf32> to vector<1x8x8xf32>
    %66 = arith.subf %62, %65 : vector<1x8x8xf32>
    %67 = math.exp %66 : vector<1x8x8xf32>
    %cst_24 = arith.constant dense<0.000000e+00> : vector<1x8xf32>
    %68 = vector.multi_reduction <add>, %67, %cst_24 [2] : vector<1x8x8xf32> to vector<1x8xf32>
    %69 = vector.shape_cast %68 : vector<1x8xf32> to vector<1x8x1xf32>
    %70 = vector.broadcast %69 : vector<1x8x1xf32> to vector<1x8x8xf32>
    %71 = arith.divf %67, %70 : vector<1x8x8xf32>
    "tpu.trace_start"() <{level = 10 : i32, message = "bts,bsf->btf"}> : () -> ()
    %cst_25 = arith.constant dense<0.000000e+00> : vector<1x8x128xf32>
    %72 = tpu.matmul %71, %57, %cst_25 {dimension_numbers = #tpu.dot_dimension_numbers<[2], [1], [1], [2], [0, 0, 0, 1, 1, 2], [0], [0]>} : vector<1x8x8xf32>, vector<1x8x128xf32>, vector<1x8x128xf32> -> vector<1x8x128xf32>
    "tpu.trace_stop"() : () -> ()
    %73 = tpu.concatenate %36, %54, %72 in 2 : vector<1x8x128xf32>, vector<1x8x128xf32>, vector<1x8x128xf32> -> vector<1x8x384xf32>
    %74 = vector.shape_cast %73 : vector<1x8x384xf32> to vector<8x384xf32>
    %c0_26 = arith.constant 0 : index
    %c0_27 = arith.constant 0 : index
    %c0_28 = arith.constant 0 : index
    %75 = vector.load %arg3[%c0_26, %c0_27, %c0_28] : memref<3x384x30xf32, #tpu.memory_space<vmem>>, vector<1x384x30xf32>
    %76 = vector.shape_cast %75 : vector<1x384x30xf32> to vector<384x30xf32>
    %cst_29 = arith.constant dense<0.000000e+00> : vector<8x30xf32>
    %77 = tpu.matmul %74, %76, %cst_29 {dimension_numbers = #tpu.dot_dimension_numbers<[1], [0], [0], [1], [0, 0, 1, 1], [], []>} : vector<8x384xf32>, vector<384x30xf32>, vector<8x30xf32> -> vector<8x30xf32>
    %78 = vector.broadcast %8 : vector<1x30xf32> to vector<8x30xf32>
    %79 = arith.addf %77, %78 : vector<8x30xf32>
    %cst_30 = arith.constant dense<0.000000e+00> : vector<8xf32>
    %80 = vector.multi_reduction <add>, %79, %cst_30 [1] : vector<8x30xf32> to vector<8xf32>
    %81 = vector.shape_cast %80 : vector<8xf32> to vector<8x1xf32>
    %cst_31 = arith.constant 3.000000e+01 : f32
    %82 = vector.broadcast %cst_31 : f32 to vector<8x1xf32>
    %83 = arith.divf %81, %82 : vector<8x1xf32>
    %84 = vector.broadcast %83 : vector<8x1xf32> to vector<8x30xf32>
    %85 = arith.subf %79, %84 : vector<8x30xf32>
    %86 = arith.mulf %85, %85 : vector<8x30xf32>
    %cst_32 = arith.constant dense<0.000000e+00> : vector<8xf32>
    %87 = vector.multi_reduction <add>, %86, %cst_32 [1] : vector<8x30xf32> to vector<8xf32>
    %88 = vector.shape_cast %87 : vector<8xf32> to vector<8x1xf32>
    %cst_33 = arith.constant 3.000000e+01 : f32
    %89 = vector.broadcast %cst_33 : f32 to vector<8x1xf32>
    %90 = arith.divf %88, %89 : vector<8x1xf32>
    %91 = vector.broadcast %83 : vector<8x1xf32> to vector<8x30xf32>
    %92 = arith.subf %79, %91 : vector<8x30xf32>
    %cst_34 = arith.constant 9.99999974E-6 : f32
    %93 = vector.broadcast %cst_34 : f32 to vector<8x1xf32>
    %94 = arith.addf %90, %93 : vector<8x1xf32>
    %95 = math.rsqrt %94 : vector<8x1xf32>
    %96 = vector.broadcast %95 : vector<8x1xf32> to vector<8x30xf32>
    %97 = arith.mulf %92, %96 : vector<8x30xf32>
    %98 = vector.broadcast %9 : vector<1x30xf32> to vector<8x30xf32>
    %99 = arith.mulf %97, %98 : vector<8x30xf32>
    %100 = vector.broadcast %10 : vector<1x30xf32> to vector<8x30xf32>
    %101 = arith.addf %99, %100 : vector<8x30xf32>
    %102 = arith.addf %1, %101 : vector<8x30xf32>
    %c0_35 = arith.constant 0 : index
    %c0_36 = arith.constant 0 : index
    %c0_37 = arith.constant 0 : index
    %103 = vector.load %arg4[%c0_35, %c0_36, %c0_37] : memref<3x30x128xf32, #tpu.memory_space<vmem>>, vector<1x30x128xf32>
    %104 = vector.shape_cast %103 : vector<1x30x128xf32> to vector<30x128xf32>
    %cst_38 = arith.constant dense<0.000000e+00> : vector<8x128xf32>
    %105 = tpu.matmul %102, %104, %cst_38 {dimension_numbers = #tpu.dot_dimension_numbers<[1], [0], [0], [1], [0, 0, 1, 1], [], []>} : vector<8x30xf32>, vector<30x128xf32>, vector<8x128xf32> -> vector<8x128xf32>
    %106 = vector.broadcast %11 : vector<1x128xf32> to vector<8x128xf32>
    %107 = arith.addf %105, %106 : vector<8x128xf32>
    %cst_39 = arith.constant 0.000000e+00 : f32
    %108 = vector.broadcast %cst_39 : f32 to vector<8x128xf32>
    %109 = arith.maximumf %107, %108 : vector<8x128xf32>
    %c0_40 = arith.constant 0 : index
    %c0_41 = arith.constant 0 : index
    %c0_42 = arith.constant 0 : index
    %110 = vector.load %arg5[%c0_40, %c0_41, %c0_42] : memref<3x128x30xf32, #tpu.memory_space<vmem>>, vector<1x128x30xf32>
    %111 = vector.shape_cast %110 : vector<1x128x30xf32> to vector<128x30xf32>
    %cst_43 = arith.constant dense<0.000000e+00> : vector<8x30xf32>
    %112 = tpu.matmul %109, %111, %cst_43 {dimension_numbers = #tpu.dot_dimension_numbers<[1], [0], [0], [1], [0, 0, 1, 1], [], []>} : vector<8x128xf32>, vector<128x30xf32>, vector<8x30xf32> -> vector<8x30xf32>
    %113 = vector.broadcast %12 : vector<1x30xf32> to vector<8x30xf32>
    %114 = arith.addf %112, %113 : vector<8x30xf32>
    %cst_44 = arith.constant dense<0.000000e+00> : vector<8xf32>
    %115 = vector.multi_reduction <add>, %114, %cst_44 [1] : vector<8x30xf32> to vector<8xf32>
    %116 = vector.shape_cast %115 : vector<8xf32> to vector<8x1xf32>
    %cst_45 = arith.constant 3.000000e+01 : f32
    %117 = vector.broadcast %cst_45 : f32 to vector<8x1xf32>
    %118 = arith.divf %116, %117 : vector<8x1xf32>
    %119 = vector.broadcast %118 : vector<8x1xf32> to vector<8x30xf32>
    %120 = arith.subf %114, %119 : vector<8x30xf32>
    %121 = arith.mulf %120, %120 : vector<8x30xf32>
    %cst_46 = arith.constant dense<0.000000e+00> : vector<8xf32>
    %122 = vector.multi_reduction <add>, %121, %cst_46 [1] : vector<8x30xf32> to vector<8xf32>
    %123 = vector.shape_cast %122 : vector<8xf32> to vector<8x1xf32>
    %cst_47 = arith.constant 3.000000e+01 : f32
    %124 = vector.broadcast %cst_47 : f32 to vector<8x1xf32>
    %125 = arith.divf %123, %124 : vector<8x1xf32>
    %126 = vector.broadcast %118 : vector<8x1xf32> to vector<8x30xf32>
    %127 = arith.subf %114, %126 : vector<8x30xf32>
    %cst_48 = arith.constant 9.99999974E-6 : f32
    %128 = vector.broadcast %cst_48 : f32 to vector<8x1xf32>
    %129 = arith.addf %125, %128 : vector<8x1xf32>
    %130 = math.rsqrt %129 : vector<8x1xf32>
    %131 = vector.broadcast %130 : vector<8x1xf32> to vector<8x30xf32>
    %132 = arith.mulf %127, %131 : vector<8x30xf32>
    %133 = vector.broadcast %13 : vector<1x30xf32> to vector<8x30xf32>
    %134 = arith.mulf %132, %133 : vector<8x30xf32>
    %135 = vector.broadcast %14 : vector<1x30xf32> to vector<8x30xf32>
    %136 = arith.addf %134, %135 : vector<8x30xf32>
    %137 = arith.addf %102, %136 : vector<8x30xf32>
    %c1 = arith.constant 1 : index
    %c0_49 = arith.constant 0 : index
    %c0_50 = arith.constant 0 : index
    %138 = vector.load %arg7[%c1, %c0_49, %c0_50] : memref<3x8x128xf32, #tpu.memory_space<vmem>>, vector<1x8x128xf32>
    %139 = vector.shape_cast %138 : vector<1x8x128xf32> to vector<8x128xf32>
    %140 = vector.extract_strided_slice %139 {offsets = [0, 0], sizes = [1, 30], strides = [1, 1]} : vector<8x128xf32> to vector<1x30xf32>
    %141 = vector.extract_strided_slice %139 {offsets = [1, 0], sizes = [1, 30], strides = [1, 1]} : vector<8x128xf32> to vector<1x30xf32>
    %142 = vector.extract_strided_slice %139 {offsets = [2, 0], sizes = [1, 30], strides = [1, 1]} : vector<8x128xf32> to vector<1x30xf32>
    %143 = vector.extract_strided_slice %139 {offsets = [3, 0], sizes = [1, 128], strides = [1, 1]} : vector<8x128xf32> to vector<1x128xf32>
    %144 = vector.extract_strided_slice %139 {offsets = [4, 0], sizes = [1, 30], strides = [1, 1]} : vector<8x128xf32> to vector<1x30xf32>
    %145 = vector.extract_strided_slice %139 {offsets = [5, 0], sizes = [1, 30], strides = [1, 1]} : vector<8x128xf32> to vector<1x30xf32>
    %146 = vector.extract_strided_slice %139 {offsets = [6, 0], sizes = [1, 30], strides = [1, 1]} : vector<8x128xf32> to vector<1x30xf32>
    %c1_51 = arith.constant 1 : index
    %c0_52 = arith.constant 0 : index
    %c0_53 = arith.constant 0 : index
    %147 = vector.load %arg2[%c1_51, %c0_52, %c0_53] : memref<3x30x1152xf32, #tpu.memory_space<vmem>>, vector<1x30x1152xf32>
    %148 = vector.shape_cast %147 : vector<1x30x1152xf32> to vector<30x1152xf32>
    %cst_54 = arith.constant dense<0.000000e+00> : vector<8x1152xf32>
    %149 = tpu.matmul %137, %148, %cst_54 {dimension_numbers = #tpu.dot_dimension_numbers<[1], [0], [0], [1], [0, 0, 1, 1], [], []>} : vector<8x30xf32>, vector<30x1152xf32>, vector<8x1152xf32> -> vector<8x1152xf32>
    %150 = vector.shape_cast %149 : vector<8x1152xf32> to vector<1x8x1152xf32>
    %151 = vector.extract_strided_slice %150 {offsets = [0, 0, 0], sizes = [1, 8, 128], strides = [1, 1, 1]} : vector<1x8x1152xf32> to vector<1x8x128xf32>
    %152 = vector.extract_strided_slice %150 {offsets = [0, 0, 384], sizes = [1, 8, 128], strides = [1, 1, 1]} : vector<1x8x1152xf32> to vector<1x8x128xf32>
    %153 = vector.extract_strided_slice %150 {offsets = [0, 0, 768], sizes = [1, 8, 128], strides = [1, 1, 1]} : vector<1x8x1152xf32> to vector<1x8x128xf32>
    "tpu.trace_start"() <{level = 10 : i32, message = "btf,bsf->bts"}> : () -> ()
    %cst_55 = arith.constant dense<0.000000e+00> : vector<1x8x8xf32>
    %154 = tpu.matmul %151, %152, %cst_55 {dimension_numbers = #tpu.dot_dimension_numbers<[2], [2], [1], [1], [0, 0, 0, 1, 1, 1], [0], [0]>} : vector<1x8x128xf32>, vector<1x8x128xf32>, vector<1x8x8xf32> -> vector<1x8x8xf32>
    "tpu.trace_stop"() : () -> ()
    %cst_56 = arith.constant 0.182574183 : f32
    %155 = vector.broadcast %cst_56 : f32 to vector<1x8x8xf32>
    %156 = arith.mulf %154, %155 : vector<1x8x8xf32>
    %cst_57 = arith.constant 0xFF800000 : f32
    %157 = vector.broadcast %cst_57 : f32 to vector<1x8x8xf32>
    %158 = arith.select %5, %156, %157 : vector<1x8x8xi1>, vector<1x8x8xf32>
    %cst_58 = arith.constant dense<0xFF800000> : vector<1x8xf32>
    %159 = vector.multi_reduction <maximumf>, %158, %cst_58 [2] : vector<1x8x8xf32> to vector<1x8xf32>
    %160 = vector.shape_cast %159 : vector<1x8xf32> to vector<1x8x1xf32>
    %161 = vector.broadcast %160 : vector<1x8x1xf32> to vector<1x8x8xf32>
    %162 = arith.subf %158, %161 : vector<1x8x8xf32>
    %163 = math.exp %162 : vector<1x8x8xf32>
    %cst_59 = arith.constant dense<0.000000e+00> : vector<1x8xf32>
    %164 = vector.multi_reduction <add>, %163, %cst_59 [2] : vector<1x8x8xf32> to vector<1x8xf32>
    %165 = vector.shape_cast %164 : vector<1x8xf32> to vector<1x8x1xf32>
    %166 = vector.broadcast %165 : vector<1x8x1xf32> to vector<1x8x8xf32>
    %167 = arith.divf %163, %166 : vector<1x8x8xf32>
    "tpu.trace_start"() <{level = 10 : i32, message = "bts,bsf->btf"}> : () -> ()
    %cst_60 = arith.constant dense<0.000000e+00> : vector<1x8x128xf32>
    %168 = tpu.matmul %167, %153, %cst_60 {dimension_numbers = #tpu.dot_dimension_numbers<[2], [1], [1], [2], [0, 0, 0, 1, 1, 2], [0], [0]>} : vector<1x8x8xf32>, vector<1x8x128xf32>, vector<1x8x128xf32> -> vector<1x8x128xf32>
    "tpu.trace_stop"() : () -> ()
    %169 = vector.extract_strided_slice %150 {offsets = [0, 0, 128], sizes = [1, 8, 128], strides = [1, 1, 1]} : vector<1x8x1152xf32> to vector<1x8x128xf32>
    %170 = vector.extract_strided_slice %150 {offsets = [0, 0, 512], sizes = [1, 8, 128], strides = [1, 1, 1]} : vector<1x8x1152xf32> to vector<1x8x128xf32>
    %171 = vector.extract_strided_slice %150 {offsets = [0, 0, 896], sizes = [1, 8, 128], strides = [1, 1, 1]} : vector<1x8x1152xf32> to vector<1x8x128xf32>
    "tpu.trace_start"() <{level = 10 : i32, message = "btf,bsf->bts"}> : () -> ()
    %cst_61 = arith.constant dense<0.000000e+00> : vector<1x8x8xf32>
    %172 = tpu.matmul %169, %170, %cst_61 {dimension_numbers = #tpu.dot_dimension_numbers<[2], [2], [1], [1], [0, 0, 0, 1, 1, 1], [0], [0]>} : vector<1x8x128xf32>, vector<1x8x128xf32>, vector<1x8x8xf32> -> vector<1x8x8xf32>
    "tpu.trace_stop"() : () -> ()
    %cst_62 = arith.constant 0.182574183 : f32
    %173 = vector.broadcast %cst_62 : f32 to vector<1x8x8xf32>
    %174 = arith.mulf %172, %173 : vector<1x8x8xf32>
    %cst_63 = arith.constant 0xFF800000 : f32
    %175 = vector.broadcast %cst_63 : f32 to vector<1x8x8xf32>
    %176 = arith.select %5, %174, %175 : vector<1x8x8xi1>, vector<1x8x8xf32>
    %cst_64 = arith.constant dense<0xFF800000> : vector<1x8xf32>
    %177 = vector.multi_reduction <maximumf>, %176, %cst_64 [2] : vector<1x8x8xf32> to vector<1x8xf32>
    %178 = vector.shape_cast %177 : vector<1x8xf32> to vector<1x8x1xf32>
    %179 = vector.broadcast %178 : vector<1x8x1xf32> to vector<1x8x8xf32>
    %180 = arith.subf %176, %179 : vector<1x8x8xf32>
    %181 = math.exp %180 : vector<1x8x8xf32>
    %cst_65 = arith.constant dense<0.000000e+00> : vector<1x8xf32>
    %182 = vector.multi_reduction <add>, %181, %cst_65 [2] : vector<1x8x8xf32> to vector<1x8xf32>
    %183 = vector.shape_cast %182 : vector<1x8xf32> to vector<1x8x1xf32>
    %184 = vector.broadcast %183 : vector<1x8x1xf32> to vector<1x8x8xf32>
    %185 = arith.divf %181, %184 : vector<1x8x8xf32>
    "tpu.trace_start"() <{level = 10 : i32, message = "bts,bsf->btf"}> : () -> ()
    %cst_66 = arith.constant dense<0.000000e+00> : vector<1x8x128xf32>
    %186 = tpu.matmul %185, %171, %cst_66 {dimension_numbers = #tpu.dot_dimension_numbers<[2], [1], [1], [2], [0, 0, 0, 1, 1, 2], [0], [0]>} : vector<1x8x8xf32>, vector<1x8x128xf32>, vector<1x8x128xf32> -> vector<1x8x128xf32>
    "tpu.trace_stop"() : () -> ()
    %187 = vector.extract_strided_slice %150 {offsets = [0, 0, 256], sizes = [1, 8, 128], strides = [1, 1, 1]} : vector<1x8x1152xf32> to vector<1x8x128xf32>
    %188 = vector.extract_strided_slice %150 {offsets = [0, 0, 640], sizes = [1, 8, 128], strides = [1, 1, 1]} : vector<1x8x1152xf32> to vector<1x8x128xf32>
    %189 = vector.extract_strided_slice %150 {offsets = [0, 0, 1024], sizes = [1, 8, 128], strides = [1, 1, 1]} : vector<1x8x1152xf32> to vector<1x8x128xf32>
    "tpu.trace_start"() <{level = 10 : i32, message = "btf,bsf->bts"}> : () -> ()
    %cst_67 = arith.constant dense<0.000000e+00> : vector<1x8x8xf32>
    %190 = tpu.matmul %187, %188, %cst_67 {dimension_numbers = #tpu.dot_dimension_numbers<[2], [2], [1], [1], [0, 0, 0, 1, 1, 1], [0], [0]>} : vector<1x8x128xf32>, vector<1x8x128xf32>, vector<1x8x8xf32> -> vector<1x8x8xf32>
    "tpu.trace_stop"() : () -> ()
    %cst_68 = arith.constant 0.182574183 : f32
    %191 = vector.broadcast %cst_68 : f32 to vector<1x8x8xf32>
    %192 = arith.mulf %190, %191 : vector<1x8x8xf32>
    %cst_69 = arith.constant 0xFF800000 : f32
    %193 = vector.broadcast %cst_69 : f32 to vector<1x8x8xf32>
    %194 = arith.select %5, %192, %193 : vector<1x8x8xi1>, vector<1x8x8xf32>
    %cst_70 = arith.constant dense<0xFF800000> : vector<1x8xf32>
    %195 = vector.multi_reduction <maximumf>, %194, %cst_70 [2] : vector<1x8x8xf32> to vector<1x8xf32>
    %196 = vector.shape_cast %195 : vector<1x8xf32> to vector<1x8x1xf32>
    %197 = vector.broadcast %196 : vector<1x8x1xf32> to vector<1x8x8xf32>
    %198 = arith.subf %194, %197 : vector<1x8x8xf32>
    %199 = math.exp %198 : vector<1x8x8xf32>
    %cst_71 = arith.constant dense<0.000000e+00> : vector<1x8xf32>
    %200 = vector.multi_reduction <add>, %199, %cst_71 [2] : vector<1x8x8xf32> to vector<1x8xf32>
    %201 = vector.shape_cast %200 : vector<1x8xf32> to vector<1x8x1xf32>
    %202 = vector.broadcast %201 : vector<1x8x1xf32> to vector<1x8x8xf32>
    %203 = arith.divf %199, %202 : vector<1x8x8xf32>
    "tpu.trace_start"() <{level = 10 : i32, message = "bts,bsf->btf"}> : () -> ()
    %cst_72 = arith.constant dense<0.000000e+00> : vector<1x8x128xf32>
    %204 = tpu.matmul %203, %189, %cst_72 {dimension_numbers = #tpu.dot_dimension_numbers<[2], [1], [1], [2], [0, 0, 0, 1, 1, 2], [0], [0]>} : vector<1x8x8xf32>, vector<1x8x128xf32>, vector<1x8x128xf32> -> vector<1x8x128xf32>
    "tpu.trace_stop"() : () -> ()
    %205 = tpu.concatenate %168, %186, %204 in 2 : vector<1x8x128xf32>, vector<1x8x128xf32>, vector<1x8x128xf32> -> vector<1x8x384xf32>
    %206 = vector.shape_cast %205 : vector<1x8x384xf32> to vector<8x384xf32>
    %c1_73 = arith.constant 1 : index
    %c0_74 = arith.constant 0 : index
    %c0_75 = arith.constant 0 : index
    %207 = vector.load %arg3[%c1_73, %c0_74, %c0_75] : memref<3x384x30xf32, #tpu.memory_space<vmem>>, vector<1x384x30xf32>
    %208 = vector.shape_cast %207 : vector<1x384x30xf32> to vector<384x30xf32>
    %cst_76 = arith.constant dense<0.000000e+00> : vector<8x30xf32>
    %209 = tpu.matmul %206, %208, %cst_76 {dimension_numbers = #tpu.dot_dimension_numbers<[1], [0], [0], [1], [0, 0, 1, 1], [], []>} : vector<8x384xf32>, vector<384x30xf32>, vector<8x30xf32> -> vector<8x30xf32>
    %210 = vector.broadcast %140 : vector<1x30xf32> to vector<8x30xf32>
    %211 = arith.addf %209, %210 : vector<8x30xf32>
    %cst_77 = arith.constant dense<0.000000e+00> : vector<8xf32>
    %212 = vector.multi_reduction <add>, %211, %cst_77 [1] : vector<8x30xf32> to vector<8xf32>
    %213 = vector.shape_cast %212 : vector<8xf32> to vector<8x1xf32>
    %cst_78 = arith.constant 3.000000e+01 : f32
    %214 = vector.broadcast %cst_78 : f32 to vector<8x1xf32>
    %215 = arith.divf %213, %214 : vector<8x1xf32>
    %216 = vector.broadcast %215 : vector<8x1xf32> to vector<8x30xf32>
    %217 = arith.subf %211, %216 : vector<8x30xf32>
    %218 = arith.mulf %217, %217 : vector<8x30xf32>
    %cst_79 = arith.constant dense<0.000000e+00> : vector<8xf32>
    %219 = vector.multi_reduction <add>, %218, %cst_79 [1] : vector<8x30xf32> to vector<8xf32>
    %220 = vector.shape_cast %219 : vector<8xf32> to vector<8x1xf32>
    %cst_80 = arith.constant 3.000000e+01 : f32
    %221 = vector.broadcast %cst_80 : f32 to vector<8x1xf32>
    %222 = arith.divf %220, %221 : vector<8x1xf32>
    %223 = vector.broadcast %215 : vector<8x1xf32> to vector<8x30xf32>
    %224 = arith.subf %211, %223 : vector<8x30xf32>
    %cst_81 = arith.constant 9.99999974E-6 : f32
    %225 = vector.broadcast %cst_81 : f32 to vector<8x1xf32>
    %226 = arith.addf %222, %225 : vector<8x1xf32>
    %227 = math.rsqrt %226 : vector<8x1xf32>
    %228 = vector.broadcast %227 : vector<8x1xf32> to vector<8x30xf32>
    %229 = arith.mulf %224, %228 : vector<8x30xf32>
    %230 = vector.broadcast %141 : vector<1x30xf32> to vector<8x30xf32>
    %231 = arith.mulf %229, %230 : vector<8x30xf32>
    %232 = vector.broadcast %142 : vector<1x30xf32> to vector<8x30xf32>
    %233 = arith.addf %231, %232 : vector<8x30xf32>
    %234 = arith.addf %137, %233 : vector<8x30xf32>
    %c1_82 = arith.constant 1 : index
    %c0_83 = arith.constant 0 : index
    %c0_84 = arith.constant 0 : index
    %235 = vector.load %arg4[%c1_82, %c0_83, %c0_84] : memref<3x30x128xf32, #tpu.memory_space<vmem>>, vector<1x30x128xf32>
    %236 = vector.shape_cast %235 : vector<1x30x128xf32> to vector<30x128xf32>
    %cst_85 = arith.constant dense<0.000000e+00> : vector<8x128xf32>
    %237 = tpu.matmul %234, %236, %cst_85 {dimension_numbers = #tpu.dot_dimension_numbers<[1], [0], [0], [1], [0, 0, 1, 1], [], []>} : vector<8x30xf32>, vector<30x128xf32>, vector<8x128xf32> -> vector<8x128xf32>
    %238 = vector.broadcast %143 : vector<1x128xf32> to vector<8x128xf32>
    %239 = arith.addf %237, %238 : vector<8x128xf32>
    %cst_86 = arith.constant 0.000000e+00 : f32
    %240 = vector.broadcast %cst_86 : f32 to vector<8x128xf32>
    %241 = arith.maximumf %239, %240 : vector<8x128xf32>
    %c1_87 = arith.constant 1 : index
    %c0_88 = arith.constant 0 : index
    %c0_89 = arith.constant 0 : index
    %242 = vector.load %arg5[%c1_87, %c0_88, %c0_89] : memref<3x128x30xf32, #tpu.memory_space<vmem>>, vector<1x128x30xf32>
    %243 = vector.shape_cast %242 : vector<1x128x30xf32> to vector<128x30xf32>
    %cst_90 = arith.constant dense<0.000000e+00> : vector<8x30xf32>
    %244 = tpu.matmul %241, %243, %cst_90 {dimension_numbers = #tpu.dot_dimension_numbers<[1], [0], [0], [1], [0, 0, 1, 1], [], []>} : vector<8x128xf32>, vector<128x30xf32>, vector<8x30xf32> -> vector<8x30xf32>
    %245 = vector.broadcast %144 : vector<1x30xf32> to vector<8x30xf32>
    %246 = arith.addf %244, %245 : vector<8x30xf32>
    %cst_91 = arith.constant dense<0.000000e+00> : vector<8xf32>
    %247 = vector.multi_reduction <add>, %246, %cst_91 [1] : vector<8x30xf32> to vector<8xf32>
    %248 = vector.shape_cast %247 : vector<8xf32> to vector<8x1xf32>
    %cst_92 = arith.constant 3.000000e+01 : f32
    %249 = vector.broadcast %cst_92 : f32 to vector<8x1xf32>
    %250 = arith.divf %248, %249 : vector<8x1xf32>
    %251 = vector.broadcast %250 : vector<8x1xf32> to vector<8x30xf32>
    %252 = arith.subf %246, %251 : vector<8x30xf32>
    %253 = arith.mulf %252, %252 : vector<8x30xf32>
    %cst_93 = arith.constant dense<0.000000e+00> : vector<8xf32>
    %254 = vector.multi_reduction <add>, %253, %cst_93 [1] : vector<8x30xf32> to vector<8xf32>
    %255 = vector.shape_cast %254 : vector<8xf32> to vector<8x1xf32>
    %cst_94 = arith.constant 3.000000e+01 : f32
    %256 = vector.broadcast %cst_94 : f32 to vector<8x1xf32>
    %257 = arith.divf %255, %256 : vector<8x1xf32>
    %258 = vector.broadcast %250 : vector<8x1xf32> to vector<8x30xf32>
    %259 = arith.subf %246, %258 : vector<8x30xf32>
    %cst_95 = arith.constant 9.99999974E-6 : f32
    %260 = vector.broadcast %cst_95 : f32 to vector<8x1xf32>
    %261 = arith.addf %257, %260 : vector<8x1xf32>
    %262 = math.rsqrt %261 : vector<8x1xf32>
    %263 = vector.broadcast %262 : vector<8x1xf32> to vector<8x30xf32>
    %264 = arith.mulf %259, %263 : vector<8x30xf32>
    %265 = vector.broadcast %145 : vector<1x30xf32> to vector<8x30xf32>
    %266 = arith.mulf %264, %265 : vector<8x30xf32>
    %267 = vector.broadcast %146 : vector<1x30xf32> to vector<8x30xf32>
    %268 = arith.addf %266, %267 : vector<8x30xf32>
    %269 = arith.addf %234, %268 : vector<8x30xf32>
    %c2 = arith.constant 2 : index
    %c0_96 = arith.constant 0 : index
    %c0_97 = arith.constant 0 : index
    %270 = vector.load %arg7[%c2, %c0_96, %c0_97] : memref<3x8x128xf32, #tpu.memory_space<vmem>>, vector<1x8x128xf32>
    %271 = vector.shape_cast %270 : vector<1x8x128xf32> to vector<8x128xf32>
    %272 = vector.extract_strided_slice %271 {offsets = [0, 0], sizes = [1, 30], strides = [1, 1]} : vector<8x128xf32> to vector<1x30xf32>
    %273 = vector.extract_strided_slice %271 {offsets = [1, 0], sizes = [1, 30], strides = [1, 1]} : vector<8x128xf32> to vector<1x30xf32>
    %274 = vector.extract_strided_slice %271 {offsets = [2, 0], sizes = [1, 30], strides = [1, 1]} : vector<8x128xf32> to vector<1x30xf32>
    %275 = vector.extract_strided_slice %271 {offsets = [3, 0], sizes = [1, 128], strides = [1, 1]} : vector<8x128xf32> to vector<1x128xf32>
    %276 = vector.extract_strided_slice %271 {offsets = [4, 0], sizes = [1, 30], strides = [1, 1]} : vector<8x128xf32> to vector<1x30xf32>
    %277 = vector.extract_strided_slice %271 {offsets = [5, 0], sizes = [1, 30], strides = [1, 1]} : vector<8x128xf32> to vector<1x30xf32>
    %278 = vector.extract_strided_slice %271 {offsets = [6, 0], sizes = [1, 30], strides = [1, 1]} : vector<8x128xf32> to vector<1x30xf32>
    %c2_98 = arith.constant 2 : index
    %c0_99 = arith.constant 0 : index
    %c0_100 = arith.constant 0 : index
    %279 = vector.load %arg2[%c2_98, %c0_99, %c0_100] : memref<3x30x1152xf32, #tpu.memory_space<vmem>>, vector<1x30x1152xf32>
    %280 = vector.shape_cast %279 : vector<1x30x1152xf32> to vector<30x1152xf32>
    %cst_101 = arith.constant dense<0.000000e+00> : vector<8x1152xf32>
    %281 = tpu.matmul %269, %280, %cst_101 {dimension_numbers = #tpu.dot_dimension_numbers<[1], [0], [0], [1], [0, 0, 1, 1], [], []>} : vector<8x30xf32>, vector<30x1152xf32>, vector<8x1152xf32> -> vector<8x1152xf32>
    %282 = vector.shape_cast %281 : vector<8x1152xf32> to vector<1x8x1152xf32>
    %283 = vector.extract_strided_slice %282 {offsets = [0, 0, 0], sizes = [1, 8, 128], strides = [1, 1, 1]} : vector<1x8x1152xf32> to vector<1x8x128xf32>
    %284 = vector.extract_strided_slice %282 {offsets = [0, 0, 384], sizes = [1, 8, 128], strides = [1, 1, 1]} : vector<1x8x1152xf32> to vector<1x8x128xf32>
    %285 = vector.extract_strided_slice %282 {offsets = [0, 0, 768], sizes = [1, 8, 128], strides = [1, 1, 1]} : vector<1x8x1152xf32> to vector<1x8x128xf32>
    "tpu.trace_start"() <{level = 10 : i32, message = "btf,bsf->bts"}> : () -> ()
    %cst_102 = arith.constant dense<0.000000e+00> : vector<1x8x8xf32>
    %286 = tpu.matmul %283, %284, %cst_102 {dimension_numbers = #tpu.dot_dimension_numbers<[2], [2], [1], [1], [0, 0, 0, 1, 1, 1], [0], [0]>} : vector<1x8x128xf32>, vector<1x8x128xf32>, vector<1x8x8xf32> -> vector<1x8x8xf32>
    "tpu.trace_stop"() : () -> ()
    %cst_103 = arith.constant 0.182574183 : f32
    %287 = vector.broadcast %cst_103 : f32 to vector<1x8x8xf32>
    %288 = arith.mulf %286, %287 : vector<1x8x8xf32>
    %cst_104 = arith.constant 0xFF800000 : f32
    %289 = vector.broadcast %cst_104 : f32 to vector<1x8x8xf32>
    %290 = arith.select %5, %288, %289 : vector<1x8x8xi1>, vector<1x8x8xf32>
    %cst_105 = arith.constant dense<0xFF800000> : vector<1x8xf32>
    %291 = vector.multi_reduction <maximumf>, %290, %cst_105 [2] : vector<1x8x8xf32> to vector<1x8xf32>
    %292 = vector.shape_cast %291 : vector<1x8xf32> to vector<1x8x1xf32>
    %293 = vector.broadcast %292 : vector<1x8x1xf32> to vector<1x8x8xf32>
    %294 = arith.subf %290, %293 : vector<1x8x8xf32>
    %295 = math.exp %294 : vector<1x8x8xf32>
    %cst_106 = arith.constant dense<0.000000e+00> : vector<1x8xf32>
    %296 = vector.multi_reduction <add>, %295, %cst_106 [2] : vector<1x8x8xf32> to vector<1x8xf32>
    %297 = vector.shape_cast %296 : vector<1x8xf32> to vector<1x8x1xf32>
    %298 = vector.broadcast %297 : vector<1x8x1xf32> to vector<1x8x8xf32>
    %299 = arith.divf %295, %298 : vector<1x8x8xf32>
    "tpu.trace_start"() <{level = 10 : i32, message = "bts,bsf->btf"}> : () -> ()
    %cst_107 = arith.constant dense<0.000000e+00> : vector<1x8x128xf32>
    %300 = tpu.matmul %299, %285, %cst_107 {dimension_numbers = #tpu.dot_dimension_numbers<[2], [1], [1], [2], [0, 0, 0, 1, 1, 2], [0], [0]>} : vector<1x8x8xf32>, vector<1x8x128xf32>, vector<1x8x128xf32> -> vector<1x8x128xf32>
    "tpu.trace_stop"() : () -> ()
    %301 = vector.extract_strided_slice %282 {offsets = [0, 0, 128], sizes = [1, 8, 128], strides = [1, 1, 1]} : vector<1x8x1152xf32> to vector<1x8x128xf32>
    %302 = vector.extract_strided_slice %282 {offsets = [0, 0, 512], sizes = [1, 8, 128], strides = [1, 1, 1]} : vector<1x8x1152xf32> to vector<1x8x128xf32>
    %303 = vector.extract_strided_slice %282 {offsets = [0, 0, 896], sizes = [1, 8, 128], strides = [1, 1, 1]} : vector<1x8x1152xf32> to vector<1x8x128xf32>
    "tpu.trace_start"() <{level = 10 : i32, message = "btf,bsf->bts"}> : () -> ()
    %cst_108 = arith.constant dense<0.000000e+00> : vector<1x8x8xf32>
    %304 = tpu.matmul %301, %302, %cst_108 {dimension_numbers = #tpu.dot_dimension_numbers<[2], [2], [1], [1], [0, 0, 0, 1, 1, 1], [0], [0]>} : vector<1x8x128xf32>, vector<1x8x128xf32>, vector<1x8x8xf32> -> vector<1x8x8xf32>
    "tpu.trace_stop"() : () -> ()
    %cst_109 = arith.constant 0.182574183 : f32
    %305 = vector.broadcast %cst_109 : f32 to vector<1x8x8xf32>
    %306 = arith.mulf %304, %305 : vector<1x8x8xf32>
    %cst_110 = arith.constant 0xFF800000 : f32
    %307 = vector.broadcast %cst_110 : f32 to vector<1x8x8xf32>
    %308 = arith.select %5, %306, %307 : vector<1x8x8xi1>, vector<1x8x8xf32>
    %cst_111 = arith.constant dense<0xFF800000> : vector<1x8xf32>
    %309 = vector.multi_reduction <maximumf>, %308, %cst_111 [2] : vector<1x8x8xf32> to vector<1x8xf32>
    %310 = vector.shape_cast %309 : vector<1x8xf32> to vector<1x8x1xf32>
    %311 = vector.broadcast %310 : vector<1x8x1xf32> to vector<1x8x8xf32>
    %312 = arith.subf %308, %311 : vector<1x8x8xf32>
    %313 = math.exp %312 : vector<1x8x8xf32>
    %cst_112 = arith.constant dense<0.000000e+00> : vector<1x8xf32>
    %314 = vector.multi_reduction <add>, %313, %cst_112 [2] : vector<1x8x8xf32> to vector<1x8xf32>
    %315 = vector.shape_cast %314 : vector<1x8xf32> to vector<1x8x1xf32>
    %316 = vector.broadcast %315 : vector<1x8x1xf32> to vector<1x8x8xf32>
    %317 = arith.divf %313, %316 : vector<1x8x8xf32>
    "tpu.trace_start"() <{level = 10 : i32, message = "bts,bsf->btf"}> : () -> ()
    %cst_113 = arith.constant dense<0.000000e+00> : vector<1x8x128xf32>
    %318 = tpu.matmul %317, %303, %cst_113 {dimension_numbers = #tpu.dot_dimension_numbers<[2], [1], [1], [2], [0, 0, 0, 1, 1, 2], [0], [0]>} : vector<1x8x8xf32>, vector<1x8x128xf32>, vector<1x8x128xf32> -> vector<1x8x128xf32>
    "tpu.trace_stop"() : () -> ()
    %319 = vector.extract_strided_slice %282 {offsets = [0, 0, 256], sizes = [1, 8, 128], strides = [1, 1, 1]} : vector<1x8x1152xf32> to vector<1x8x128xf32>
    %320 = vector.extract_strided_slice %282 {offsets = [0, 0, 640], sizes = [1, 8, 128], strides = [1, 1, 1]} : vector<1x8x1152xf32> to vector<1x8x128xf32>
    %321 = vector.extract_strided_slice %282 {offsets = [0, 0, 1024], sizes = [1, 8, 128], strides = [1, 1, 1]} : vector<1x8x1152xf32> to vector<1x8x128xf32>
    "tpu.trace_start"() <{level = 10 : i32, message = "btf,bsf->bts"}> : () -> ()
    %cst_114 = arith.constant dense<0.000000e+00> : vector<1x8x8xf32>
    %322 = tpu.matmul %319, %320, %cst_114 {dimension_numbers = #tpu.dot_dimension_numbers<[2], [2], [1], [1], [0, 0, 0, 1, 1, 1], [0], [0]>} : vector<1x8x128xf32>, vector<1x8x128xf32>, vector<1x8x8xf32> -> vector<1x8x8xf32>
    "tpu.trace_stop"() : () -> ()
    %cst_115 = arith.constant 0.182574183 : f32
    %323 = vector.broadcast %cst_115 : f32 to vector<1x8x8xf32>
    %324 = arith.mulf %322, %323 : vector<1x8x8xf32>
    %cst_116 = arith.constant 0xFF800000 : f32
    %325 = vector.broadcast %cst_116 : f32 to vector<1x8x8xf32>
    %326 = arith.select %5, %324, %325 : vector<1x8x8xi1>, vector<1x8x8xf32>
    %cst_117 = arith.constant dense<0xFF800000> : vector<1x8xf32>
    %327 = vector.multi_reduction <maximumf>, %326, %cst_117 [2] : vector<1x8x8xf32> to vector<1x8xf32>
    %328 = vector.shape_cast %327 : vector<1x8xf32> to vector<1x8x1xf32>
    %329 = vector.broadcast %328 : vector<1x8x1xf32> to vector<1x8x8xf32>
    %330 = arith.subf %326, %329 : vector<1x8x8xf32>
    %331 = math.exp %330 : vector<1x8x8xf32>
    %cst_118 = arith.constant dense<0.000000e+00> : vector<1x8xf32>
    %332 = vector.multi_reduction <add>, %331, %cst_118 [2] : vector<1x8x8xf32> to vector<1x8xf32>
    %333 = vector.shape_cast %332 : vector<1x8xf32> to vector<1x8x1xf32>
    %334 = vector.broadcast %333 : vector<1x8x1xf32> to vector<1x8x8xf32>
    %335 = arith.divf %331, %334 : vector<1x8x8xf32>
    "tpu.trace_start"() <{level = 10 : i32, message = "bts,bsf->btf"}> : () -> ()
    %cst_119 = arith.constant dense<0.000000e+00> : vector<1x8x128xf32>
    %336 = tpu.matmul %335, %321, %cst_119 {dimension_numbers = #tpu.dot_dimension_numbers<[2], [1], [1], [2], [0, 0, 0, 1, 1, 2], [0], [0]>} : vector<1x8x8xf32>, vector<1x8x128xf32>, vector<1x8x128xf32> -> vector<1x8x128xf32>
    "tpu.trace_stop"() : () -> ()
    %337 = tpu.concatenate %300, %318, %336 in 2 : vector<1x8x128xf32>, vector<1x8x128xf32>, vector<1x8x128xf32> -> vector<1x8x384xf32>
    %338 = vector.shape_cast %337 : vector<1x8x384xf32> to vector<8x384xf32>
    %c2_120 = arith.constant 2 : index
    %c0_121 = arith.constant 0 : index
    %c0_122 = arith.constant 0 : index
    %339 = vector.load %arg3[%c2_120, %c0_121, %c0_122] : memref<3x384x30xf32, #tpu.memory_space<vmem>>, vector<1x384x30xf32>
    %340 = vector.shape_cast %339 : vector<1x384x30xf32> to vector<384x30xf32>
    %cst_123 = arith.constant dense<0.000000e+00> : vector<8x30xf32>
    %341 = tpu.matmul %338, %340, %cst_123 {dimension_numbers = #tpu.dot_dimension_numbers<[1], [0], [0], [1], [0, 0, 1, 1], [], []>} : vector<8x384xf32>, vector<384x30xf32>, vector<8x30xf32> -> vector<8x30xf32>
    %342 = vector.broadcast %272 : vector<1x30xf32> to vector<8x30xf32>
    %343 = arith.addf %341, %342 : vector<8x30xf32>
    %cst_124 = arith.constant dense<0.000000e+00> : vector<8xf32>
    %344 = vector.multi_reduction <add>, %343, %cst_124 [1] : vector<8x30xf32> to vector<8xf32>
    %345 = vector.shape_cast %344 : vector<8xf32> to vector<8x1xf32>
    %cst_125 = arith.constant 3.000000e+01 : f32
    %346 = vector.broadcast %cst_125 : f32 to vector<8x1xf32>
    %347 = arith.divf %345, %346 : vector<8x1xf32>
    %348 = vector.broadcast %347 : vector<8x1xf32> to vector<8x30xf32>
    %349 = arith.subf %343, %348 : vector<8x30xf32>
    %350 = arith.mulf %349, %349 : vector<8x30xf32>
    %cst_126 = arith.constant dense<0.000000e+00> : vector<8xf32>
    %351 = vector.multi_reduction <add>, %350, %cst_126 [1] : vector<8x30xf32> to vector<8xf32>
    %352 = vector.shape_cast %351 : vector<8xf32> to vector<8x1xf32>
    %cst_127 = arith.constant 3.000000e+01 : f32
    %353 = vector.broadcast %cst_127 : f32 to vector<8x1xf32>
    %354 = arith.divf %352, %353 : vector<8x1xf32>
    %355 = vector.broadcast %347 : vector<8x1xf32> to vector<8x30xf32>
    %356 = arith.subf %343, %355 : vector<8x30xf32>
    %cst_128 = arith.constant 9.99999974E-6 : f32
    %357 = vector.broadcast %cst_128 : f32 to vector<8x1xf32>
    %358 = arith.addf %354, %357 : vector<8x1xf32>
    %359 = math.rsqrt %358 : vector<8x1xf32>
    %360 = vector.broadcast %359 : vector<8x1xf32> to vector<8x30xf32>
    %361 = arith.mulf %356, %360 : vector<8x30xf32>
    %362 = vector.broadcast %273 : vector<1x30xf32> to vector<8x30xf32>
    %363 = arith.mulf %361, %362 : vector<8x30xf32>
    %364 = vector.broadcast %274 : vector<1x30xf32> to vector<8x30xf32>
    %365 = arith.addf %363, %364 : vector<8x30xf32>
    %366 = arith.addf %269, %365 : vector<8x30xf32>
    %c2_129 = arith.constant 2 : index
    %c0_130 = arith.constant 0 : index
    %c0_131 = arith.constant 0 : index
    %367 = vector.load %arg4[%c2_129, %c0_130, %c0_131] : memref<3x30x128xf32, #tpu.memory_space<vmem>>, vector<1x30x128xf32>
    %368 = vector.shape_cast %367 : vector<1x30x128xf32> to vector<30x128xf32>
    %cst_132 = arith.constant dense<0.000000e+00> : vector<8x128xf32>
    %369 = tpu.matmul %366, %368, %cst_132 {dimension_numbers = #tpu.dot_dimension_numbers<[1], [0], [0], [1], [0, 0, 1, 1], [], []>} : vector<8x30xf32>, vector<30x128xf32>, vector<8x128xf32> -> vector<8x128xf32>
    %370 = vector.broadcast %275 : vector<1x128xf32> to vector<8x128xf32>
    %371 = arith.addf %369, %370 : vector<8x128xf32>
    %cst_133 = arith.constant 0.000000e+00 : f32
    %372 = vector.broadcast %cst_133 : f32 to vector<8x128xf32>
    %373 = arith.maximumf %371, %372 : vector<8x128xf32>
    %c2_134 = arith.constant 2 : index
    %c0_135 = arith.constant 0 : index
    %c0_136 = arith.constant 0 : index
    %374 = vector.load %arg5[%c2_134, %c0_135, %c0_136] : memref<3x128x30xf32, #tpu.memory_space<vmem>>, vector<1x128x30xf32>
    %375 = vector.shape_cast %374 : vector<1x128x30xf32> to vector<128x30xf32>
    %cst_137 = arith.constant dense<0.000000e+00> : vector<8x30xf32>
    %376 = tpu.matmul %373, %375, %cst_137 {dimension_numbers = #tpu.dot_dimension_numbers<[1], [0], [0], [1], [0, 0, 1, 1], [], []>} : vector<8x128xf32>, vector<128x30xf32>, vector<8x30xf32> -> vector<8x30xf32>
    %377 = vector.broadcast %276 : vector<1x30xf32> to vector<8x30xf32>
    %378 = arith.addf %376, %377 : vector<8x30xf32>
    %cst_138 = arith.constant dense<0.000000e+00> : vector<8xf32>
    %379 = vector.multi_reduction <add>, %378, %cst_138 [1] : vector<8x30xf32> to vector<8xf32>
    %380 = vector.shape_cast %379 : vector<8xf32> to vector<8x1xf32>
    %cst_139 = arith.constant 3.000000e+01 : f32
    %381 = vector.broadcast %cst_139 : f32 to vector<8x1xf32>
    %382 = arith.divf %380, %381 : vector<8x1xf32>
    %383 = vector.broadcast %382 : vector<8x1xf32> to vector<8x30xf32>
    %384 = arith.subf %378, %383 : vector<8x30xf32>
    %385 = arith.mulf %384, %384 : vector<8x30xf32>
    %cst_140 = arith.constant dense<0.000000e+00> : vector<8xf32>
    %386 = vector.multi_reduction <add>, %385, %cst_140 [1] : vector<8x30xf32> to vector<8xf32>
    %387 = vector.shape_cast %386 : vector<8xf32> to vector<8x1xf32>
    %cst_141 = arith.constant 3.000000e+01 : f32
    %388 = vector.broadcast %cst_141 : f32 to vector<8x1xf32>
    %389 = arith.divf %387, %388 : vector<8x1xf32>
    %390 = vector.broadcast %382 : vector<8x1xf32> to vector<8x30xf32>
    %391 = arith.subf %378, %390 : vector<8x30xf32>
    %cst_142 = arith.constant 9.99999974E-6 : f32
    %392 = vector.broadcast %cst_142 : f32 to vector<8x1xf32>
    %393 = arith.addf %389, %392 : vector<8x1xf32>
    %394 = math.rsqrt %393 : vector<8x1xf32>
    %395 = vector.broadcast %394 : vector<8x1xf32> to vector<8x30xf32>
    %396 = arith.mulf %391, %395 : vector<8x30xf32>
    %397 = vector.broadcast %277 : vector<1x30xf32> to vector<8x30xf32>
    %398 = arith.mulf %396, %397 : vector<8x30xf32>
    %399 = vector.broadcast %278 : vector<1x30xf32> to vector<8x30xf32>
    %400 = arith.addf %398, %399 : vector<8x30xf32>
    %401 = arith.addf %366, %400 : vector<8x30xf32>
    %c0_143 = arith.constant 0 : index
    %c0_144 = arith.constant 0 : index
    %402 = vector.load %arg6[%c0_143, %c0_144] : memref<30x128xf32, #tpu.memory_space<vmem>>, vector<30x128xf32>
    %cst_145 = arith.constant dense<0.000000e+00> : vector<8x128xf32>
    %403 = tpu.matmul %401, %402, %cst_145 {dimension_numbers = #tpu.dot_dimension_numbers<[1], [0], [0], [1], [0, 0, 1, 1], [], []>} : vector<8x30xf32>, vector<30x128xf32>, vector<8x128xf32> -> vector<8x128xf32>
    %c0_146 = arith.constant 0 : index
    %c7 = arith.constant 7 : index
    %c0_147 = arith.constant 0 : index
    %404 = vector.load %arg7[%c0_146, %c7, %c0_147] : memref<3x8x128xf32, #tpu.memory_space<vmem>>, vector<1x1x128xf32>
    %405 = vector.shape_cast %404 : vector<1x1x128xf32> to vector<1x128xf32>
    %406 = vector.broadcast %405 : vector<1x128xf32> to vector<8x128xf32>
    %407 = arith.addf %403, %406 : vector<8x128xf32>
    %408 = vector.shape_cast %407 : vector<8x128xf32> to vector<1x8x128xf32>
    %c0_148 = arith.constant 0 : index
    %c0_149 = arith.constant 0 : index
    %c0_150 = arith.constant 0 : index
    %409 = vector.load %arg8[%c0_148, %c0_149, %c0_150] : memref<1x8x128xf32, #tpu.memory_space<vmem>>, vector<1x8x128xf32>
    tpu.vector_store %arg8[%c0_148, %c0_149, %c0_150], %408 {strides = array<i32>} : memref<1x8x128xf32, #tpu.memory_space<vmem>>, vector<1x8x128xf32>,
    return
  }
  func.func @transform_0(%arg0: i32) -> (i32, i32, i32) {
    %c0_i32 = arith.constant 0 : i32
    %c0_i32_0 = arith.constant 0 : i32
    %c0_i32_1 = arith.constant 0 : i32
    return %arg0, %c0_i32, %c0_i32_0 : i32, i32, i32
  }
  func.func @transform_1(%arg0: i32) -> (i32, i32, i32) {
    %c0_i32 = arith.constant 0 : i32
    %c0_i32_0 = arith.constant 0 : i32
    %c0_i32_1 = arith.constant 0 : i32
    %c0_i32_2 = arith.constant 0 : i32
    return %c0_i32, %c0_i32_0, %c0_i32_1 : i32, i32, i32
  }
  func.func @transform_2(%arg0: i32) -> (i32, i32, i32) {
    %c0_i32 = arith.constant 0 : i32
    %c0_i32_0 = arith.constant 0 : i32
    %c0_i32_1 = arith.constant 0 : i32
    %c0_i32_2 = arith.constant 0 : i32
    return %c0_i32, %c0_i32_0, %c0_i32_1 : i32, i32, i32
  }
  func.func @transform_3(%arg0: i32) -> (i32, i32, i32) {
    %c0_i32 = arith.constant 0 : i32
    %c0_i32_0 = arith.constant 0 : i32
    %c0_i32_1 = arith.constant 0 : i32
    %c0_i32_2 = arith.constant 0 : i32
    return %c0_i32, %c0_i32_0, %c0_i32_1 : i32, i32, i32
  }
  func.func @transform_4(%arg0: i32) -> (i32, i32, i32) {
    %c0_i32 = arith.constant 0 : i32
    %c0_i32_0 = arith.constant 0 : i32
    %c0_i32_1 = arith.constant 0 : i32
    %c0_i32_2 = arith.constant 0 : i32
    return %c0_i32, %c0_i32_0, %c0_i32_1 : i32, i32, i32
  }
  func.func @transform_5(%arg0: i32) -> (i32, i32) {
    %c0_i32 = arith.constant 0 : i32
    %c0_i32_0 = arith.constant 0 : i32
    %c0_i32_1 = arith.constant 0 : i32
    return %c0_i32, %c0_i32_0 : i32, i32
  }
  func.func @transform_6(%arg0: i32) -> (i32, i32, i32) {
    %c0_i32 = arith.constant 0 : i32
    %c0_i32_0 = arith.constant 0 : i32
    %c0_i32_1 = arith.constant 0 : i32
    %c0_i32_2 = arith.constant 0 : i32
    return %c0_i32, %c0_i32_0, %c0_i32_1 : i32, i32, i32
  }
  func.func @transform_7(%arg0: i32) -> (i32, i32, i32) {
    %c0_i32 = arith.constant 0 : i32
    %c0_i32_0 = arith.constant 0 : i32
    %c0_i32_1 = arith.constant 0 : i32
    return %arg0, %c0_i32, %c0_i32_0 : i32, i32, i32
  }
}

</mosaic_0001>

<bundles_post_ra>
// kernel: tpu_custom_call.1
= control target key start
LH: loop header
LB: loop body
LE: loop exit
PB: predicated region body
PF: predicated region fallthrough
CT: control target
= control target key end

     0   :  { %12 = vsyncpa [#allocation3], 0  ;;  %s7427_s0 = inlined_call_operand.vmem [shape: f32[2,8,30], index: 0, kind: input, shape index: {}]   ;;  %s7428_s1 = inlined_call_operand.vmem [shape: f32[3,30,1152], index: 1, kind: input, shape index: {}]   ;;  %s7429_s2 = inlined_call_operand.vmem [shape: f32[3,384,30], index: 2, kind: input, shape index: {}]   ;;  %s7430_s3 = inlined_call_operand.vmem [shape: f32[3,30,128], index: 3, kind: input, shape index: {}]   ;;  %s7431_s4 = inlined_call_operand.vmem [shape: f32[3,128,30], index: 4, kind: input, shape index: {}]   ;;  %s7432_s5 = inlined_call_operand.vmem [shape: f32[30,128], index: 5, kind: input, shape index: {}]   ;;  %s7433_s6 = inlined_call_operand.vmem [shape: f32[3,8,128], index: 6, kind: input, shape index: {}]   ;;  %s7434_s7 = inlined_call_operand.hbm [shape: f32[2,8,128], index: 7, kind: output, shape index: {}]  }
   0x1   :  { %14 = vsyncpa [#allocation3 + $0x1], 0  ;;  %s5909_s24 = smov 0   ;;  %s5911_s25 = smov 0  }
   0x2   :  { %s5913_s26 = smov 0   ;;  %s5915_s27 = smov 0  }
   0x3 LB: > { %s5930_s28 = sadd.s32 4294967295, %s5862_s27   ;;  %s4365_s29 = sadd.s32 4294967294, %s5862_s27   ;;  %s5862_s27 = sphi %s5915_s27, %s7444_s27   ;;  %s5858_s26 = sphi %s5913_s26, %s7443_s26   ;;  %s5854_s25 = sphi %s5911_s25, %s7442_s25   ;;  %s5850_s24 = sphi %s5909_s24, %s7441_s24  }
   0x4   : > { %s5934_s30 = sadd.s32 1, %s5862_s27   ;;  %s179_s8 = sadd.s32 1, %s5858_s26 }
   0x5   : > { %s176_s9 = ssub.s32 %s5862_s27, %s5934_s30  ;;  %p189_p0 = scmp.ne.s32.totalorder %s5858_s26, %s5854_s25 }
   0x6   : > { %p177_p1 = scmp.eq.s32.totalorder %s176_s9, 0  ;;  %p190_p2 = scmp.eq.s32.totalorder %s5930_s28, 1 }
   0x7   : > { %p195_p3 = scmp.ne.s32.totalorder %s5854_s25, %s5850_s24  ;;  %p196_p4 = scmp.eq.s32.totalorder %s4365_s29, 1 }
   0x8   : > { %s5945_s10 = scalar_select %p177_p1, %s5858_s26, %s179_s8  }
   0x9   : > { %p5947_p5 = por %p190_p2, %p189_p0  ;;  %p5951_p6 = por %p196_p4, %p195_p3 }
   0xa   : > { %p4368_p7 = scmp.ge.s32.totalorder %s5862_s27, 1  ;;  %p239_p8 = scmp.lt.s32.totalorder %s5862_s27, 3 }
   0xc   : > { %p240_p9 = pnand %p4368_p7, %p239_p8 }
   0xd   : > { %v282_v0 = vld [vmem:[%s7428_s1 + $0x8] sm:$0xff] (!%p240_p9)  ;;  %v291_v1 = vld [vmem:[%s7428_s1 + $0x50] sm:$0xff] (!%p240_p9)  ;;  %v281_v2 = vld [vmem:[%s7428_s1] sm:$0xff] (!%p240_p9)  ;;  %vm321_vm0 = vcmask (!%p240_p9), 1045504   ;;  %v5864_v7 = vmov (!%p240_p9), 0.0   ;;  %p270_p10 = scmp.lt.s32.totalorder (!%p240_p9), %s5930_s28, 1 }
   0xe   : > { %243 = sbr.rel (%p240_p9) target bundleno = 7010 (0x1b62), region = 48  ;;  %v5300_v3 = vpack.c.bf16 (!%p240_p9), %v291_v1, %v282_v0  ;;  %v290_v4 = vld [vmem:[%s7428_s1 + $0x48] sm:$0xff] (!%p240_p9)  ;;  %v300_v5 = vld [vmem:[%s7428_s1 + $0x98] sm:$0xff] (!%p240_p9)  ;;  %v309_v6 = vld [vmem:[%s7428_s1 + $0xe0] sm:$0x3f] (!%p240_p9)  ;;  %413 = vmatprep.mubr.f32.mxu0 (!%p240_p9), %v5864_v7  ;;  %626 = vmatprep.mubr.f32.mxu1 (!%p240_p9), %v5864_v7  ;;  %vm5865_vm1 = vmmov (!%p240_p9), 1  }
   0xf   : > { %v5302_v8 = vpack.c.bf16 (!%p240_p9), %v290_v4, %v281_v2  ;;  %v5304_v9 = vpack.c.bf16 (!%p240_p9), %v309_v6, %v300_v5  ;;  %vm5978_vm2 = vmpackc.low (!%p240_p9), %vm321_vm0, %vm5865_vm1  ;;  %v299_v11 = vld [vmem:[%s7428_s1 + $0x90] sm:$0xff] (!%p240_p9)  ;;  %v308_v12 = vld [vmem:[%s7428_s1 + $0xd8] sm:$0x3f] (!%p240_p9)  ;;  %vm317_vm3 = vcmask (!%p240_p9), 244736   ;;  %v5866_v53 = vmov (!%p240_p9), 0.0|0.0   ;;  %s267_s9 = sand.u32 (!%p240_p9), 1, %s5854_s25  }
  0x10   : > { %5301 = vmatprep.subr.bf16.mxu0 (!%p240_p9), %v5300_v3  ;;  %v284_v13 = vld [vmem:[%s7428_s1 + $0x18] sm:$0xff] (!%p240_p9)  ;;  %v293_v14 = vld [vmem:[%s7428_s1 + $0x60] sm:$0xff] (!%p240_p9)  ;;  %v5307_v15 = vpack.c.bf16 (!%p240_p9), %v308_v12, %v299_v11  ;;  %v283_v17 = vld [vmem:[%s7428_s1 + $0x10] sm:$0xff] (!%p240_p9)  ;;  %vm5867_vm4 = vmmov (!%p240_p9), 0   ;;  %v275_v4 = vlaneseq (!%p240_p9)  ;;  %vm775_vm6 = vcmask (!%p240_p9), 64512   ;;  %s4369_s14 = sshll.u32 (!%p240_p9), %s267_s9, 3 }
  0x11   : > { %5303 = vmatpush1.bf16.msra.mxu0 (!%p240_p9), %v5302_v8  ;;  %v5310_v16 = vpack.c.bf16 (!%p240_p9), %v293_v14, %v284_v13  ;;  %v292_v18 = vld [vmem:[%s7428_s1 + $0x58] sm:$0xff] (!%p240_p9)  ;;  %v302_v19 = vld [vmem:[%s7428_s1 + $0xa8] sm:$0xff] (!%p240_p9)  ;;  %v311_v20 = vld [vmem:[%s7428_s1 + $0xf0] sm:$0x3f] (!%p240_p9)  ;;  %s4642_s17 = sshll.u32 (!%p240_p9), %s5930_s28, 7  ;;  %s269_s18 = scalar_lea.vmem (!%p240_p9), [#allocation2], %s4369_s14 }
  0x12   : > { %5306 = vmatprep.subr.msk.bf16.mxu0 (!%p240_p9), %vm5978_vm2, %v5304_v9  ;;  %v301_v21 = vld [vmem:[%s7428_s1 + $0xa0] sm:$0xff] (!%p240_p9)  ;;  %v5312_v23 = vpack.c.bf16 (!%p240_p9), %v292_v18, %v283_v17  ;;  %v310_v24 = vld [vmem:[%s7428_s1 + $0xe8] sm:$0x3f] (!%p240_p9)  ;;  %v288_v25 = vld [vmem:[%s7428_s1 + $0x38] sm:$0xff] (!%p240_p9)  ;;  %v5314_v26 = vpack.c.bf16 (!%p240_p9), %v311_v20, %v302_v19  ;;  %v6129_v5 = vshrl.u32 (!%p240_p9), %v275_v4, 7  ;;  %v278_v6 = vand.u32 (!%p240_p9), 127, %v275_v4  ;;  %s7385_s21 = scalar_lea.hbm (!%p240_p9), %s7434_s7, %s4642_s17 }
  0x13   : > { %v297_v27 = vld [vmem:[%s7428_s1 + $0x80] sm:$0xff] (!%p240_p9)  ;;  %v287_v28 = vld [vmem:[%s7428_s1 + $0x30] sm:$0xff] (!%p240_p9)  ;;  %v296_v29 = vld [vmem:[%s7428_s1 + $0x78] sm:$0xff] (!%p240_p9)  ;;  %v5317_v34 = vpack.c.bf16 (!%p240_p9), %v310_v24, %v301_v21  ;;  %s4293_s22 = scalar_lea.sflag (!%p240_p9), [#allocation3], %s267_s9 }
  0x14   : > { %v286_v30 = vld [vmem:[%s7428_s1 + $0x28] sm:$0xff] (!%p240_p9)  ;;  %v295_v31 = vld [vmem:[%s7428_s1 + $0x70] sm:$0xff] (!%p240_p9)  ;;  %v5330_v32 = vpack.c.bf16 (!%p240_p9), %v297_v27, %v288_v25  ;;  %v5332_v33 = vpack.c.bf16 (!%p240_p9), %v296_v29, %v287_v28  ;;  %v285_v36 = vld [vmem:[%s7428_s1 + $0x20] sm:$0xff] (!%p240_p9)  ;;  %vm6132_vm5 = vcmp.le.s32.totalorder (!%p240_p9), %v278_v6, %v6129_v5 }
  0x15   : > { %s271_s15 = scalar_select %p270_p10, %s5930_s28, 1  ;;  %5309 = vmatpush1.bf16.msk.msra.mxu0 %vm5978_vm2, %v5307_v15  ;;  %v5320_v35 = vpack.c.bf16 %v295_v31, %v286_v30  ;;  %v294_v37 = vld [vmem:[%s7428_s1 + $0x68] sm:$0xff]  ;;  %v304_v38 = vld [vmem:[%s7428_s1 + $0xb8] sm:$0xff]  ;;  %v313_v39 = vld [vmem:[%s7428_s1 + $0x100] sm:$0x3f] }
  0x16   : > { %5311 = vmatprep.subr.bf16.mxu0 %v5310_v16  ;;  %5331 = vmatprep.subr.bf16.mxu1 %v5330_v32  ;;  %v5322_v40 = vpack.c.bf16 %v294_v37, %v285_v36  ;;  %v5324_v41 = vpack.c.bf16 %v313_v39, %v304_v38  ;;  %v303_v42 = vld [vmem:[%s7428_s1 + $0xb0] sm:$0xff]  ;;  %v312_v43 = vld [vmem:[%s7428_s1 + $0xf8] sm:$0x3f]  ;;  %v306_v45 = vld [vmem:[%s7428_s1 + $0xc8] sm:$0xff]  ;;  %s5868_s28 = smov [#allocation2]  }
  0x17   : > { %s4370_s20 = sshll.u32 %s271_s15, 3  ;;  %5333 = vmatpush1.bf16.msra.mxu1 %v5332_v33  ;;  %v5327_v44 = vpack.c.bf16 %v312_v43, %v303_v42  ;;  %v315_v46 = vld [vmem:[%s7428_s1 + $0x110] sm:$0x3f]  ;;  %v305_v48 = vld [vmem:[%s7428_s1 + $0xc0] sm:$0xff]  ;;  %v314_v49 = vld [vmem:[%s7428_s1 + $0x108] sm:$0x3f] }
  0x18   : > { %s273_s13 = scalar_lea.vmem %s7427_s0, %s4370_s20  ;;  %v5334_v47 = vpack.c.bf16 %v315_v46, %v306_v45  ;;  %v5337_v50 = vpack.c.bf16 %v314_v49, %v305_v48  ;;  %v289_v51 = vld [vmem:[%s7428_s1 + $0x40] sm:$0xff]  ;;  %v298_v52 = vld [vmem:[%s7428_s1 + $0x88] sm:$0xff]  ;;  %v307_v55 = vld [vmem:[%s7428_s1 + $0xd0] sm:$0xff]  ;;  %s4306_s15 = sshll.u32 %s269_s18, 4  ;;  %s7387_s15 = int_to_ptr.vmem [resolvable:$true] %s4306_s15 }
  0x19   : > { %v6017_v22 = vld [vmem:[%s273_s13] sm:$0xff]  ;;  %v5341_v54 = vpack.c.bf16 %v298_v52, %v289_v51  ;;  %v316_v56 = vld [vmem:[%s7428_s1 + $0x118] sm:$0x3f]  ;;  %v1189_v42 = vld [vmem:[%s7429_s2 + $0x88] sm:$0xff]  ;;  %s5800_s23 = scalar_lea.vmem %s7387_s15, 128  ;;  %s5804_s29 = sshll.u32 %s5868_s28, 4  ;;  %s5805_s29 = int_to_ptr.vmem [resolvable:$false] %s5804_s29 }
  0x1a   : > { %4373 = vmatmul.mubr.msk.f32.vlgmr.msra.gmra.mrb[0].mxu0 %vm317_vm3, %v6017_v22  ;;  %5336 = vmatprep.subr.msk.bf16.mxu1 %vm5978_vm2, %v5334_v47  ;;  %v5344_v57 = vpack.c.bf16 %v316_v56, %v307_v55  ;;  %v1172_v43 = vld [vmem:[%s7429_s2] sm:$0xff]  ;;  %v1173_v45 = vld [vmem:[%s7429_s2 + $0x8] sm:$0xff]  ;;  %v1190_v46 = vld [vmem:[%s7429_s2 + $0x90] sm:$0xff]  ;;  %p5801_p11 = scmp.ne.s32.totalorder %s7387_s15, %s5800_s23  ;;  %s5806_s8 = scalar_lea.vmem %s5805_s29, 256 }
  0x1b   : > { %5313 = vmatpush1.bf16.msra.mxu0 %v5312_v23  ;;  %484 = vmatprep.mubr.f32.mxu0 %v5864_v7  ;;  %v1191_v47 = vld [vmem:[%s7429_s2 + $0x98] sm:$0xff]  ;;  %v5349_v48 = vpack.c.bf16 %v1173_v45, %v1172_v43  ;;  %v1192_v52 = vld [vmem:[%s7429_s2 + $0xa0] sm:$0xff]  ;;  %v1197_v4 = vld [vmem:[%s7429_s2 + $0xc8] sm:$0xff]  ;;  %p5807_p0 = scmp.lt.s32.totalorder %s7387_s15, %s5805_s29  ;;  %p5808_p1 = scmp.lt.s32.totalorder %s5806_s8, %s5800_s23 }
  0x1c   : > { %5316 = vmatprep.subr.msk.bf16.mxu0 %vm5978_vm2, %v5314_v26  ;;  %5339 = vmatpush1.bf16.msk.msra.mxu1 %vm5978_vm2, %v5337_v50  ;;  %v5351_v49 = vpack.c.bf16 %v1191_v47, %v1190_v46  ;;  %v1174_v50 = vld [vmem:[%s7429_s2 + $0x10] sm:$0xff]  ;;  %v1175_v51 = vld [vmem:[%s7429_s2 + $0x18] sm:$0xff]  ;;  %v1200_v43 = vld [vmem:[%s7429_s2 + $0xe0] sm:$0xff]  ;;  %p5802_p12 = pnand %p5801_p11, %p5947_p5 }
  0x1d   : > { %4934 = vmatprep.subr.mxu1 %v5864_v7  ;;  %v5353_v55 = vpack.c.bf16 %v1175_v51, %v1174_v50  ;;  %v1214_v45 = vld [vmem:[%s7429_s2 + $0x150] sm:$0xff]  ;;  %v1215_v47 = vld [vmem:[%s7429_s2 + $0x158] sm:$0xff]  ;;  %v4638_v10 = vld [vmem:[%s7433_s6 + $0x7] ss:$0 sm:$0xff]  ;;  %p5809_p2 = por %p5808_p1, %p5807_p0 }
  0x1e   : > { %v5395_v50 = vpack.c.bf16 %v1215_v47, %v1214_v45  ;;  %v1483_v47 = vld [vmem:[%s7431_s4 + $0x48] sm:$0xff]  ;;  %p5803_p13 = pneg %p5802_p12 }
  0x1f   : > { %5319 = vmatpush1.bf16.msk.msra.mxu0 %vm5978_vm2, %v5317_v34  ;;  %4382 = vmatmul.mubr.msk.f32.vlgmr.msra.gmra.mrb[0].mxu1 %vm317_vm3, %v6017_v22 }
  0x20   : > { %5321 = vmatprep.subr.bf16.mxu0 %v5320_v35  ;;  %4936 = vmatprep.mubr.msk.f32.mxu1 %vm5867_vm4, %v5864_v7  ;;  %p5810_p3 = pnand %p5809_p2, %p5803_p13 }
  0x22   : > { %4376 = vmatmul.mubr.msk.f32.vlgmr.msra.gmra.mrb[2].mxu0 %vm317_vm3, %v6017_v22 }
  0x23   : > { %5323 = vmatpush1.bf16.msra.mxu0 %v5322_v40  ;;  %555 = vmatprep.mubr.f32.mxu0 %v5864_v7 }
  0x24   : > { %5326 = vmatprep.subr.msk.bf16.mxu0 %vm5978_vm2, %v5324_v41  ;;  %v1188_v41 = vld [vmem:[%s7429_s2 + $0x80] sm:$0xff] }
  0x27   : > { %5329 = vmatpush1.bf16.msk.msra.mxu0 %vm5978_vm2, %v5327_v44  ;;  %v5347_v44 = vpack.c.bf16 %v1189_v42, %v1188_v41  ;;  %v1213_v41 = vld [vmem:[%s7429_s2 + $0x148] sm:$0xff] }
  0x28   : > { %5340 = vmatprep.subr.bf16.mxu0 %v5866_v53 }
  0x2a   : > { %4379 = vmatmul.mubr.msk.f32.vlgmr.msra.gmra.mrb[4].mxu0 %vm317_vm3, %v6017_v22 }
  0x2b   : > { %5342 = vmatpush3.bf16.msra.mxu0 %v5341_v54  ;;  %4931 = vmatprep.mubr.msk.f32.mxu0 %vm5867_vm4, %v5864_v7  ;;  %v1193_v54 = vld [vmem:[%s7429_s2 + $0xa8] sm:$0xff] }
  0x2c   : > { %5343 = vmatprep.subr.bf16.mxu0 %v5866_v53  ;;  %v5355_v56 = vpack.c.bf16 %v1193_v54, %v1192_v52  ;;  %v1202_v52 = vld [vmem:[%s7429_s2 + $0xf0] sm:$0xff]  ;;  %v1203_v54 = vld [vmem:[%s7429_s2 + $0xf8] sm:$0xff] }
  0x2f   : > { %5346 = vmatpush3.bf16.msk.msra.mxu0 %vm5978_vm2, %v5344_v57  ;;  %v1176_v57 = vld [vmem:[%s7429_s2 + $0x20] sm:$0xff] }
  0x30   : > { %4944 = vmatprep.subr.mxu0 %v5864_v7 }
  0x32   : > { %4932 = vmatmul.mubr.msk.f32.vlgmr.msra.gmra.mrb[6].mxu0 %vm317_vm3, %v6017_v22 }
  0x33   : > { %4946 = vmatprep.mubr.msk.f32.mxu0 %vm5867_vm4, %v5864_v7 }
  0xed   : > { %v415_v58 = vpop.f32.mrb[0].mxu0 }
  0xee   : > { %v417_v59 = vpop.f32.mrb[1].mxu0 }
  0xf2   : > { %v628_v0 = vpop.f32.mrb[0].mxu1 }
  0xf3   : > { %v6124_v1 = vpop.f32.mrb[1].mxu1 }
  0xf5   : > { %v486_v60 = vpop.f32.mrb[2].mxu0 }
  0xf6   : > { %v488_v61 = vpop.f32.mrb[3].mxu0 }
  0xf7   : > { %4935 = vmatpush3.xpose.msra.mxu1 %v488_v61 }
  0xf8   : > { %4939 = vmatprep.subr.mxu1 %v5864_v7 }
  0xfa   : > { %4937 = vmatmul.mubr.f32.vlgmr.msra.gmra.mrb[2].mxu1 %v415_v58  ;;  %v1177_v58 = vld [vmem:[%s7429_s2 + $0x28] sm:$0xff] }
  0xfb   : > { %4941 = vmatprep.mubr.msk.f32.mxu1 %vm5867_vm4, %v5864_v7  ;;  %4940 = vmatpush3.msra.mxu1 %v628_v0  ;;  %v5357_v61 = vpack.c.bf16 %v1177_v58, %v1176_v57  ;;  %v1179_v0 = vld [vmem:[%s7429_s2 + $0x38] sm:$0xff]  ;;  %v1217_v57 = vld [vmem:[%s7429_s2 + $0x168] sm:$0xff]  ;;  %v1186_v58 = vld [vmem:[%s7429_s2 + $0x70] sm:$0xff] }
  0xfc   : > { %4949 = vmatprep.subr.mxu1 %v5864_v7 }
  0xfd   : > { %v557_v62 = vpop.f32.mrb[4].mxu0 }
  0xfe   : > { %v559_v63 = vpop.f32.mrb[5].mxu0  ;;  %4945 = vmatpush3.xpose.msra.mxu0 %v557_v62 }
  0xff   : > { %4954 = vmatprep.subr.mxu0 %v5864_v7 }
 0x101   : > { %4947 = vmatmul.mubr.f32.vlgmr.msra.gmra.mrb[8].mxu0 %v417_v59  ;;  %v1194_v59 = vld [vmem:[%s7429_s2 + $0xb0] sm:$0xff] }
 0x102   : > { %4955 = vmatpush3.xpose.msra.mxu0 %v559_v63  ;;  %4956 = vmatprep.mubr.msk.f32.mxu0 %vm5867_vm4, %v5864_v7  ;;  %v1178_v63 = vld [vmem:[%s7429_s2 + $0x30] sm:$0xff] }
 0x103   : > { %5348 = vmatprep.subr.bf16.mxu0 %v5347_v44  ;;  %v5361_v6 = vpack.c.bf16 %v1179_v0, %v1178_v63  ;;  %v1201_v44 = vld [vmem:[%s7429_s2 + $0xe8] sm:$0xff]  ;;  %v1219_v63 = vld [vmem:[%s7429_s2 + $0x178] sm:$0xff] }
 0x104   : > { %v5371_v46 = vpack.c.bf16 %v1201_v44, %v1200_v43  ;;  %v1480_v43 = vld [vmem:[%s7431_s4 + $0x30] sm:$0xff]  ;;  %v1481_v44 = vld [vmem:[%s7431_s4 + $0x38] sm:$0xff] }
 0x105   : > { %4957 = vmatmul.mubr.f32.vlgmr.msra.gmra.mrb[10].mxu0 %v486_v60  ;;  %v6127_v2 = vpop.f32.mrb[6].mxu0  ;;  %v1195_v60 = vld [vmem:[%s7429_s2 + $0xb8] sm:$0xff]  ;;  %v5420_v45 = vpack.c.bf16 %v1481_v44, %v1480_v43 }
 0x106   : > { %v4933_v3 = vpop.f32.mrb[7].mxu0  ;;  %5350 = vmatpush3.bf16.msra.mxu0 %v5349_v48  ;;  %v5359_v62 = vpack.c.bf16 %v1195_v60, %v1194_v59  ;;  %v1184_v48 = vld [vmem:[%s7429_s2 + $0x60] sm:$0xff]  ;;  %v1187_v59 = vld [vmem:[%s7429_s2 + $0x78] sm:$0xff] }
 0x107   : > { %5352 = vmatprep.subr.bf16.mxu0 %v5351_v49  ;;  %v1196_v3 = vld [vmem:[%s7429_s2 + $0xc0] sm:$0xff]  ;;  %v1185_v49 = vld [vmem:[%s7429_s2 + $0x68] sm:$0xff]  ;;  %v4418_v43 = vld [vmem:[%s7428_s1 + $0x1f8] sm:$0x3f] }
 0x108   : > { %v5373_v51 = vpack.c.bf16 %v1185_v49, %v1184_v48  ;;  %v1484_v49 = vld [vmem:[%s7431_s4 + $0x50] sm:$0xff] }
 0x10a   : > { %5354 = vmatpush3.bf16.msra.mxu0 %v5353_v55  ;;  %v1216_v55 = vld [vmem:[%s7429_s2 + $0x160] sm:$0xff] }
 0x10b   : > { %5356 = vmatprep.subr.bf16.mxu0 %v5355_v56  ;;  %v5375_v56 = vpack.c.bf16 %v1203_v54, %v1202_v52  ;;  %v5398_v60 = vpack.c.bf16 %v1217_v57, %v1216_v55  ;;  %v1486_v52 = vld [vmem:[%s7431_s4 + $0x60] sm:$0xff]  ;;  %v1487_v54 = vld [vmem:[%s7431_s4 + $0x68] sm:$0xff] }
 0x10c   : > { %v5429_v55 = vpack.c.bf16 %v1487_v54, %v1486_v52 }
 0x10e   : > { %5358 = vmatpush3.bf16.msra.mxu0 %v5357_v61  ;;  %v5377_v61 = vpack.c.bf16 %v1187_v59, %v1186_v58  ;;  %v6407_v59 = vsub.s32 1, %v6129_v5 }
 0x10f   : > { %5360 = vmatprep.subr.bf16.mxu0 %v5359_v62  ;;  %v1218_v62 = vld [vmem:[%s7429_s2 + $0x170] sm:$0xff] }
 0x110   : > { %v5401_v0 = vpack.c.bf16 %v1219_v63, %v1218_v62 }
 0x112   : > { %5362 = vmatpush3.bf16.msra.mxu0 %v5361_v6 }
 0x1cd   : > { %v769_v8 = vpop.f32.mrb[2].mxu1 }
 0x1ce   : > { %v773_v11 = vmul.f32 0.18257418, %v769_v8  ;;  %v4938_v12 = vpop.f32.mrb[3].mxu1  ;;  %v5363_v8 = vpack.c.bf16 %v1197_v4, %v1196_v3 }
 0x1cf   : > { %v1181_v12 = vld [vmem:[%s7429_s2 + $0x48] sm:$0xff] }
 0x1d0   : > { %v774_v13 = vsel %vm6132_vm5, %v773_v11, -inf  ;;  %v1180_v11 = vld [vmem:[%s7429_s2 + $0x40] sm:$0xff]  ;;  %5364 = vmatprep.subr.bf16.mxu0 %v5363_v8 }
 0x1d1   : > { %v776_v14 = vsel %vm775_vm6, %v774_v13, -inf }
 0x1d2   : > { %777 = vmax.xlane.f32.xlu0 %v776_v14  ;;  %v1199_v14 = vld [vmem:[%s7429_s2 + $0xd8] sm:$0xff] }
 0x1d4   : > { %v926_v15 = vpop.f32.mrb[8].mxu0 }
 0x1d5   : > { %v930_v16 = vmul.f32 0.18257418, %v926_v15  ;;  %v4948_v17 = vpop.f32.mrb[9].mxu0  ;;  %v5365_v15 = vpack.c.bf16 %v1181_v12, %v1180_v11 }
 0x1d6   : > { %v1182_v17 = vld [vmem:[%s7429_s2 + $0x50] sm:$0xff] }
 0x1d7   : > { %v931_v18 = vsel %vm6132_vm5, %v930_v16, -inf  ;;  %5366 = vmatpush3.bf16.msra.mxu0 %v5365_v15 }
 0x1d8   : > { %v1082_v19 = vpop.f32.mrb[10].mxu0  ;;  %v932_v20 = vsel %vm775_vm6, %v931_v18, -inf }
 0x1d9   : > { %v1086_v21 = vmul.f32 0.18257418, %v1082_v19  ;;  %933 = vmax.xlane.f32.xlu0 %v932_v20  ;;  %v4958_v23 = vpop.f32.mrb[11].mxu0 }
 0x1db   : > { %v1087_v24 = vsel %vm6132_vm5, %v1086_v21, -inf }
 0x1dc   : > { %v1088_v25 = vsel %vm775_vm6, %v1087_v24, -inf }
 0x1dd   : > { %1089 = vmax.xlane.f32.xlu1 %v1088_v25 }
 0x25f   : > { %v778_v26 = vpop.xlane.xlu0 %777 }
 0x260   : > { %v779_v27 = vsub.f32 %v774_v13, %v778_v26  ;;  %v1198_v13 = vld [vmem:[%s7429_s2 + $0xd0] sm:$0xff] }
 0x261   : > { %v5367_v16 = vpack.c.bf16 %v1199_v14, %v1198_v13  ;;  %v6331_v13 = vsub.s32 0, %v6129_v5  ;;  %v6336_v14 = vld [vmem:[%s7433_s6] sm:$0xff] }
 0x262   : > { %v780_v28 = vmul.f32 1.442695, %v779_v27 }
 0x263   : > { %5368 = vmatprep.subr.bf16.mxu0 %v5367_v16  ;;  %v1223_v16 = vrot.slane %v6336_v14, %v6331_v13 }
 0x264   : > { %5752 = vpow2.f32 %v780_v28  ;;  %v1204_v28 = vld [vmem:[%s7429_s2 + $0x100] sm:$0xff] }
 0x266   : > { %v934_v29 = vpop.xlane.xlu0 %933 }
 0x267   : > { %v935_v30 = vsub.f32 %v931_v18, %v934_v29  ;;  %v1183_v18 = vld [vmem:[%s7429_s2 + $0x58] sm:$0xff]  ;;  %v1205_v29 = vld [vmem:[%s7429_s2 + $0x108] sm:$0xff] }
 0x268   : > { %v5369_v19 = vpack.c.bf16 %v1183_v18, %v1182_v17 }
 0x269   : > { %v936_v31 = vmul.f32 1.442695, %v935_v30 }
 0x26a   : > { %v1090_v32 = vpop.xlane.xlu1 %1089  ;;  %5370 = vmatpush3.bf16.msra.mxu0 %v5369_v19 }
 0x26b   : > { %5754 = vpow2.f32 %v936_v31  ;;  %v1091_v33 = vsub.f32 %v1087_v24, %v1090_v32  ;;  %v1206_v32 = vld [vmem:[%s7429_s2 + $0x110] sm:$0xff]  ;;  %5372 = vmatprep.subr.bf16.mxu0 %v5371_v46  ;;  %v1482_v46 = vld [vmem:[%s7431_s4 + $0x40] sm:$0xff] }
 0x26c   : > { %v5423_v48 = vpack.c.bf16 %v1483_v47, %v1482_v46  ;;  %v4426_v46 = vld [vmem:[%s7428_s1 + $0x238] sm:$0x3f] }
 0x26d   : > { %v1092_v34 = vmul.f32 1.442695, %v1091_v33  ;;  %v1207_v33 = vld [vmem:[%s7429_s2 + $0x118] sm:$0xff] }
 0x26e   : > { %v6145_v35 = vpop.eup %5752  ;;  %5374 = vmatpush3.bf16.msra.mxu0 %v5373_v51 }
 0x26f   : > { %5756 = vpow2.f32 %v1092_v34  ;;  %v782_v36 = vsel %vm775_vm6, %v6145_v35, 0.0  ;;  %v1208_v34 = vld [vmem:[%s7429_s2 + $0x120] sm:$0xff]  ;;  %5376 = vmatprep.subr.bf16.mxu0 %v5375_v56 }
 0x270   : > { %783 = vadd.xlane.f32.xlu1 %v782_v36 }
 0x272   : > { %5378 = vmatpush3.bf16.msra.mxu0 %v5377_v61  ;;  %v1381_v61 = vrot.slane %v6336_v14, %v6407_v59 }
 0x273   : > { %5403 = vmatprep.subr.bf16.mxu0 %v5866_v53 }
 0x275   : > { %v6149_v37 = vpop.eup %5754 }
 0x276   : > { %v938_v38 = vsel %vm775_vm6, %v6149_v37, 0.0 }
 0x277   : > { %939 = vadd.xlane.f32.xlu0 %v938_v38  ;;  %v1211_v38 = vld [vmem:[%s7429_s2 + $0x138] sm:$0xff] }
 0x279   : > { %v6153_v39 = vpop.eup %5756 }
 0x27a   : > { %v1094_v40 = vsel %vm775_vm6, %v6153_v39, 0.0 }
 0x27b   : > { %1095 = vadd.xlane.f32.xlu1 %v1094_v40  ;;  %v1212_v40 = vld [vmem:[%s7429_s2 + $0x140] sm:$0xff] }
 0x27c   : > { %v5392_v42 = vpack.c.bf16 %v1213_v41, %v1212_v40  ;;  %v1478_v40 = vld [vmem:[%s7431_s4 + $0x20] sm:$0xff]  ;;  %v1479_v41 = vld [vmem:[%s7431_s4 + $0x28] sm:$0xff] }
 0x2fd   : > { %v784_v20 = vpop.xlane.xlu1 %783 }
 0x2fe   : > { %5758 = vrcp.f32 %v784_v20 }
 0x304   : > { %v940_v21 = vpop.xlane.xlu0 %939 }
 0x305   : > { %5760 = vrcp.f32 %v940_v21 }
 0x308   : > { %v5759_v23 = vpop.eup %5758  ;;  %v1096_v24 = vpop.xlane.xlu1 %1095 }
 0x309   : > { %v786_v25 = vmul.f32 %v5759_v23, %v6145_v35  ;;  %5762 = vrcp.f32 %v1096_v24  ;;  %v1209_v35 = vld [vmem:[%s7429_s2 + $0x128] sm:$0xff] }
 0x30a   : > { %v5386_v36 = vpack.c.bf16 %v1209_v35, %v1208_v34  ;;  %v1474_v34 = vld [vmem:[%s7431_s4] sm:$0xff]  ;;  %v1475_v35 = vld [vmem:[%s7431_s4 + $0x8] sm:$0xff] }
 0x30b   : > { %4942 = vmatmul.mubr.msk.f32.vlgmr.msra.gmra.mrb[4].mxu1 %vm775_vm6, %v786_v25 }
 0x30c   : > { %4950 = vmatpush3.msra.mxu1 %v6124_v1  ;;  %4951 = vmatprep.mubr.msk.f32.mxu1 %vm5867_vm4, %v5864_v7  ;;  %v5380_v1 = vpack.c.bf16 %v1205_v29, %v1204_v28 }
 0x30d   : > { %4959 = vmatprep.subr.mxu1 %v5864_v7 }
 0x30f   : > { %v5761_v26 = vpop.eup %5760 }
 0x310   : > { %v942_v27 = vmul.f32 %v5761_v26, %v6149_v37  ;;  %v1210_v37 = vld [vmem:[%s7429_s2 + $0x130] sm:$0xff] }
 0x312   : > { %4952 = vmatmul.mubr.msk.f32.vlgmr.msra.gmra.mrb[6].mxu1 %vm775_vm6, %v942_v27 }
 0x313   : > { %v5763_v30 = vpop.eup %5762  ;;  %4960 = vmatpush3.msra.mxu1 %v6127_v2  ;;  %4961 = vmatprep.mubr.msk.f32.mxu1 %vm5867_vm4, %v5864_v7  ;;  %v5383_v2 = vpack.c.bf16 %v1207_v33, %v1206_v32  ;;  %v1391_v32 = vld [vmem:[%s7430_s3 + $0x10] sm:$0xff]  ;;  %v1392_v33 = vld [vmem:[%s7430_s3 + $0x18] sm:$0x3f] }
 0x314   : > { %v1098_v31 = vmul.f32 %v5763_v30, %v6153_v39  ;;  %5379 = vmatprep.subr.bf16.mxu1 %v5866_v53  ;;  %v5389_v39 = vpack.c.bf16 %v1211_v38, %v1210_v37  ;;  %v1389_v30 = vld [vmem:[%s7430_s3] sm:$0xff]  ;;  %v5411_v37 = vpack.c.bf16 %v1475_v35, %v1474_v34  ;;  %v1477_v38 = vld [vmem:[%s7431_s4 + $0x18] sm:$0xff]  ;;  %v4400_v34 = vld [vmem:[%s7428_s1 + $0x168] sm:$0xff] }
 0x316   : > { %4962 = vmatmul.mubr.msk.f32.vlgmr.msra.gmra.mrb[8].mxu1 %vm775_vm6, %v1098_v31 }
 0x317   : > { %5381 = vmatpush3.bf16.msra.mxu1 %v5380_v1  ;;  %4996 = vmatprep.mubr.msk.f32.mxu1 %vm5867_vm4, %v5864_v7  ;;  %v1390_v1 = vld [vmem:[%s7430_s3 + $0x8] sm:$0xff] }
 0x318   : > { %5382 = vmatprep.subr.bf16.mxu1 %v5866_v53  ;;  %v5404_v31 = vpack.c.bf16 %v1390_v1, %v1389_v30 }
 0x31b   : > { %5384 = vmatpush3.bf16.msra.mxu1 %v5383_v2  ;;  %v5407_v2 = vpack.c.bf16 %v1392_v33, %v1391_v32  ;;  %v4401_v32 = vld [vmem:[%s7428_s1 + $0x170] sm:$0xff] }
 0x31c   : > { %5385 = vmatprep.subr.bf16.mxu1 %v5866_v53 }
 0x31f   : > { %5387 = vmatpush3.bf16.msra.mxu1 %v5386_v36  ;;  %v1476_v36 = vld [vmem:[%s7431_s4 + $0x10] sm:$0xff] }
 0x320   : > { %5388 = vmatprep.subr.bf16.mxu1 %v5866_v53 }
 0x323   : > { %5390 = vmatpush3.bf16.msra.mxu1 %v5389_v39  ;;  %v5414_v39 = vpack.c.bf16 %v1477_v38, %v1476_v36  ;;  %v4399_v36 = vld [vmem:[%s7428_s1 + $0x160] sm:$0xff] }
 0x324   : > { %5391 = vmatprep.subr.bf16.mxu1 %v5866_v53 }
 0x327   : > { %5393 = vmatpush3.bf16.msra.mxu1 %v5392_v42  ;;  %v5417_v42 = vpack.c.bf16 %v1479_v41, %v1478_v40  ;;  %v4419_v40 = vld [vmem:[%s7428_s1 + $0x200] sm:$0x3f] }
 0x328   : > { %5394 = vmatprep.subr.bf16.mxu1 %v5866_v53 }
 0x32b   : > { %5396 = vmatpush3.bf16.msra.mxu1 %v5395_v50  ;;  %v1485_v50 = vld [vmem:[%s7431_s4 + $0x58] sm:$0xff] }
 0x32c   : > { %5397 = vmatprep.subr.bf16.mxu1 %v5866_v53  ;;  %v5426_v51 = vpack.c.bf16 %v1485_v50, %v1484_v49  ;;  %v4403_v49 = vld [vmem:[%s7428_s1 + $0x180] sm:$0xff] }
 0x32f   : > { %5399 = vmatpush3.bf16.msra.mxu1 %v5398_v60  ;;  %v6410_v60 = vsub.s32 2, %v6129_v5 }
 0x330   : > { %5400 = vmatprep.subr.bf16.mxu1 %v5866_v53 }
 0x333   : > { %5402 = vmatpush3.bf16.msra.mxu1 %v5401_v0  ;;  %v1386_v0 = vrot.slane %v6336_v14, %v6410_v60 }
 0x334   : > { %5410 = vmatprep.subr.bf16.mxu1 %v5866_v53 }
 0x3de   : > { %v856_v3 = vpop.f32.mrb[4].mxu1 }
 0x3df   : > { %v4943_v4 = vpop.f32.mrb[5].mxu1 }
 0x3e5   : > { %v1012_v6 = vpop.f32.mrb[6].mxu1 }
 0x3e6   : > { %v4953_v8 = vpop.f32.mrb[7].mxu1  ;;  %1288 = vmatprep.mubr.f32.mxu0 %v1012_v6 }
 0x3e7   : > { %1289 = vmatmul.mubr.f32.vlgmr.msra.gmra.mrb[12].mxu0 %v856_v3  ;;  %v1488_v8 = vld [vmem:[%s7431_s4 + $0x70] sm:$0xff] }
 0x3e8   : > { %5007 = vmatprep.mubr.msk.f32.mxu0 %vm5867_vm4, %v5864_v7  ;;  %5405 = vmatpush3.bf16.msra.mxu0 %v5404_v31  ;;  %v4392_v31 = vld [vmem:[%s7428_s1 + $0x128] sm:$0xff] }
 0x3e9   : > { %v1168_v11 = vpop.f32.mrb[8].mxu1  ;;  %5406 = vmatprep.subr.bf16.mxu0 %v5866_v53  ;;  %v5434_v33 = vpack.c.bf16 %v4401_v32, %v4392_v31 }
 0x3ea   : > { %v4963_v12 = vpop.f32.mrb[9].mxu1  ;;  %4997 = vmatmul.mubr.f32.vlgmr.msra.gmra.mrb[10].mxu1 %v1168_v11  ;;  %v1489_v11 = vld [vmem:[%s7431_s4 + $0x78] sm:$0xff] }
 0x3eb   : > { %5042 = vmatprep.mubr.msk.f32.mxu1 %vm5867_vm4, %v5864_v7  ;;  %5412 = vmatpush3.bf16.msra.mxu1 %v5411_v37  ;;  %v5432_v12 = vpack.c.bf16 %v1489_v11, %v1488_v8  ;;  %v4408_v37 = vld [vmem:[%s7428_s1 + $0x1a8] sm:$0xff] }
 0x3ec   : > { %5409 = vmatpush3.bf16.msk.msra.mxu0 %vm5978_vm2, %v5407_v2  ;;  %5413 = vmatprep.subr.bf16.mxu1 %v5866_v53  ;;  %v4391_v2 = vld [vmem:[%s7428_s1 + $0x120] sm:$0xff]  ;;  %v5475_v38 = vpack.c.bf16 %v4408_v37, %v4399_v36 }
 0x3ed   : > { %v5436_v35 = vpack.c.bf16 %v4400_v34, %v4391_v2  ;;  %5435 = vmatprep.subr.bf16.mxu0 %v5434_v33  ;;  %v4397_v33 = vld [vmem:[%s7428_s1 + $0x150] sm:$0xff]  ;;  %v4406_v2 = vld [vmem:[%s7428_s1 + $0x198] sm:$0xff]  ;;  %v4416_v34 = vld [vmem:[%s7428_s1 + $0x1e8] sm:$0xff] }
 0x3ee   : > { %v5466_v36 = vpack.c.bf16 %v4406_v2, %v4397_v33  ;;  %v4445_v2 = vld [vmem:[%s7429_s2 + $0x188] sm:$0xff] }
 0x3ef   : > { %5415 = vmatpush3.bf16.msra.mxu1 %v5414_v39  ;;  %v4410_v39 = vld [vmem:[%s7428_s1 + $0x1b8] sm:$0xff] }
 0x3f0   : > { %5416 = vmatprep.subr.bf16.mxu1 %v5866_v53  ;;  %v5438_v41 = vpack.c.bf16 %v4419_v40, %v4410_v39  ;;  %v4424_v39 = vld [vmem:[%s7428_s1 + $0x228] sm:$0x3f] }
 0x3f3   : > { %5418 = vmatpush3.bf16.msra.mxu1 %v5417_v42  ;;  %v4409_v42 = vld [vmem:[%s7428_s1 + $0x1b0] sm:$0xff] }
 0x3f4   : > { %5419 = vmatprep.subr.bf16.mxu1 %v5866_v53  ;;  %v5441_v44 = vpack.c.bf16 %v4418_v43, %v4409_v42 }
 0x3f7   : > { %5421 = vmatpush3.bf16.msra.mxu1 %v5420_v45  ;;  %v4417_v45 = vld [vmem:[%s7428_s1 + $0x1f0] sm:$0xff] }
 0x3f8   : > { %5422 = vmatprep.subr.bf16.mxu1 %v5866_v53  ;;  %v5478_v47 = vpack.c.bf16 %v4426_v46, %v4417_v45 }
 0x3fb   : > { %5424 = vmatpush3.bf16.msra.mxu1 %v5423_v48  ;;  %v4394_v48 = vld [vmem:[%s7428_s1 + $0x138] sm:$0xff] }
 0x3fc   : > { %5425 = vmatprep.subr.bf16.mxu1 %v5866_v53  ;;  %v5444_v50 = vpack.c.bf16 %v4403_v49, %v4394_v48 }
 0x3ff   : > { %5427 = vmatpush3.bf16.msra.mxu1 %v5426_v51 }
 0x400   : > { %5428 = vmatprep.subr.bf16.mxu1 %v5866_v53 }
 0x403   : > { %5430 = vmatpush3.bf16.msra.mxu1 %v5429_v55  ;;  %v6494_v55 = vsub.s32 5, %v6129_v5 }
 0x404   : > { %5431 = vmatprep.subr.bf16.mxu1 %v5866_v53 }
 0x407   : > { %5433 = vmatpush3.bf16.msra.mxu1 %v5432_v12 }
 0x408   : > { %5474 = vmatprep.subr.bf16.mxu1 %v5866_v53 }
 0x4ba   : > { %v4694_v15 = vpop.f32.mrb[12].mxu0 }
 0x4bb   : > { %v4695_v17 = vpop.f32.mrb[13].mxu0 }
 0x4bc   : > { %v4696_v18 = vadd.f32 %v4695_v17, %v4694_v15 }
 0x4bd   : > { %v1360_v19 = vpop.f32.mrb[10].mxu1 }
 0x4be   : > { %v1291_v20 = vadd.f32 %v4696_v18, %v1223_v16  ;;  %v4998_v21 = vpop.f32.mrb[11].mxu1 }
 0x4c0   : > { %v1361_v23 = vadd.f32 %v1360_v19, %v1291_v20  ;;  %v6437_v20 = vsub.s32 4, %v6129_v5 }
 0x4c2   : > { %v1364_v24 = vsel %vm317_vm3, %v1361_v23, 0.0  ;;  %v1493_v21 = vrot.slane %v6336_v14, %v6437_v20 }
 0x4c3   : > { %1365 = vadd.xlane.f32.xlu0 %v1364_v24 }
 0x550   : > { %v1366_v25 = vpop.xlane.xlu0 %1365 }
 0x551   : > { %v1368_v26 = vmul.f32 0.033333335, %v1366_v25 }
 0x553   : > { %v1369_v27 = vsub.f32 %v1361_v23, %v1368_v26 }
 0x555   : > { %v1370_v28 = vmul.f32 %v1369_v27, %v1369_v27 }
 0x557   : > { %v1371_v29 = vsel %vm317_vm3, %v1370_v28, 0.0 }
 0x558   : > { %1372 = vadd.xlane.f32.xlu1 %v1371_v29 }
 0x5e5   : > { %v1373_v56 = vpop.xlane.xlu1 %1372 }
 0x5e6   : > { %v1374_v57 = vmul.f32 0.033333335, %v1373_v56  ;;  %v6497_v56 = vsub.s32 6, %v6129_v5 }
 0x5e8   : > { %v1375_v58 = vadd.f32 1e-05, %v1374_v57  ;;  %v1580_v57 = vrot.slane %v6336_v14, %v6494_v55 }
 0x5ea   : > { %5764 = vrsqrt.f32 %v1375_v58 }
 0x5f4   : > { %v5765_v62 = vpop.eup %5764 }
 0x5f5   : > { %v1377_v63 = vmul.f32 %v5765_v62, %v1369_v27 }
 0x5f7   : > { %v1382_v3 = vmul.f32 %v1381_v61, %v1377_v63  ;;  %v1585_v61 = vrot.slane %v6336_v14, %v6497_v56 }
 0x5f9   : > { %v1387_v4 = vadd.f32 %v1386_v0, %v1382_v3  ;;  %v4393_v0 = vld [vmem:[%s7428_s1 + $0x130] sm:$0xff]  ;;  %v4402_v3 = vld [vmem:[%s7428_s1 + $0x178] sm:$0xff] }
 0x5fb   : > { %v6417_v6 = vadd.f32 %v1387_v4, %v6017_v22  ;;  %v6430_v22 = vsub.s32 3, %v6129_v5  ;;  %v4412_v5 = vld [vmem:[%s7428_s1 + $0x1c8] sm:$0xff]  ;;  %v4421_v4 = vld [vmem:[%s7428_s1 + $0x210] sm:$0x3f] }
 0x5fc   : > { %v5448_v12 = vpack.c.bf16 %v4421_v4, %v4412_v5 }
 0x5fd   : > { %5008 = vmatmul.mubr.msk.f32.vlgmr.msra.gmra.mrb[14].mxu0 %vm317_vm3, %v6417_v6  ;;  %v1396_v15 = vrot.slane %v6336_v14, %v6430_v22  ;;  %v5446_v14 = vpack.c.bf16 %v4402_v3, %v4393_v0 }
 0x5fe   : > { %1721 = vmatprep.mubr.f32.mxu0 %v5864_v7  ;;  %5437 = vmatpush1.bf16.msra.mxu0 %v5436_v35  ;;  %v4425_v35 = vld [vmem:[%s7428_s1 + $0x230] sm:$0x3f] }
 0x5ff   : > { %5440 = vmatprep.subr.msk.bf16.mxu0 %vm5978_vm2, %v5438_v41  ;;  %v5468_v37 = vpack.c.bf16 %v4425_v35, %v4416_v34  ;;  %v4462_v34 = vld [vmem:[%s7429_s2 + $0x210] sm:$0xff]  ;;  %v4463_v35 = vld [vmem:[%s7429_s2 + $0x218] sm:$0xff] }
 0x602   : > { %5443 = vmatpush1.bf16.msk.msra.mxu0 %vm5978_vm2, %v5441_v44 }
 0x603   : > { %5445 = vmatprep.subr.bf16.mxu0 %v5444_v50 }
 0x6d0   : > { %v1469_v16 = vpop.f32.mrb[14].mxu0 }
 0x6d1   : > { %v1470_v17 = vadd.f32 %v1469_v16, %v1396_v15  ;;  %v5009_v18 = vpop.f32.mrb[15].mxu0  ;;  %v4411_v15 = vld [vmem:[%s7428_s1 + $0x1c0] sm:$0xff]  ;;  %v4420_v16 = vld [vmem:[%s7428_s1 + $0x208] sm:$0x3f] }
 0x6d2   : > { %v4405_v18 = vld [vmem:[%s7428_s1 + $0x190] sm:$0xff] }
 0x6d3   : > { %v1473_v19 = vmax.f32 %v1470_v17, 0.0  ;;  %v4396_v17 = vld [vmem:[%s7428_s1 + $0x148] sm:$0xff] }
 0x6d5   : > { %5043 = vmatmul.mubr.f32.vlgmr.msra.gmra.mrb[12].mxu1 %v1473_v19  ;;  %v5454_v19 = vpack.c.bf16 %v4405_v18, %v4396_v17 }
 0x6d6   : > { %5053 = vmatprep.mubr.msk.f32.mxu1 %vm5867_vm4, %v5864_v7  ;;  %5476 = vmatpush3.bf16.msra.mxu1 %v5475_v38  ;;  %v4415_v38 = vld [vmem:[%s7428_s1 + $0x1e0] sm:$0xff] }
 0x6d7   : > { %5477 = vmatprep.subr.bf16.mxu1 %v5866_v53  ;;  %v5471_v40 = vpack.c.bf16 %v4424_v39, %v4415_v38  ;;  %v4446_v38 = vld [vmem:[%s7429_s2 + $0x190] sm:$0xff]  ;;  %v4447_v39 = vld [vmem:[%s7429_s2 + $0x198] sm:$0xff] }
 0x6da   : > { %5480 = vmatpush3.bf16.msk.msra.mxu1 %vm5978_vm2, %v5478_v47 }
 0x6db   : > { %5061 = vmatprep.subr.mxu1 %v5864_v7 }
 0x7a8   : > { %v1560_v23 = vpop.f32.mrb[12].mxu1 }
 0x7a9   : > { %v1561_v24 = vadd.f32 %v1560_v23, %v1493_v21  ;;  %v5044_v25 = vpop.f32.mrb[13].mxu1  ;;  %v4395_v21 = vld [vmem:[%s7428_s1 + $0x140] sm:$0xff]  ;;  %v4404_v23 = vld [vmem:[%s7428_s1 + $0x188] sm:$0xff] }
 0x7aa   : > { %v4423_v25 = vld [vmem:[%s7428_s1 + $0x220] sm:$0x3f] }
 0x7ab   : > { %v1564_v26 = vsel %vm317_vm3, %v1561_v24, 0.0 }
 0x7ac   : > { %1565 = vadd.xlane.f32.xlu0 %v1564_v26  ;;  %v5456_v26 = vpack.c.bf16 %v4404_v23, %v4395_v21 }
 0x839   : > { %v1566_v27 = vpop.xlane.xlu0 %1565 }
 0x83a   : > { %v1567_v28 = vmul.f32 0.033333335, %v1566_v27 }
 0x83c   : > { %v1568_v29 = vsub.f32 %v1561_v24, %v1567_v28  ;;  %v4414_v24 = vld [vmem:[%s7428_s1 + $0x1d8] sm:$0xff]  ;;  %v4413_v28 = vld [vmem:[%s7428_s1 + $0x1d0] sm:$0xff] }
 0x83d   : > { %v5458_v27 = vpack.c.bf16 %v4423_v25, %v4414_v24 }
 0x83e   : > { %v1569_v30 = vmul.f32 %v1568_v29, %v1568_v29 }
 0x840   : > { %v1570_v1 = vsel %vm317_vm3, %v1569_v30, 0.0  ;;  %v4398_v30 = vld [vmem:[%s7428_s1 + $0x158] sm:$0xff] }
 0x841   : > { %1571 = vadd.xlane.f32.xlu1 %v1570_v1  ;;  %v4407_v1 = vld [vmem:[%s7428_s1 + $0x1a0] sm:$0xff] }
 0x842   : > { %v5464_v32 = vpack.c.bf16 %v4407_v1, %v4398_v30  ;;  %v4460_v1 = vld [vmem:[%s7429_s2 + $0x200] sm:$0xff] }
 0x8ce   : > { %v1572_v51 = vpop.xlane.xlu1 %1571 }
 0x8cf   : > { %v1573_v52 = vmul.f32 0.033333335, %v1572_v51 }
 0x8d1   : > { %v1574_v54 = vadd.f32 1e-05, %v1573_v52 }
 0x8d3   : > { %5766 = vrsqrt.f32 %v1574_v54 }
 0x8dd   : > { %v5767_v58 = vpop.eup %5766 }
 0x8de   : > { %v1576_v62 = vmul.f32 %v5767_v58, %v1568_v29  ;;  %v4422_v29 = vld [vmem:[%s7428_s1 + $0x218] sm:$0x3f] }
 0x8df   : > { %v5461_v31 = vpack.c.bf16 %v4422_v29, %v4413_v28 }
 0x8e0   : > { %v1581_v63 = vmul.f32 %v1580_v57, %v1576_v62 }
 0x8e2   : > { %v1586_v8 = vadd.f32 %v1585_v61, %v1581_v63 }
 0x8e4   : > { %v6516_v11 = vadd.f32 %v1586_v8, %v6417_v6  ;;  %v5451_v6 = vpack.c.bf16 %v4420_v16, %v4411_v15 }
 0x8e6   : > { %4429 = vmatmul.mubr.msk.f32.vlgmr.msra.gmra.mrb[16].mxu0 %vm317_vm3, %v6516_v11  ;;  %5054 = vmatmul.mubr.msk.f32.vlgmr.msra.gmra.mrb[14].mxu1 %vm317_vm3, %v6516_v11 }
 0x8e7   : > { %5447 = vmatpush1.bf16.msra.mxu0 %v5446_v14  ;;  %1792 = vmatprep.mubr.f32.mxu0 %v5864_v7 }
 0x8e8   : > { %5450 = vmatprep.subr.msk.bf16.mxu0 %vm5978_vm2, %v5448_v12  ;;  %5063 = vmatprep.mubr.msk.f32.mxu1 %vm5867_vm4, %v5864_v7 }
 0x8eb   : > { %5453 = vmatpush1.bf16.msk.msra.mxu0 %vm5978_vm2, %v5451_v6 }
 0x8ec   : > { %5455 = vmatprep.subr.bf16.mxu0 %v5454_v19 }
 0x8ee   : > { %4432 = vmatmul.mubr.msk.f32.vlgmr.msra.gmra.mrb[18].mxu0 %vm317_vm3, %v6516_v11 }
 0x8ef   : > { %5457 = vmatpush1.bf16.msra.mxu0 %v5456_v26  ;;  %1863 = vmatprep.mubr.f32.mxu0 %v5864_v7 }
 0x8f0   : > { %5460 = vmatprep.subr.msk.bf16.mxu0 %vm5978_vm2, %v5458_v27 }
 0x8f3   : > { %5463 = vmatpush1.bf16.msk.msra.mxu0 %vm5978_vm2, %v5461_v31  ;;  %v4461_v31 = vld [vmem:[%s7429_s2 + $0x208] sm:$0xff] }
 0x8f4   : > { %5465 = vmatprep.subr.bf16.mxu0 %v5464_v32  ;;  %v4444_v32 = vld [vmem:[%s7429_s2 + $0x180] sm:$0xff]  ;;  %v5481_v33 = vpack.c.bf16 %v4461_v31, %v4460_v1  ;;  %v4481_v1 = vld [vmem:[%s7429_s2 + $0x2a8] sm:$0xff] }
 0x8f6   : > { %4435 = vmatmul.mubr.msk.f32.vlgmr.msra.gmra.mrb[20].mxu0 %vm317_vm3, %v6516_v11 }
 0x8f7   : > { %5467 = vmatpush1.bf16.msra.mxu0 %v5466_v36  ;;  %1934 = vmatprep.mubr.f32.mxu0 %v5864_v7  ;;  %v5483_v36 = vpack.c.bf16 %v4445_v2, %v4444_v32  ;;  %v4482_v32 = vld [vmem:[%s7429_s2 + $0x2b0] sm:$0xff] }
 0x8f8   : > { %5470 = vmatprep.subr.msk.bf16.mxu0 %vm5978_vm2, %v5468_v37  ;;  %v5485_v37 = vpack.c.bf16 %v4463_v35, %v4462_v34  ;;  %v4484_v34 = vld [vmem:[%s7429_s2 + $0x2c0] sm:$0xff]  ;;  %v4485_v35 = vld [vmem:[%s7429_s2 + $0x2c8] sm:$0xff] }
 0x8fb   : > { %5473 = vmatpush1.bf16.msk.msra.mxu0 %vm5978_vm2, %v5471_v40  ;;  %v4464_v40 = vld [vmem:[%s7429_s2 + $0x220] sm:$0xff] }
 0x8fc   : > { %5056 = vmatprep.subr.mxu0 %v5864_v7 }
 0x8fe   : > { %4438 = vmatmul.mubr.msk.f32.vlgmr.msra.gmra.mrb[22].mxu0 %vm317_vm3, %v6516_v11 }
 0x8ff   : > { %5058 = vmatprep.mubr.msk.f32.mxu0 %vm5867_vm4, %v5864_v7 }
 0x9b9   : > { %v1723_v41 = vpop.f32.mrb[16].mxu0  ;;  %v6602_v42 = vpop.f32.mrb[14].mxu1 }
 0x9ba   : > { %v1725_v43 = vpop.f32.mrb[17].mxu0  ;;  %v5055_v44 = vpop.f32.mrb[15].mxu1 }
 0x9c1   : > { %v1794_v45 = vpop.f32.mrb[18].mxu0 }
 0x9c2   : > { %v1796_v46 = vpop.f32.mrb[19].mxu0 }
 0x9c3   : > { %5057 = vmatpush3.xpose.msra.mxu0 %v1796_v46  ;;  %v4449_v46 = vld [vmem:[%s7429_s2 + $0x1a8] sm:$0xff] }
 0x9c4   : > { %5066 = vmatprep.subr.mxu0 %v5864_v7 }
 0x9c6   : > { %5059 = vmatmul.mubr.f32.vlgmr.msra.gmra.mrb[24].mxu0 %v1723_v41  ;;  %v4465_v41 = vld [vmem:[%s7429_s2 + $0x228] sm:$0xff] }
 0x9c7   : > { %5068 = vmatprep.mubr.msk.f32.mxu0 %vm5867_vm4, %v5864_v7  ;;  %v5489_v44 = vpack.c.bf16 %v4465_v41, %v4464_v40  ;;  %v4487_v41 = vld [vmem:[%s7429_s2 + $0x2d8] sm:$0xff] }
 0x9c9   : > { %v1865_v47 = vpop.f32.mrb[20].mxu0 }
 0x9ca   : > { %v1867_v48 = vpop.f32.mrb[21].mxu0  ;;  %5067 = vmatpush3.xpose.msra.mxu0 %v1865_v47  ;;  %v4466_v47 = vld [vmem:[%s7429_s2 + $0x230] sm:$0xff] }
 0x9cb   : > { %5076 = vmatprep.subr.mxu0 %v5864_v7 }
 0x9cd   : > { %5069 = vmatmul.mubr.f32.vlgmr.msra.gmra.mrb[26].mxu0 %v1725_v43  ;;  %v5487_v43 = vpack.c.bf16 %v4447_v39, %v4446_v38  ;;  %v4473_v38 = vld [vmem:[%s7429_s2 + $0x268] sm:$0xff]  ;;  %v4486_v39 = vld [vmem:[%s7429_s2 + $0x2d0] sm:$0xff] }
 0x9ce   : > { %5077 = vmatpush3.xpose.msra.mxu0 %v1867_v48  ;;  %5078 = vmatprep.mubr.msk.f32.mxu0 %vm5867_vm4, %v5864_v7  ;;  %v4467_v48 = vld [vmem:[%s7429_s2 + $0x238] sm:$0xff] }
 0x9cf   : > { %5482 = vmatprep.subr.bf16.mxu0 %v5481_v33  ;;  %v4483_v33 = vld [vmem:[%s7429_s2 + $0x2b8] sm:$0xff] }
 0x9d0   : > { %v5523_v2 = vpack.c.bf16 %v4483_v33, %v4482_v32  ;;  %v4495_v32 = vld [vmem:[%s7430_s3 + $0x38] sm:$0x3f] }
 0x9d1   : > { %v1936_v49 = vpop.f32.mrb[22].mxu0  ;;  %5079 = vmatmul.mubr.f32.vlgmr.msra.gmra.mrb[28].mxu0 %v1794_v45  ;;  %v4448_v45 = vld [vmem:[%s7429_s2 + $0x1a0] sm:$0xff] }
 0x9d2   : > { %v6610_v50 = vpop.f32.mrb[23].mxu0  ;;  %5062 = vmatpush3.msra.mxu1 %v1936_v49  ;;  %5484 = vmatpush3.bf16.msra.mxu0 %v5483_v36  ;;  %v5491_v49 = vpack.c.bf16 %v4449_v46, %v4448_v45  ;;  %v5526_v36 = vpack.c.bf16 %v4485_v35, %v4484_v34  ;;  %v5529_v45 = vpack.c.bf16 %v4487_v41, %v4486_v39  ;;  %v4499_v34 = vld [vmem:[%s7431_s4 + $0x88] sm:$0xff]  ;;  %v4500_v35 = vld [vmem:[%s7431_s4 + $0x90] sm:$0xff]  ;;  %v4502_v39 = vld [vmem:[%s7431_s4 + $0xa0] sm:$0xff] }
 0x9d3   : > { %5071 = vmatprep.subr.mxu1 %v5864_v7  ;;  %5486 = vmatprep.subr.bf16.mxu0 %v5485_v37  ;;  %v4472_v37 = vld [vmem:[%s7429_s2 + $0x260] sm:$0xff] }
 0x9d4   : > { %v5505_v40 = vpack.c.bf16 %v4473_v38, %v4472_v37  ;;  %v4501_v37 = vld [vmem:[%s7431_s4 + $0x98] sm:$0xff] }
 0x9d5   : > { %v5548_v38 = vpack.c.bf16 %v4501_v37, %v4500_v35  ;;  %v4532_v37 = vld [vmem:[%s7428_s1 + $0x2c8] sm:$0xff] }
 0x9d6   : > { %5488 = vmatpush3.bf16.msra.mxu0 %v5487_v43  ;;  %v4456_v43 = vld [vmem:[%s7429_s2 + $0x1e0] sm:$0xff] }
 0x9d7   : > { %5490 = vmatprep.subr.bf16.mxu0 %v5489_v44  ;;  %v4457_v44 = vld [vmem:[%s7429_s2 + $0x1e8] sm:$0xff] }
 0x9d8   : > { %v5507_v46 = vpack.c.bf16 %v4457_v44, %v4456_v43  ;;  %v4504_v43 = vld [vmem:[%s7431_s4 + $0xb0] sm:$0xff]  ;;  %v4505_v44 = vld [vmem:[%s7431_s4 + $0xb8] sm:$0xff] }
 0x9da   : > { %5492 = vmatpush3.bf16.msra.mxu0 %v5491_v49  ;;  %v4488_v49 = vld [vmem:[%s7429_s2 + $0x2e0] sm:$0xff] }
 0xa99   : > { %v2077_v51 = vpop.f32.mrb[24].mxu0 }
 0xa9a   : > { %v2081_v52 = vmul.f32 0.18257418, %v2077_v51  ;;  %v5060_v54 = vpop.f32.mrb[25].mxu0  ;;  %v5493_v51 = vpack.c.bf16 %v4467_v48, %v4466_v47  ;;  %v4474_v47 = vld [vmem:[%s7429_s2 + $0x270] sm:$0xff]  ;;  %v4475_v48 = vld [vmem:[%s7429_s2 + $0x278] sm:$0xff] }
 0xa9b   : > { %v4451_v54 = vld [vmem:[%s7429_s2 + $0x1b8] sm:$0xff] }
 0xa9c   : > { %v2082_v57 = vsel %vm6132_vm5, %v2081_v52, -inf  ;;  %v4450_v52 = vld [vmem:[%s7429_s2 + $0x1b0] sm:$0xff]  ;;  %5494 = vmatprep.subr.bf16.mxu0 %v5493_v51  ;;  %v5509_v51 = vpack.c.bf16 %v4475_v48, %v4474_v47  ;;  %v4507_v47 = vld [vmem:[%s7431_s4 + $0xc8] sm:$0xff] }
 0xa9d   : > { %v2083_v58 = vsel %vm775_vm6, %v2082_v57, -inf }
 0xa9e   : > { %2084 = vmax.xlane.f32.xlu0 %v2083_v58  ;;  %v4469_v58 = vld [vmem:[%s7429_s2 + $0x248] sm:$0xff] }
 0xaa0   : > { %v2233_v61 = vpop.f32.mrb[26].mxu0 }
 0xaa1   : > { %v2237_v62 = vmul.f32 0.18257418, %v2233_v61  ;;  %v5070_v63 = vpop.f32.mrb[27].mxu0  ;;  %v5495_v61 = vpack.c.bf16 %v4451_v54, %v4450_v52  ;;  %v4489_v52 = vld [vmem:[%s7429_s2 + $0x2e8] sm:$0xff]  ;;  %v4458_v54 = vld [vmem:[%s7429_s2 + $0x1f0] sm:$0xff] }
 0xaa2   : > { %v4452_v63 = vld [vmem:[%s7429_s2 + $0x1c0] sm:$0xff] }
 0xaa3   : > { %v2238_v0 = vsel %vm6132_vm5, %v2237_v62, -inf  ;;  %5496 = vmatpush3.bf16.msra.mxu0 %v5495_v61 }
 0xaa4   : > { %v2389_v3 = vpop.f32.mrb[28].mxu0  ;;  %v2239_v5 = vsel %vm775_vm6, %v2238_v0, -inf }
 0xaa5   : > { %v2393_v4 = vmul.f32 0.18257418, %v2389_v3  ;;  %2240 = vmax.xlane.f32.xlu1 %v2239_v5  ;;  %v5080_v8 = vpop.f32.mrb[29].mxu0  ;;  %v4470_v3 = vld [vmem:[%s7429_s2 + $0x250] sm:$0xff]  ;;  %v4471_v5 = vld [vmem:[%s7429_s2 + $0x258] sm:$0xff] }
 0xaa6   : > { %v5501_v8 = vpack.c.bf16 %v4471_v5, %v4470_v3 }
 0xaa7   : > { %v2394_v14 = vsel %vm6132_vm5, %v2393_v4, -inf }
 0xaa8   : > { %v2395_v12 = vsel %vm775_vm6, %v2394_v14, -inf }
 0xaa9   : > { %2396 = vmax.xlane.f32.xlu0 %v2395_v12  ;;  %v4455_v12 = vld [vmem:[%s7429_s2 + $0x1d8] sm:$0xff] }
 0xb2b   : > { %v2085_v15 = vpop.xlane.xlu0 %2084 }
 0xb2c   : > { %v2086_v16 = vsub.f32 %v2082_v57, %v2085_v15  ;;  %v4468_v57 = vld [vmem:[%s7429_s2 + $0x240] sm:$0xff] }
 0xb2d   : > { %v5497_v62 = vpack.c.bf16 %v4469_v58, %v4468_v57  ;;  %v4459_v57 = vld [vmem:[%s7429_s2 + $0x1f8] sm:$0xff]  ;;  %v5532_v58 = vpack.c.bf16 %v4489_v52, %v4488_v49  ;;  %v4508_v49 = vld [vmem:[%s7431_s4 + $0xd0] sm:$0xff] }
 0xb2e   : > { %v2087_v17 = vmul.f32 1.442695, %v2086_v16  ;;  %v5511_v61 = vpack.c.bf16 %v4459_v57, %v4458_v54  ;;  %v4510_v54 = vld [vmem:[%s7431_s4 + $0xe0] sm:$0xff]  ;;  %v4511_v57 = vld [vmem:[%s7431_s4 + $0xe8] sm:$0xff] }
 0xb2f   : > { %5498 = vmatprep.subr.bf16.mxu0 %v5497_v62  ;;  %v4490_v62 = vld [vmem:[%s7429_s2 + $0x2f0] sm:$0xff] }
 0xb30   : > { %5768 = vpow2.f32 %v2087_v17 }
 0xb32   : > { %v2241_v18 = vpop.xlane.xlu1 %2240 }
 0xb33   : > { %v2242_v6 = vsub.f32 %v2238_v0, %v2241_v18  ;;  %v4453_v0 = vld [vmem:[%s7429_s2 + $0x1c8] sm:$0xff] }
 0xb34   : > { %v5499_v4 = vpack.c.bf16 %v4453_v0, %v4452_v63  ;;  %v4491_v63 = vld [vmem:[%s7429_s2 + $0x2f8] sm:$0xff] }
 0xb35   : > { %v2243_v19 = vmul.f32 1.442695, %v2242_v6  ;;  %v5535_v0 = vpack.c.bf16 %v4491_v63, %v4490_v62 }
 0xb36   : > { %v2397_v21 = vpop.xlane.xlu0 %2396  ;;  %5500 = vmatpush3.bf16.msra.mxu0 %v5499_v4 }
 0xb37   : > { %5770 = vpow2.f32 %v2243_v19  ;;  %v2398_v23 = vsub.f32 %v2394_v14, %v2397_v21  ;;  %v4454_v14 = vld [vmem:[%s7429_s2 + $0x1d0] sm:$0xff]  ;;  %5502 = vmatprep.subr.bf16.mxu0 %v5501_v8 }
 0xb38   : > { %v5503_v15 = vpack.c.bf16 %v4455_v12, %v4454_v14 }
 0xb39   : > { %v2399_v24 = vmul.f32 1.442695, %v2398_v23 }
 0xb3a   : > { %v6622_v25 = vpop.eup %5768  ;;  %5504 = vmatpush3.bf16.msra.mxu0 %v5503_v15  ;;  %v6810_v15 = vld [vmem:[%s7433_s6 + $0x8] sm:$0xff] }
 0xb3b   : > { %5772 = vpow2.f32 %v2399_v24  ;;  %v2089_v26 = vsel %vm775_vm6, %v6622_v25, 0.0  ;;  %v4476_v24 = vld [vmem:[%s7429_s2 + $0x280] sm:$0xff]  ;;  %5506 = vmatprep.subr.bf16.mxu0 %v5505_v40  ;;  %v4503_v40 = vld [vmem:[%s7431_s4 + $0xa8] sm:$0xff] }
 0xb3c   : > { %2090 = vadd.xlane.f32.xlu1 %v2089_v26  ;;  %v5551_v41 = vpack.c.bf16 %v4503_v40, %v4502_v39  ;;  %v4534_v39 = vld [vmem:[%s7428_s1 + $0x2d8] sm:$0xff]  ;;  %v4543_v40 = vld [vmem:[%s7428_s1 + $0x320] sm:$0x3f] }
 0xb3e   : > { %5508 = vmatpush3.bf16.msra.mxu0 %v5507_v46  ;;  %v4506_v46 = vld [vmem:[%s7431_s4 + $0xc0] sm:$0xff] }
 0xb3f   : > { %5510 = vmatprep.subr.bf16.mxu0 %v5509_v51  ;;  %v5557_v48 = vpack.c.bf16 %v4507_v47, %v4506_v46  ;;  %v4509_v51 = vld [vmem:[%s7431_s4 + $0xd8] sm:$0xff]  ;;  %v4541_v46 = vld [vmem:[%s7428_s1 + $0x310] sm:$0xff] }
 0xb40   : > { %v5560_v52 = vpack.c.bf16 %v4509_v51, %v4508_v49  ;;  %v4550_v47 = vld [vmem:[%s7428_s1 + $0x358] sm:$0x3f]  ;;  %v4527_v51 = vld [vmem:[%s7428_s1 + $0x2a0] sm:$0xff] }
 0xb41   : > { %v6626_v27 = vpop.eup %5770  ;;  %v4518_v49 = vld [vmem:[%s7428_s1 + $0x258] sm:$0xff] }
 0xb42   : > { %v2245_v28 = vsel %vm775_vm6, %v6626_v27, 0.0  ;;  %5512 = vmatpush3.bf16.msra.mxu0 %v5511_v61 }
 0xb43   : > { %2246 = vadd.xlane.f32.xlu0 %v2245_v28  ;;  %5537 = vmatprep.subr.bf16.mxu0 %v5866_v53 }
 0xb45   : > { %v6630_v29 = vpop.eup %5772 }
 0xb46   : > { %v2401_v30 = vsel %vm775_vm6, %v6630_v29, 0.0 }
 0xb47   : > { %2402 = vadd.xlane.f32.xlu1 %v2401_v30  ;;  %v4479_v30 = vld [vmem:[%s7429_s2 + $0x298] sm:$0xff] }
 0xbc9   : > { %v2091_v16 = vpop.xlane.xlu1 %2090 }
 0xbca   : > { %5774 = vrcp.f32 %v2091_v16 }
 0xbd0   : > { %v2247_v17 = vpop.xlane.xlu0 %2246 }
 0xbd1   : > { %5776 = vrcp.f32 %v2247_v17  ;;  %v2531_v17 = vrot.slane %v6810_v15, %v6331_v13 }
 0xbd4   : > { %v5775_v18 = vpop.eup %5774  ;;  %v2403_v6 = vpop.xlane.xlu1 %2402 }
 0xbd5   : > { %v2093_v19 = vmul.f32 %v5775_v18, %v6622_v25  ;;  %5778 = vrcp.f32 %v2403_v6  ;;  %v4477_v25 = vld [vmem:[%s7429_s2 + $0x288] sm:$0xff] }
 0xbd7   : > { %5064 = vmatmul.mubr.msk.f32.vlgmr.msra.gmra.mrb[16].mxu1 %vm775_vm6, %v2093_v19 }
 0xbd8   : > { %5072 = vmatpush3.msra.mxu1 %v6610_v50  ;;  %5073 = vmatprep.mubr.msk.f32.mxu1 %vm5867_vm4, %v5864_v7  ;;  %v5514_v50 = vpack.c.bf16 %v4477_v25, %v4476_v24 }
 0xbd9   : > { %5081 = vmatprep.subr.mxu1 %v5864_v7 }
 0xbdb   : > { %v5777_v21 = vpop.eup %5776 }
 0xbdc   : > { %v2249_v23 = vmul.f32 %v5777_v21, %v6626_v27  ;;  %v4478_v27 = vld [vmem:[%s7429_s2 + $0x290] sm:$0xff] }
 0xbde   : > { %5074 = vmatmul.mubr.msk.f32.vlgmr.msra.gmra.mrb[18].mxu1 %vm775_vm6, %v2249_v23 }
 0xbdf   : > { %v5779_v26 = vpop.eup %5778  ;;  %5082 = vmatpush3.msra.mxu1 %v6602_v42  ;;  %5083 = vmatprep.mubr.msk.f32.mxu1 %vm5867_vm4, %v5864_v7  ;;  %v5517_v42 = vpack.c.bf16 %v4479_v30, %v4478_v27 }
 0xbe0   : > { %v2405_v28 = vmul.f32 %v5779_v26, %v6630_v29  ;;  %5513 = vmatprep.subr.bf16.mxu1 %v5866_v53  ;;  %v4480_v29 = vld [vmem:[%s7429_s2 + $0x2a0] sm:$0xff] }
 0xbe1   : > { %v5520_v31 = vpack.c.bf16 %v4481_v1, %v4480_v29  ;;  %v4493_v29 = vld [vmem:[%s7430_s3 + $0x28] sm:$0xff] }
 0xbe2   : > { %5084 = vmatmul.mubr.msk.f32.vlgmr.msra.gmra.mrb[20].mxu1 %vm775_vm6, %v2405_v28 }
 0xbe3   : > { %5515 = vmatpush3.bf16.msra.mxu1 %v5514_v50  ;;  %5118 = vmatprep.mubr.msk.f32.mxu1 %vm5867_vm4, %v5864_v7 }
 0xbe4   : > { %5516 = vmatprep.subr.bf16.mxu1 %v5866_v53 }
 0xbe7   : > { %5518 = vmatpush3.bf16.msra.mxu1 %v5517_v42  ;;  %v4492_v42 = vld [vmem:[%s7430_s3 + $0x20] sm:$0xff] }
 0xbe8   : > { %5519 = vmatprep.subr.bf16.mxu1 %v5866_v53  ;;  %v5538_v1 = vpack.c.bf16 %v4493_v29, %v4492_v42 }
 0xbeb   : > { %5521 = vmatpush3.bf16.msra.mxu1 %v5520_v31  ;;  %v4494_v31 = vld [vmem:[%s7430_s3 + $0x30] sm:$0xff] }
 0xbec   : > { %5522 = vmatprep.subr.bf16.mxu1 %v5866_v53  ;;  %v5541_v33 = vpack.c.bf16 %v4495_v32, %v4494_v31  ;;  %v4516_v31 = vld [vmem:[%s7428_s1 + $0x248] sm:$0xff]  ;;  %v4525_v32 = vld [vmem:[%s7428_s1 + $0x290] sm:$0xff] }
 0xbef   : > { %5524 = vmatpush3.bf16.msra.mxu1 %v5523_v2  ;;  %v4498_v2 = vld [vmem:[%s7431_s4 + $0x80] sm:$0xff] }
 0xbf0   : > { %5525 = vmatprep.subr.bf16.mxu1 %v5866_v53 }
 0xbf3   : > { %5527 = vmatpush3.bf16.msra.mxu1 %v5526_v36  ;;  %v5545_v36 = vpack.c.bf16 %v4499_v34, %v4498_v2  ;;  %v4515_v2 = vld [vmem:[%s7428_s1 + $0x240] sm:$0xff]  ;;  %v4524_v34 = vld [vmem:[%s7428_s1 + $0x288] sm:$0xff] }
 0xbf4   : > { %5528 = vmatprep.subr.bf16.mxu1 %v5866_v53  ;;  %v5570_v35 = vpack.c.bf16 %v4524_v34, %v4515_v2  ;;  %v4530_v2 = vld [vmem:[%s7428_s1 + $0x2b8] sm:$0xff]  ;;  %v4540_v34 = vld [vmem:[%s7428_s1 + $0x308] sm:$0xff] }
 0xbf7   : > { %5530 = vmatpush3.bf16.msra.mxu1 %v5529_v45  ;;  %v5554_v45 = vpack.c.bf16 %v4505_v44, %v4504_v43  ;;  %v4533_v43 = vld [vmem:[%s7428_s1 + $0x2d0] sm:$0xff]  ;;  %v4542_v44 = vld [vmem:[%s7428_s1 + $0x318] sm:$0x3f] }
 0xbf8   : > { %5531 = vmatprep.subr.bf16.mxu1 %v5866_v53 }
 0xbfb   : > { %5533 = vmatpush3.bf16.msra.mxu1 %v5532_v58  ;;  %v5563_v58 = vpack.c.bf16 %v4511_v57, %v4510_v54 }
 0xbfc   : > { %5534 = vmatprep.subr.bf16.mxu1 %v5866_v53 }
 0xbff   : > { %5536 = vmatpush3.bf16.msra.mxu1 %v5535_v0  ;;  %v2688_v0 = vrot.slane %v6810_v15, %v6407_v59 }
 0xc00   : > { %5544 = vmatprep.subr.bf16.mxu1 %v5866_v53 }
 0xcaa   : > { %v2163_v3 = vpop.f32.mrb[16].mxu1 }
 0xcab   : > { %v5065_v5 = vpop.f32.mrb[17].mxu1 }
 0xcb1   : > { %v2319_v4 = vpop.f32.mrb[18].mxu1 }
 0xcb2   : > { %v5075_v8 = vpop.f32.mrb[19].mxu1  ;;  %2596 = vmatprep.mubr.f32.mxu0 %v2319_v4  ;;  %v2693_v4 = vrot.slane %v6810_v15, %v6410_v60 }
 0xcb3   : > { %2597 = vmatmul.mubr.f32.vlgmr.msra.gmra.mrb[30].mxu0 %v2163_v3 }
 0xcb4   : > { %5129 = vmatprep.mubr.msk.f32.mxu0 %vm5867_vm4, %v5864_v7  ;;  %5539 = vmatpush3.bf16.msra.mxu0 %v5538_v1 }
 0xcb5   : > { %v2475_v14 = vpop.f32.mrb[20].mxu1  ;;  %5540 = vmatprep.subr.bf16.mxu0 %v5866_v53 }
 0xcb6   : > { %v5085_v12 = vpop.f32.mrb[21].mxu1  ;;  %5119 = vmatmul.mubr.f32.vlgmr.msra.gmra.mrb[22].mxu1 %v2475_v14 }
 0xcb7   : > { %5164 = vmatprep.mubr.msk.f32.mxu1 %vm5867_vm4, %v5864_v7  ;;  %5546 = vmatpush3.bf16.msra.mxu1 %v5545_v36  ;;  %v4523_v36 = vld [vmem:[%s7428_s1 + $0x280] sm:$0xff] }
 0xcb8   : > { %5543 = vmatpush3.bf16.msk.msra.mxu0 %vm5978_vm2, %v5541_v33  ;;  %5547 = vmatprep.subr.bf16.mxu1 %v5866_v53  ;;  %v5568_v33 = vpack.c.bf16 %v4525_v32, %v4516_v31 }
 0xcba   : > { %5569 = vmatprep.subr.bf16.mxu0 %v5568_v33  ;;  %v4521_v33 = vld [vmem:[%s7428_s1 + $0x270] sm:$0xff] }
 0xcbb   : > { %5549 = vmatpush3.bf16.msra.mxu1 %v5548_v38  ;;  %v5609_v38 = vpack.c.bf16 %v4532_v37, %v4523_v36  ;;  %v5600_v36 = vpack.c.bf16 %v4530_v2, %v4521_v33  ;;  %v4569_v33 = vld [vmem:[%s7429_s2 + $0x308] sm:$0xff]  ;;  %v4586_v2 = vld [vmem:[%s7429_s2 + $0x390] sm:$0xff] }
 0xcbc   : > { %5550 = vmatprep.subr.bf16.mxu1 %v5866_v53 }
 0xcbf   : > { %5552 = vmatpush3.bf16.msra.mxu1 %v5551_v41  ;;  %v5572_v41 = vpack.c.bf16 %v4543_v40, %v4534_v39  ;;  %v4548_v39 = vld [vmem:[%s7428_s1 + $0x348] sm:$0x3f] }
 0xcc0   : > { %5553 = vmatprep.subr.bf16.mxu1 %v5866_v53 }
 0xcc3   : > { %5555 = vmatpush3.bf16.msra.mxu1 %v5554_v45  ;;  %v5575_v45 = vpack.c.bf16 %v4542_v44, %v4533_v43 }
 0xcc4   : > { %5556 = vmatprep.subr.bf16.mxu1 %v5866_v53 }
 0xcc7   : > { %5558 = vmatpush3.bf16.msra.mxu1 %v5557_v48  ;;  %v5612_v48 = vpack.c.bf16 %v4550_v47, %v4541_v46 }
 0xcc8   : > { %5559 = vmatprep.subr.bf16.mxu1 %v5866_v53 }
 0xccb   : > { %5561 = vmatpush3.bf16.msra.mxu1 %v5560_v52  ;;  %v5578_v52 = vpack.c.bf16 %v4527_v51, %v4518_v49 }
 0xccc   : > { %5562 = vmatprep.subr.bf16.mxu1 %v5866_v53 }
 0xccf   : > { %5564 = vmatpush3.bf16.msra.mxu1 %v5563_v58 }
 0xcd0   : > { %5565 = vmatprep.subr.bf16.mxu1 %v5866_v53 }
 0xd86   : > { %v4785_v16 = vpop.f32.mrb[30].mxu0 }
 0xd87   : > { %v4786_v18 = vpop.f32.mrb[31].mxu0 }
 0xd88   : > { %v4787_v6 = vadd.f32 %v4786_v18, %v4785_v16  ;;  %v4512_v16 = vld [vmem:[%s7431_s4 + $0xf0] sm:$0xff] }
 0xd89   : > { %v2668_v19 = vpop.f32.mrb[22].mxu1 }
 0xd8a   : > { %v2599_v21 = vadd.f32 %v4787_v6, %v2531_v17  ;;  %v5120_v23 = vpop.f32.mrb[23].mxu1  ;;  %v4513_v17 = vld [vmem:[%s7431_s4 + $0xf8] sm:$0xff] }
 0xd8b   : > { %v5566_v18 = vpack.c.bf16 %v4513_v17, %v4512_v16 }
 0xd8c   : > { %v2669_v24 = vadd.f32 %v2668_v19, %v2599_v21 }
 0xd8d   : > { %5567 = vmatpush3.bf16.msra.mxu1 %v5566_v18 }
 0xd8e   : > { %v2672_v25 = vsel %vm317_vm3, %v2669_v24, 0.0  ;;  %5608 = vmatprep.subr.bf16.mxu1 %v5866_v53 }
 0xd8f   : > { %2673 = vadd.xlane.f32.xlu0 %v2672_v25 }
 0xe1c   : > { %v2674_v26 = vpop.xlane.xlu0 %2673 }
 0xe1d   : > { %v2675_v50 = vmul.f32 0.033333335, %v2674_v26 }
 0xe1f   : > { %v2676_v28 = vsub.f32 %v2669_v24, %v2675_v50  ;;  %v2802_v24 = vrot.slane %v6810_v15, %v6437_v20 }
 0xe21   : > { %v2677_v27 = vmul.f32 %v2676_v28, %v2676_v28 }
 0xe23   : > { %v2678_v30 = vsel %vm317_vm3, %v2677_v27, 0.0 }
 0xe24   : > { %2679 = vadd.xlane.f32.xlu1 %v2678_v30 }
 0xeb1   : > { %v2680_v61 = vpop.xlane.xlu1 %2679 }
 0xeb2   : > { %v2681_v62 = vmul.f32 0.033333335, %v2680_v61  ;;  %v2889_v61 = vrot.slane %v6810_v15, %v6494_v55 }
 0xeb4   : > { %v2682_v63 = vadd.f32 1e-05, %v2681_v62 }
 0xeb6   : > { %5780 = vrsqrt.f32 %v2682_v63  ;;  %v2894_v63 = vrot.slane %v6810_v15, %v6497_v56 }
 0xec0   : > { %v5781_v3 = vpop.eup %5780 }
 0xec1   : > { %v2684_v5 = vmul.f32 %v5781_v3, %v2676_v28 }
 0xec3   : > { %v2689_v8 = vmul.f32 %v2688_v0, %v2684_v5  ;;  %v4517_v5 = vld [vmem:[%s7428_s1 + $0x250] sm:$0xff] }
 0xec5   : > { %v2694_v14 = vadd.f32 %v2693_v4, %v2689_v8  ;;  %v4526_v4 = vld [vmem:[%s7428_s1 + $0x298] sm:$0xff]  ;;  %v4536_v8 = vld [vmem:[%s7428_s1 + $0x2e8] sm:$0xff] }
 0xec7   : > { %v6885_v12 = vadd.f32 %v2694_v14, %v6516_v11  ;;  %v2704_v11 = vrot.slane %v6810_v15, %v6430_v22  ;;  %v4545_v14 = vld [vmem:[%s7428_s1 + $0x330] sm:$0x3f]  ;;  %v5580_v15 = vpack.c.bf16 %v4526_v4, %v4517_v5 }
 0xec8   : > { %v5582_v18 = vpack.c.bf16 %v4545_v14, %v4536_v8 }
 0xec9   : > { %5130 = vmatmul.mubr.msk.f32.vlgmr.msra.gmra.mrb[32].mxu0 %vm317_vm3, %v6885_v12 }
 0xeca   : > { %3030 = vmatprep.mubr.f32.mxu0 %v5864_v7  ;;  %5571 = vmatpush1.bf16.msra.mxu0 %v5570_v35  ;;  %v4549_v35 = vld [vmem:[%s7428_s1 + $0x350] sm:$0x3f] }
 0xecb   : > { %5574 = vmatprep.subr.msk.bf16.mxu0 %vm5978_vm2, %v5572_v41  ;;  %v5602_v37 = vpack.c.bf16 %v4549_v35, %v4540_v34  ;;  %v4587_v34 = vld [vmem:[%s7429_s2 + $0x398] sm:$0xff] }
 0xece   : > { %5577 = vmatpush1.bf16.msk.msra.mxu0 %vm5978_vm2, %v5575_v45 }
 0xecf   : > { %5579 = vmatprep.subr.bf16.mxu0 %v5578_v52 }
 0xf9c   : > { %v2777_v6 = vpop.f32.mrb[32].mxu0 }
 0xf9d   : > { %v2778_v19 = vadd.f32 %v2777_v6, %v2704_v11  ;;  %v5131_v21 = vpop.f32.mrb[33].mxu0  ;;  %v4535_v11 = vld [vmem:[%s7428_s1 + $0x2e0] sm:$0xff]  ;;  %v4544_v6 = vld [vmem:[%s7428_s1 + $0x328] sm:$0x3f] }
 0xf9e   : > { %v4529_v21 = vld [vmem:[%s7428_s1 + $0x2b0] sm:$0xff] }
 0xf9f   : > { %v2781_v23 = vmax.f32 %v2778_v19, 0.0  ;;  %v4520_v19 = vld [vmem:[%s7428_s1 + $0x268] sm:$0xff] }
 0xfa1   : > { %5165 = vmatmul.mubr.f32.vlgmr.msra.gmra.mrb[24].mxu1 %v2781_v23  ;;  %v5588_v23 = vpack.c.bf16 %v4529_v21, %v4520_v19 }
 0xfa2   : > { %5175 = vmatprep.mubr.msk.f32.mxu1 %vm5867_vm4, %v5864_v7  ;;  %5610 = vmatpush3.bf16.msra.mxu1 %v5609_v38  ;;  %v4539_v38 = vld [vmem:[%s7428_s1 + $0x300] sm:$0xff] }
 0xfa3   : > { %5611 = vmatprep.subr.bf16.mxu1 %v5866_v53  ;;  %v5605_v40 = vpack.c.bf16 %v4548_v39, %v4539_v38  ;;  %v4571_v38 = vld [vmem:[%s7429_s2 + $0x318] sm:$0xff]  ;;  %v4588_v39 = vld [vmem:[%s7429_s2 + $0x3a0] sm:$0xff] }
 0xfa6   : > { %5614 = vmatpush3.bf16.msk.msra.mxu1 %vm5978_vm2, %v5612_v48 }
 0xfa7   : > { %5183 = vmatprep.subr.mxu1 %v5864_v7 }
0x1074   : > { %v2869_v25 = vpop.f32.mrb[24].mxu1 }
0x1075   : > { %v2870_v26 = vadd.f32 %v2869_v25, %v2802_v24  ;;  %v5166_v50 = vpop.f32.mrb[25].mxu1  ;;  %v4519_v24 = vld [vmem:[%s7428_s1 + $0x260] sm:$0xff]  ;;  %v4528_v25 = vld [vmem:[%s7428_s1 + $0x2a8] sm:$0xff] }
0x1076   : > { %v4547_v50 = vld [vmem:[%s7428_s1 + $0x340] sm:$0x3f] }
0x1077   : > { %v2873_v28 = vsel %vm317_vm3, %v2870_v26, 0.0 }
0x1078   : > { %2874 = vadd.xlane.f32.xlu0 %v2873_v28  ;;  %v5590_v28 = vpack.c.bf16 %v4528_v25, %v4519_v24 }
0x1105   : > { %v2875_v27 = vpop.xlane.xlu0 %2874 }
0x1106   : > { %v2876_v30 = vmul.f32 0.033333335, %v2875_v27 }
0x1108   : > { %v2877_v42 = vsub.f32 %v2870_v26, %v2876_v30  ;;  %v4538_v26 = vld [vmem:[%s7428_s1 + $0x2f8] sm:$0xff]  ;;  %v4537_v30 = vld [vmem:[%s7428_s1 + $0x2f0] sm:$0xff] }
0x1109   : > { %v5592_v27 = vpack.c.bf16 %v4547_v50, %v4538_v26 }
0x110a   : > { %v2878_v29 = vmul.f32 %v2877_v42, %v2877_v42 }
0x110c   : > { %v2879_v1 = vsel %vm317_vm3, %v2878_v29, 0.0  ;;  %v4522_v29 = vld [vmem:[%s7428_s1 + $0x278] sm:$0xff] }
0x110d   : > { %2880 = vadd.xlane.f32.xlu1 %v2879_v1  ;;  %v4531_v1 = vld [vmem:[%s7428_s1 + $0x2c0] sm:$0xff] }
0x110e   : > { %v5598_v32 = vpack.c.bf16 %v4531_v1, %v4522_v29  ;;  %v4584_v29 = vld [vmem:[%s7429_s2 + $0x380] sm:$0xff]  ;;  %v4585_v1 = vld [vmem:[%s7429_s2 + $0x388] sm:$0xff] }
0x119a   : > { %v2881_v54 = vpop.xlane.xlu1 %2880 }
0x119b   : > { %v2882_v57 = vmul.f32 0.033333335, %v2881_v54 }
0x119d   : > { %v2883_v58 = vadd.f32 1e-05, %v2882_v57 }
0x119f   : > { %5782 = vrsqrt.f32 %v2883_v58 }
0x11a9   : > { %v5783_v62 = vpop.eup %5782 }
0x11aa   : > { %v2885_v0 = vmul.f32 %v5783_v62, %v2877_v42  ;;  %v4546_v42 = vld [vmem:[%s7428_s1 + $0x338] sm:$0x3f] }
0x11ab   : > { %v5595_v31 = vpack.c.bf16 %v4546_v42, %v4537_v30 }
0x11ac   : > { %v2890_v3 = vmul.f32 %v2889_v61, %v2885_v0 }
0x11ae   : > { %v2895_v16 = vadd.f32 %v2894_v63, %v2890_v3 }
0x11b0   : > { %v6972_v17 = vadd.f32 %v2895_v16, %v6885_v12  ;;  %v5585_v12 = vpack.c.bf16 %v4544_v6, %v4535_v11 }
0x11b2   : > { %4553 = vmatmul.mubr.msk.f32.vlgmr.msra.gmra.mrb[34].mxu0 %vm317_vm3, %v6972_v17  ;;  %5176 = vmatmul.mubr.msk.f32.vlgmr.msra.gmra.mrb[26].mxu1 %vm317_vm3, %v6972_v17 }
0x11b3   : > { %5581 = vmatpush1.bf16.msra.mxu0 %v5580_v15  ;;  %3101 = vmatprep.mubr.f32.mxu0 %v5864_v7 }
0x11b4   : > { %5584 = vmatprep.subr.msk.bf16.mxu0 %vm5978_vm2, %v5582_v18  ;;  %5185 = vmatprep.mubr.msk.f32.mxu1 %vm5867_vm4, %v5864_v7 }
0x11b7   : > { %5587 = vmatpush1.bf16.msk.msra.mxu0 %vm5978_vm2, %v5585_v12 }
0x11b8   : > { %5589 = vmatprep.subr.bf16.mxu0 %v5588_v23 }
0x11ba   : > { %4556 = vmatmul.mubr.msk.f32.vlgmr.msra.gmra.mrb[36].mxu0 %vm317_vm3, %v6972_v17 }
0x11bb   : > { %5591 = vmatpush1.bf16.msra.mxu0 %v5590_v28  ;;  %3172 = vmatprep.mubr.f32.mxu0 %v5864_v7 }
0x11bc   : > { %5594 = vmatprep.subr.msk.bf16.mxu0 %vm5978_vm2, %v5592_v27 }
0x11bf   : > { %5597 = vmatpush1.bf16.msk.msra.mxu0 %vm5978_vm2, %v5595_v31  ;;  %v4568_v31 = vld [vmem:[%s7429_s2 + $0x300] sm:$0xff] }
0x11c0   : > { %5599 = vmatprep.subr.bf16.mxu0 %v5598_v32  ;;  %v5615_v32 = vpack.c.bf16 %v4585_v1, %v4584_v29  ;;  %v5617_v35 = vpack.c.bf16 %v4569_v33, %v4568_v31  ;;  %v4606_v1 = vld [vmem:[%s7429_s2 + $0x430] sm:$0xff]  ;;  %v4607_v31 = vld [vmem:[%s7429_s2 + $0x438] sm:$0xff]  ;;  %v4608_v33 = vld [vmem:[%s7429_s2 + $0x440] sm:$0xff] }
0x11c2   : > { %4559 = vmatmul.mubr.msk.f32.vlgmr.msra.gmra.mrb[38].mxu0 %vm317_vm3, %v6972_v17 }
0x11c3   : > { %5601 = vmatpush1.bf16.msra.mxu0 %v5600_v36  ;;  %3243 = vmatprep.mubr.f32.mxu0 %v5864_v7  ;;  %v5619_v36 = vpack.c.bf16 %v4587_v34, %v4586_v2  ;;  %v4609_v2 = vld [vmem:[%s7429_s2 + $0x448] sm:$0xff] }
0x11c4   : > { %5604 = vmatprep.subr.msk.bf16.mxu0 %vm5978_vm2, %v5602_v37  ;;  %v4570_v37 = vld [vmem:[%s7429_s2 + $0x310] sm:$0xff]  ;;  %v5660_v34 = vpack.c.bf16 %v4609_v2, %v4608_v33  ;;  %v4625_v2 = vld [vmem:[%s7431_s4 + $0x118] sm:$0xff] }
0x11c7   : > { %5607 = vmatpush1.bf16.msk.msra.mxu0 %vm5978_vm2, %v5605_v40  ;;  %v4589_v40 = vld [vmem:[%s7429_s2 + $0x3a8] sm:$0xff] }
0x11c8   : > { %5178 = vmatprep.subr.mxu0 %v5864_v7 }
0x11ca   : > { %4562 = vmatmul.mubr.msk.f32.vlgmr.msra.gmra.mrb[40].mxu0 %vm317_vm3, %v6972_v17 }
0x11cb   : > { %5180 = vmatprep.mubr.msk.f32.mxu0 %vm5867_vm4, %v5864_v7 }
0x1285   : > { %v3032_v41 = vpop.f32.mrb[34].mxu0  ;;  %v7058_v43 = vpop.f32.mrb[26].mxu1 }
0x1286   : > { %v3034_v44 = vpop.f32.mrb[35].mxu0  ;;  %v5177_v45 = vpop.f32.mrb[27].mxu1 }
0x1287   : > { %v4572_v45 = vld [vmem:[%s7429_s2 + $0x320] sm:$0xff] }
0x128d   : > { %v3103_v46 = vpop.f32.mrb[36].mxu0 }
0x128e   : > { %v3105_v47 = vpop.f32.mrb[37].mxu0 }
0x128f   : > { %5179 = vmatpush3.xpose.msra.mxu0 %v3105_v47  ;;  %v4590_v47 = vld [vmem:[%s7429_s2 + $0x3b0] sm:$0xff] }
0x1290   : > { %5188 = vmatprep.subr.mxu0 %v5864_v7 }
0x1292   : > { %5181 = vmatmul.mubr.f32.vlgmr.msra.gmra.mrb[42].mxu0 %v3032_v41  ;;  %v5621_v41 = vpack.c.bf16 %v4571_v38, %v4570_v37  ;;  %v4610_v37 = vld [vmem:[%s7429_s2 + $0x450] sm:$0xff] }
0x1293   : > { %5190 = vmatprep.mubr.msk.f32.mxu0 %vm5867_vm4, %v5864_v7 }
0x1295   : > { %v3174_v48 = vpop.f32.mrb[38].mxu0 }
0x1296   : > { %v3176_v49 = vpop.f32.mrb[39].mxu0  ;;  %5189 = vmatpush3.xpose.msra.mxu0 %v3174_v48  ;;  %v4591_v48 = vld [vmem:[%s7429_s2 + $0x3b8] sm:$0xff] }
0x1297   : > { %5198 = vmatprep.subr.mxu0 %v5864_v7 }
0x1299   : > { %5191 = vmatmul.mubr.f32.vlgmr.msra.gmra.mrb[44].mxu0 %v3034_v44  ;;  %v5623_v44 = vpack.c.bf16 %v4589_v40, %v4588_v39  ;;  %v4611_v39 = vld [vmem:[%s7429_s2 + $0x458] sm:$0xff]  ;;  %v4580_v40 = vld [vmem:[%s7429_s2 + $0x360] sm:$0xff] }
0x129a   : > { %5199 = vmatpush3.xpose.msra.mxu0 %v3176_v49  ;;  %5200 = vmatprep.mubr.msk.f32.mxu0 %vm5867_vm4, %v5864_v7 }
0x129b   : > { %5616 = vmatprep.subr.bf16.mxu0 %v5615_v32  ;;  %v5657_v32 = vpack.c.bf16 %v4607_v31, %v4606_v1  ;;  %v4622_v1 = vld [vmem:[%s7431_s4 + $0x100] sm:$0xff]  ;;  %v4623_v31 = vld [vmem:[%s7431_s4 + $0x108] sm:$0xff] }
0x129c   : > { %v5679_v33 = vpack.c.bf16 %v4623_v31, %v4622_v1 }
0x129d   : > { %v3245_v51 = vpop.f32.mrb[40].mxu0  ;;  %5201 = vmatmul.mubr.f32.vlgmr.msra.gmra.mrb[46].mxu0 %v3103_v46  ;;  %v4573_v46 = vld [vmem:[%s7429_s2 + $0x328] sm:$0xff] }
0x129e   : > { %v7066_v52 = vpop.f32.mrb[41].mxu0  ;;  %5184 = vmatpush3.msra.mxu1 %v3245_v51  ;;  %5618 = vmatpush3.bf16.msra.mxu0 %v5617_v35  ;;  %v5625_v49 = vpack.c.bf16 %v4573_v46, %v4572_v45  ;;  %v5627_v51 = vpack.c.bf16 %v4591_v48, %v4590_v47  ;;  %v4596_v35 = vld [vmem:[%s7429_s2 + $0x3e0] sm:$0xff]  ;;  %v4598_v46 = vld [vmem:[%s7429_s2 + $0x3f0] sm:$0xff]  ;;  %v4599_v47 = vld [vmem:[%s7429_s2 + $0x3f8] sm:$0xff] }
0x129f   : > { %5193 = vmatprep.subr.mxu1 %v5864_v7  ;;  %5620 = vmatprep.subr.bf16.mxu0 %v5619_v36  ;;  %v4597_v36 = vld [vmem:[%s7429_s2 + $0x3e8] sm:$0xff]  ;;  %v4612_v48 = vld [vmem:[%s7429_s2 + $0x460] sm:$0xff] }
0x12a0   : > { %v5639_v38 = vpack.c.bf16 %v4597_v36, %v4596_v35  ;;  %v4626_v35 = vld [vmem:[%s7431_s4 + $0x120] sm:$0xff]  ;;  %v4627_v36 = vld [vmem:[%s7431_s4 + $0x128] sm:$0xff] }
0x12a2   : > { %5622 = vmatpush3.bf16.msra.mxu0 %v5621_v41  ;;  %v4581_v41 = vld [vmem:[%s7429_s2 + $0x368] sm:$0xff] }
0x12a3   : > { %5624 = vmatprep.subr.bf16.mxu0 %v5623_v44  ;;  %v5663_v44 = vpack.c.bf16 %v4611_v39, %v4610_v37  ;;  %v5641_v45 = vpack.c.bf16 %v4581_v41, %v4580_v40  ;;  %v5685_v37 = vpack.c.bf16 %v4627_v36, %v4626_v35  ;;  %v4629_v39 = vld [vmem:[%s7431_s4 + $0x138] sm:$0xff]  ;;  %v4630_v41 = vld [vmem:[%s7431_s4 + $0x140] sm:$0xff] }
0x12a6   : > { %5626 = vmatpush3.bf16.msra.mxu0 %v5625_v49  ;;  %v5643_v49 = vpack.c.bf16 %v4599_v47, %v4598_v46  ;;  %v4632_v46 = vld [vmem:[%s7431_s4 + $0x150] sm:$0xff]  ;;  %v4633_v47 = vld [vmem:[%s7431_s4 + $0x158] sm:$0xff] }
0x12a7   : > { %5628 = vmatprep.subr.bf16.mxu0 %v5627_v51  ;;  %v4613_v51 = vld [vmem:[%s7429_s2 + $0x468] sm:$0xff] }
0x1365   : > { %v3386_v54 = vpop.f32.mrb[42].mxu0 }
0x1366   : > { %v3390_v57 = vmul.f32 0.18257418, %v3386_v54  ;;  %v5182_v58 = vpop.f32.mrb[43].mxu0  ;;  %v4574_v54 = vld [vmem:[%s7429_s2 + $0x330] sm:$0xff] }
0x1367   : > { %v4592_v58 = vld [vmem:[%s7429_s2 + $0x3c0] sm:$0xff] }
0x1368   : > { %v3391_v61 = vsel %vm6132_vm5, %v3390_v57, -inf  ;;  %v4575_v57 = vld [vmem:[%s7429_s2 + $0x338] sm:$0xff] }
0x1369   : > { %v3392_v62 = vsel %vm775_vm6, %v3391_v61, -inf }
0x136a   : > { %3393 = vmax.xlane.f32.xlu0 %v3392_v62  ;;  %v5629_v62 = vpack.c.bf16 %v4575_v57, %v4574_v54  ;;  %v4582_v54 = vld [vmem:[%s7429_s2 + $0x370] sm:$0xff]  ;;  %v4583_v57 = vld [vmem:[%s7429_s2 + $0x378] sm:$0xff] }
0x136c   : > { %v3542_v63 = vpop.f32.mrb[44].mxu0  ;;  %5630 = vmatpush3.bf16.msra.mxu0 %v5629_v62  ;;  %v4614_v62 = vld [vmem:[%s7429_s2 + $0x470] sm:$0xff] }
0x136d   : > { %v3546_v0 = vmul.f32 0.18257418, %v3542_v63  ;;  %v5192_v3 = vpop.f32.mrb[45].mxu0 }
0x136e   : > { %v4577_v3 = vld [vmem:[%s7429_s2 + $0x348] sm:$0xff] }
0x136f   : > { %v3547_v5 = vsel %vm6132_vm5, %v3546_v0, -inf  ;;  %v4576_v0 = vld [vmem:[%s7429_s2 + $0x340] sm:$0xff] }
0x1370   : > { %v3698_v4 = vpop.f32.mrb[46].mxu0  ;;  %v3548_v8 = vsel %vm775_vm6, %v3547_v5, -inf }
0x1371   : > { %v3702_v14 = vmul.f32 0.18257418, %v3698_v4  ;;  %3549 = vmax.xlane.f32.xlu1 %v3548_v8  ;;  %v5202_v16 = vpop.f32.mrb[47].mxu0  ;;  %v4595_v4 = vld [vmem:[%s7429_s2 + $0x3d8] sm:$0xff]  ;;  %v5633_v8 = vpack.c.bf16 %v4577_v3, %v4576_v0 }
0x1372   : > { %v4578_v16 = vld [vmem:[%s7429_s2 + $0x350] sm:$0xff] }
0x1373   : > { %v3703_v15 = vsel %vm6132_vm5, %v3702_v14, -inf }
0x1374   : > { %v3704_v18 = vsel %vm775_vm6, %v3703_v15, -inf }
0x1375   : > { %3705 = vmax.xlane.f32.xlu0 %v3704_v18 }
0x13f7   : > { %v3394_v11 = vpop.xlane.xlu0 %3393 }
0x13f8   : > { %v3395_v6 = vsub.f32 %v3391_v61, %v3394_v11  ;;  %v4593_v61 = vld [vmem:[%s7429_s2 + $0x3c8] sm:$0xff] }
0x13f9   : > { %v5631_v63 = vpack.c.bf16 %v4593_v61, %v4592_v58  ;;  %v5666_v58 = vpack.c.bf16 %v4613_v51, %v4612_v48  ;;  %v5645_v61 = vpack.c.bf16 %v4583_v57, %v4582_v54  ;;  %v5694_v48 = vpack.c.bf16 %v4633_v47, %v4632_v46  ;;  %v4635_v51 = vld [vmem:[%s7431_s4 + $0x168] sm:$0xff] }
0x13fa   : > { %v3396_v19 = vmul.f32 1.442695, %v3395_v6 }
0x13fb   : > { %5632 = vmatprep.subr.bf16.mxu0 %v5631_v63  ;;  %v4615_v63 = vld [vmem:[%s7429_s2 + $0x478] sm:$0xff] }
0x13fc   : > { %5784 = vpow2.f32 %v3396_v19  ;;  %5634 = vmatpush3.bf16.msra.mxu0 %v5633_v8  ;;  %v5669_v0 = vpack.c.bf16 %v4615_v63, %v4614_v62 }
0x13fe   : > { %v3550_v21 = vpop.xlane.xlu1 %3549 }
0x13ff   : > { %v3551_v12 = vsub.f32 %v3547_v5, %v3550_v21  ;;  %v4594_v5 = vld [vmem:[%s7429_s2 + $0x3d0] sm:$0xff] }
0x1400   : > { %v5635_v14 = vpack.c.bf16 %v4595_v4, %v4594_v5 }
0x1401   : > { %v3552_v23 = vmul.f32 1.442695, %v3551_v12 }
0x1402   : > { %v3706_v24 = vpop.xlane.xlu0 %3705  ;;  %5636 = vmatprep.subr.bf16.mxu0 %v5635_v14 }
0x1403   : > { %5786 = vpow2.f32 %v3552_v23  ;;  %v3707_v25 = vsub.f32 %v3703_v15, %v3706_v24  ;;  %v4579_v15 = vld [vmem:[%s7429_s2 + $0x358] sm:$0xff] }
0x1404   : > { %v5637_v18 = vpack.c.bf16 %v4579_v15, %v4578_v16  ;;  %v7266_v15 = vld [vmem:[%s7433_s6 + $0x10] sm:$0xff] }
0x1405   : > { %v3708_v26 = vmul.f32 1.442695, %v3707_v25  ;;  %v4600_v25 = vld [vmem:[%s7429_s2 + $0x400] sm:$0xff]  ;;  %v3997_v62 = vrot.slane %v7266_v15, %v6407_v59  ;;  %v4637_v59 = vld [vmem:[%s7431_s4 + $0x178] sm:$0xff] }
0x1406   : > { %v7078_v50 = vpop.eup %5784  ;;  %5638 = vmatpush3.bf16.msra.mxu0 %v5637_v18 }
0x1407   : > { %5788 = vpow2.f32 %v3708_v26  ;;  %v3398_v9 = vsel %vm775_vm6, %v7078_v50, 0.0  ;;  %v4601_v26 = vld [vmem:[%s7429_s2 + $0x408] sm:$0xff]  ;;  %5640 = vmatprep.subr.bf16.mxu0 %v5639_v38  ;;  %v4628_v38 = vld [vmem:[%s7431_s4 + $0x130] sm:$0xff] }
0x1408   : > { %3399 = vadd.xlane.f32.xlu1 %v3398_v9  ;;  %v5688_v40 = vpack.c.bf16 %v4629_v39, %v4628_v38 }
0x140a   : > { %5642 = vmatpush3.bf16.msra.mxu0 %v5641_v45 }
0x140b   : > { %5644 = vmatprep.subr.bf16.mxu0 %v5643_v49  ;;  %v4634_v49 = vld [vmem:[%s7431_s4 + $0x160] sm:$0xff] }
0x140c   : > { %v5697_v54 = vpack.c.bf16 %v4635_v51, %v4634_v49 }
0x140d   : > { %v7082_v28 = vpop.eup %5786 }
0x140e   : > { %v3554_v27 = vsel %vm775_vm6, %v7082_v28, 0.0  ;;  %5646 = vmatpush3.bf16.msra.mxu0 %v5645_v61 }
0x140f   : > { %3555 = vadd.xlane.f32.xlu0 %v3554_v27  ;;  %v4603_v27 = vld [vmem:[%s7429_s2 + $0x418] sm:$0xff]  ;;  %5671 = vmatprep.subr.bf16.mxu0 %v5866_v53 }
0x1411   : > { %v7086_v30 = vpop.eup %5788 }
0x1412   : > { %v3710_v42 = vsel %vm775_vm6, %v7086_v30, 0.0 }
0x1413   : > { %3711 = vadd.xlane.f32.xlu1 %v3710_v42  ;;  %v4605_v42 = vld [vmem:[%s7429_s2 + $0x428] sm:$0xff] }
0x1495   : > { %v3400_v11 = vpop.xlane.xlu1 %3399 }
0x1496   : > { %5790 = vrcp.f32 %v3400_v11  ;;  %v3840_v11 = vrot.slane %v7266_v15, %v6331_v13  ;;  %v4616_v13 = vld [vmem:[%s7430_s3 + $0x40] sm:$0xff] }
0x149c   : > { %v3556_v6 = vpop.xlane.xlu0 %3555 }
0x149d   : > { %5792 = vrcp.f32 %v3556_v6 }
0x14a0   : > { %v5791_v19 = vpop.eup %5790  ;;  %v3712_v21 = vpop.xlane.xlu1 %3711 }
0x14a1   : > { %v3402_v12 = vmul.f32 %v5791_v19, %v7078_v50  ;;  %5794 = vrcp.f32 %v3712_v21 }
0x14a3   : > { %5186 = vmatmul.mubr.msk.f32.vlgmr.msra.gmra.mrb[28].mxu1 %vm775_vm6, %v3402_v12 }
0x14a4   : > { %5194 = vmatpush3.msra.mxu1 %v7066_v52  ;;  %5195 = vmatprep.mubr.msk.f32.mxu1 %vm5867_vm4, %v5864_v7  ;;  %v5648_v52 = vpack.c.bf16 %v4601_v26, %v4600_v25 }
0x14a5   : > { %5203 = vmatprep.subr.mxu1 %v5864_v7 }
0x14a7   : > { %v5793_v23 = vpop.eup %5792 }
0x14a8   : > { %v3558_v24 = vmul.f32 %v5793_v23, %v7082_v28  ;;  %v4602_v28 = vld [vmem:[%s7429_s2 + $0x410] sm:$0xff] }
0x14aa   : > { %5196 = vmatmul.mubr.msk.f32.vlgmr.msra.gmra.mrb[30].mxu1 %vm775_vm6, %v3558_v24 }
0x14ab   : > { %v5795_v50 = vpop.eup %5794  ;;  %5204 = vmatpush3.msra.mxu1 %v7058_v43  ;;  %5205 = vmatprep.mubr.msk.f32.mxu1 %vm5867_vm4, %v5864_v7  ;;  %v5651_v43 = vpack.c.bf16 %v4603_v27, %v4602_v28  ;;  %v4617_v27 = vld [vmem:[%s7430_s3 + $0x48] sm:$0xff] }
0x14ac   : > { %v3714_v9 = vmul.f32 %v5795_v50, %v7086_v30  ;;  %5647 = vmatprep.subr.bf16.mxu1 %v5866_v53  ;;  %v4604_v30 = vld [vmem:[%s7429_s2 + $0x420] sm:$0xff] }
0x14ad   : > { %v5654_v29 = vpack.c.bf16 %v4605_v42, %v4604_v30  ;;  %v4618_v30 = vld [vmem:[%s7430_s3 + $0x50] sm:$0xff]  ;;  %v4619_v42 = vld [vmem:[%s7430_s3 + $0x58] sm:$0x3f] }
0x14ae   : > { %5206 = vmatmul.mubr.msk.f32.vlgmr.msra.gmra.mrb[32].mxu1 %vm775_vm6, %v3714_v9 }
0x14af   : > { %5649 = vmatpush3.bf16.msra.mxu1 %v5648_v52  ;;  %5240 = vmatprep.mubr.msk.f32.mxu1 %vm5867_vm4, %v5864_v7 }
0x14b0   : > { %5650 = vmatprep.subr.bf16.mxu1 %v5866_v53 }
0x14b3   : > { %5652 = vmatpush3.bf16.msra.mxu1 %v5651_v43  ;;  %v5672_v43 = vpack.c.bf16 %v4617_v27, %v4616_v13  ;;  %v4209_v13 = vld [vmem:[%s7432_s5 + $0x18] sm:$0x3f] }
0x14b4   : > { %5653 = vmatprep.subr.bf16.mxu1 %v5866_v53 }
0x14b7   : > { %5655 = vmatpush3.bf16.msra.mxu1 %v5654_v29  ;;  %v5675_v29 = vpack.c.bf16 %v4619_v42, %v4618_v30 }
0x14b8   : > { %5656 = vmatprep.subr.bf16.mxu1 %v5866_v53 }
0x14bb   : > { %5658 = vmatpush3.bf16.msra.mxu1 %v5657_v32  ;;  %v4624_v32 = vld [vmem:[%s7431_s4 + $0x110] sm:$0xff] }
0x14bc   : > { %5659 = vmatprep.subr.bf16.mxu1 %v5866_v53 }
0x14bf   : > { %5661 = vmatpush3.bf16.msra.mxu1 %v5660_v34  ;;  %v5682_v34 = vpack.c.bf16 %v4625_v2, %v4624_v32  ;;  %v4203_v32 = vrot.slane %v7266_v15, %v6497_v56 }
0x14c0   : > { %5662 = vmatprep.subr.bf16.mxu1 %v5866_v53 }
0x14c3   : > { %5664 = vmatpush3.bf16.msra.mxu1 %v5663_v44  ;;  %v4631_v44 = vld [vmem:[%s7431_s4 + $0x148] sm:$0xff] }
0x14c4   : > { %5665 = vmatprep.subr.bf16.mxu1 %v5866_v53  ;;  %v5691_v45 = vpack.c.bf16 %v4631_v44, %v4630_v41 }
0x14c7   : > { %5667 = vmatpush3.bf16.msra.mxu1 %v5666_v58 }
0x14c8   : > { %5668 = vmatprep.subr.bf16.mxu1 %v5866_v53 }
0x14cb   : > { %5670 = vmatpush3.bf16.msra.mxu1 %v5669_v0 }
0x14cc   : > { %5678 = vmatprep.subr.bf16.mxu1 %v5866_v53 }
0x1576   : > { %v3472_v3 = vpop.f32.mrb[28].mxu1 }
0x1577   : > { %v5187_v5 = vpop.f32.mrb[29].mxu1 }
0x157d   : > { %v3628_v4 = vpop.f32.mrb[30].mxu1 }
0x157e   : > { %v5197_v8 = vpop.f32.mrb[31].mxu1  ;;  %3905 = vmatprep.mubr.f32.mxu0 %v3628_v4 }
0x157f   : > { %3906 = vmatmul.mubr.f32.vlgmr.msra.gmra.mrb[48].mxu0 %v3472_v3  ;;  %v4002_v3 = vrot.slane %v7266_v15, %v6410_v60  ;;  %v4013_v60 = vrot.slane %v7266_v15, %v6430_v22 }
0x1580   : > { %5251 = vmatprep.mubr.msk.f32.mxu0 %vm5867_vm4, %v5864_v7  ;;  %5673 = vmatpush3.bf16.msra.mxu0 %v5672_v43 }
0x1581   : > { %v3784_v14 = vpop.f32.mrb[32].mxu1  ;;  %5674 = vmatprep.subr.bf16.mxu0 %v5866_v53 }
0x1582   : > { %v5207_v16 = vpop.f32.mrb[33].mxu1  ;;  %5241 = vmatmul.mubr.f32.vlgmr.msra.gmra.mrb[34].mxu1 %v3784_v14  ;;  %v4636_v14 = vld [vmem:[%s7431_s4 + $0x170] sm:$0xff] }
0x1583   : > { %5286 = vmatprep.mubr.msk.f32.mxu1 %vm5867_vm4, %v5864_v7  ;;  %5680 = vmatpush3.bf16.msra.mxu1 %v5679_v33  ;;  %v5700_v16 = vpack.c.bf16 %v4637_v59, %v4636_v14 }
0x1584   : > { %5677 = vmatpush3.bf16.msk.msra.mxu0 %vm5978_vm2, %v5675_v29  ;;  %5681 = vmatprep.subr.bf16.mxu1 %v5866_v53  ;;  %v4198_v29 = vrot.slane %v7266_v15, %v6494_v55 }
0x1585   : > { %5702 = vmatprep.subr.bf16.mxu0 %v5866_v53 }
0x1587   : > { %5683 = vmatpush3.bf16.msra.mxu1 %v5682_v34 }
0x1588   : > { %5684 = vmatprep.subr.bf16.mxu1 %v5866_v53 }
0x158b   : > { %5686 = vmatpush3.bf16.msra.mxu1 %v5685_v37 }
0x158c   : > { %5687 = vmatprep.subr.bf16.mxu1 %v5866_v53 }
0x158f   : > { %5689 = vmatpush3.bf16.msra.mxu1 %v5688_v40 }
0x1590   : > { %5690 = vmatprep.subr.bf16.mxu1 %v5866_v53 }
0x1593   : > { %5692 = vmatpush3.bf16.msra.mxu1 %v5691_v45 }
0x1594   : > { %5693 = vmatprep.subr.bf16.mxu1 %v5866_v53 }
0x1597   : > { %5695 = vmatpush3.bf16.msra.mxu1 %v5694_v48 }
0x1598   : > { %5696 = vmatprep.subr.bf16.mxu1 %v5866_v53 }
0x159b   : > { %5698 = vmatpush3.bf16.msra.mxu1 %v5697_v54 }
0x159c   : > { %5699 = vmatprep.subr.bf16.mxu1 %v5866_v53 }
0x159f   : > { %5701 = vmatpush3.bf16.msra.mxu1 %v5700_v16 }
0x1652   : > { %v4876_v18 = vpop.f32.mrb[48].mxu0 }
0x1653   : > { %v4877_v6 = vpop.f32.mrb[49].mxu0 }
0x1654   : > { %v4878_v19 = vadd.f32 %v4877_v6, %v4876_v18 }
0x1655   : > { %v3977_v21 = vpop.f32.mrb[34].mxu1 }
0x1656   : > { %v3908_v12 = vadd.f32 %v4878_v19, %v3840_v11  ;;  %v5242_v23 = vpop.f32.mrb[35].mxu1 }
0x1658   : > { %v3978_v24 = vadd.f32 %v3977_v21, %v3908_v12 }
0x165a   : > { %v3981_v25 = vsel %vm317_vm3, %v3978_v24, 0.0 }
0x165b   : > { %3982 = vadd.xlane.f32.xlu0 %v3981_v25 }
0x16e8   : > { %v3983_v26 = vpop.xlane.xlu0 %3982 }
0x16e9   : > { %v3984_v50 = vmul.f32 0.033333335, %v3983_v26 }
0x16eb   : > { %v3985_v52 = vsub.f32 %v3978_v24, %v3984_v50 }
0x16ed   : > { %v3986_v9 = vmul.f32 %v3985_v52, %v3985_v52 }
0x16ef   : > { %v3987_v28 = vsel %vm317_vm3, %v3986_v9, 0.0 }
0x16f0   : > { %3988 = vadd.xlane.f32.xlu1 %v3987_v28  ;;  %v4208_v28 = vld [vmem:[%s7432_s5 + $0x10] sm:$0xff] }
0x16f1   : > { %v5706_v27 = vpack.c.bf16 %v4209_v13, %v4208_v28 }
0x177d   : > { %v3989_v57 = vpop.xlane.xlu1 %3988 }
0x177e   : > { %v3990_v58 = vmul.f32 0.033333335, %v3989_v57 }
0x1780   : > { %v3991_v61 = vadd.f32 1e-05, %v3990_v58 }
0x1782   : > { %5796 = vrsqrt.f32 %v3991_v61 }
0x178c   : > { %v5797_v63 = vpop.eup %5796 }
0x178d   : > { %v3993_v0 = vmul.f32 %v5797_v63, %v3985_v52  ;;  %v4206_v52 = vld [vmem:[%s7432_s5] sm:$0xff] }
0x178f   : > { %v3998_v5 = vmul.f32 %v3997_v62, %v3993_v0 }
0x1791   : > { %v4003_v4 = vadd.f32 %v4002_v3, %v3998_v5 }
0x1793   : > { %v4004_v8 = vadd.f32 %v4003_v4, %v6972_v17 }
0x1795   : > { %5252 = vmatmul.mubr.msk.f32.vlgmr.msra.gmra.mrb[50].mxu0 %vm317_vm3, %v4004_v8 }
0x1796   : > { %5297 = vmatprep.mubr.msk.f32.mxu0 %vm5867_vm4, %v5864_v7  ;;  %v4111_v7 = vrot.slane %v7266_v15, %v6437_v20  ;;  %v4207_v20 = vld [vmem:[%s7432_s5 + $0x8] sm:$0xff] }
0x1797   : > { %v5703_v9 = vpack.c.bf16 %v4207_v20, %v4206_v52 }
0x1799   : > { %5704 = vmatpush3.bf16.msra.mxu0 %v5703_v9 }
0x179a   : > { %5705 = vmatprep.subr.bf16.mxu0 %v5866_v53 }
0x179d   : > { %5708 = vmatpush3.bf16.msk.msra.mxu0 %vm5978_vm2, %v5706_v27 }
0x1868   : > { %v4086_v18 = vpop.f32.mrb[50].mxu0 }
0x1869   : > { %v4087_v17 = vadd.f32 %v4086_v18, %v4013_v60  ;;  %v5253_v11 = vpop.f32.mrb[51].mxu0 }
0x186b   : > { %v4090_v6 = vmax.f32 %v4087_v17, 0.0 }
0x186d   : > { %5287 = vmatmul.mubr.f32.vlgmr.msra.gmra.mrb[36].mxu1 %v4090_v6 }
0x1940   : > { %v4178_v19 = vpop.f32.mrb[36].mxu1 }
0x1941   : > { %v4179_v21 = vadd.f32 %v4178_v19, %v4111_v7  ;;  %v5288_v12 = vpop.f32.mrb[37].mxu1 }
0x1943   : > { %v4182_v23 = vsel %vm317_vm3, %v4179_v21, 0.0 }
0x1944   : > { %4183 = vadd.xlane.f32.xlu0 %v4182_v23 }
0x19d1   : > { %v4184_v24 = vpop.xlane.xlu0 %4183 }
0x19d2   : > { %v4185_v25 = vmul.f32 0.033333335, %v4184_v24 }
0x19d4   : > { %v4186_v26 = vsub.f32 %v4179_v21, %v4185_v25 }
0x19d6   : > { %v4187_v50 = vmul.f32 %v4186_v26, %v4186_v26 }
0x19d8   : > { %v4188_v22 = vsel %vm317_vm3, %v4187_v50, 0.0 }
0x19d9   : > { %4189 = vadd.xlane.f32.xlu1 %v4188_v22 }
0x1a66   : > { %v4190_v43 = vpop.xlane.xlu1 %4189 }
0x1a67   : > { %v4191_v30 = vmul.f32 0.033333335, %v4190_v43 }
0x1a69   : > { %v4192_v42 = vadd.f32 1e-05, %v4191_v30 }
0x1a6b   : > { %5798 = vrsqrt.f32 %v4192_v42 }
0x1a75   : > { %v5799_v1 = vpop.eup %5798 }
0x1a76   : > { %v4194_v31 = vmul.f32 %v5799_v1, %v4186_v26 }
0x1a78   : > { %v4199_v33 = vmul.f32 %v4198_v29, %v4194_v31 }
0x1a7a   : > { %v4204_v2 = vadd.f32 %v4203_v32, %v4199_v33 }
0x1a7c   : > { %v4205_v53 = vadd.f32 %v4204_v2, %v4004_v8 }
0x1a7e   : > { %5298 = vmatmul.mubr.msk.f32.vlgmr.msra.gmra.mrb[52].mxu0 %vm317_vm3, %v4205_v53 }
0x1b51   : > { %v4287_v55 = vpop.f32.mrb[52].mxu0 }
0x1b52   : > { %v4288_v34 = vadd.f32 %v4638_v10, %v4287_v55  ;;  %v5299_v35 = vpop.f32.mrb[53].mxu0 }
0x1b54   : > { %4291 = vst [vmem:[%s269_s18] sm:$0xff] %v4288_v34 }
0x1b55   : > { %5813 = shalt.err (!%p5810_p3)
}
0x1b56   : > { %s5814_s9 = scalar_lea.hbm %s7385_s21, 128  ;;  %s5818_s16 = scalar_lea.hbm %s7434_s7, 256 }
0x1b57   : > { %p5815_p4 = scmp.ne.s32.totalorder %s7385_s21, %s5814_s9  ;;  %p5819_p9 = scmp.lt.u32.totalorder %s7385_s21, %s7434_s7 }
0x1b58   : > { %p5820_p10 = scmp.lt.u32.totalorder %s5818_s16, %s5814_s9  ;;  %p5822_p12 = scmp.lt.u32.totalorder %s5814_s9, %s7385_s21 }
0x1b59   : > { %p5816_p7 = pnand %p5815_p4, %p5947_p5 }
0x1b5a   : > { %p5821_p11 = por %p5820_p10, %p5819_p9 }
0x1b5b   : > { %p5817_p8 = pneg %p5816_p7 }
0x1b5c   : > { %p5823_p13 = por %p5822_p12, %p5821_p11 }
0x1b5e   : > { %p5824_p0 = pnand %p5823_p13, %p5817_p8 }
0x1b60   : > { %5827 = shalt.err (!%p5824_p0)
}
0x1b61   : > { %5709 = dma.vmem_to_hbm [thread:$0]  (%p5947_p5), %s7387_s15, 128, %s7385_s21, %s4293_s22  }
0x1b62 PF: > { %p5715_p1 = scmp.ge.s32.totalorder %s5862_s27, 2  ;;  %s4318_s19 = sand.u32 1, %s5850_s24  }
0x1b63   : > { %s4319_s20 = scalar_lea.sflag [#allocation3], %s4318_s19 }
0x1b64   : > { %p5712_p2 = pnand %p5715_p1, %p5951_p6 }
0x1b66   : > { %5845 = dma.done.wait (!%p5712_p2), %s4319_s20, 128  }
0x1b67   : > { %5847 = vsyncadd (!%p5712_p2), %s4319_s20, 4294967168  ;;  %p17_p3 = scmp.ge.s32.totalorder %s5934_s30, 4   ;;  %s7441_s24 = smov %s5854_s25 }
0x1b68   : > { %s7442_s25 = smov %s5858_s26  ;;  %s7443_s26 = smov %s5945_s10 }
0x1b69   : > { %s7444_s27 = smov %s5934_s30  ;;  %19 = sbr.rel (!%p17_p3) target bundleno = 3 (0x3), region = 93 }
0x1b70   :  { %4324 = vsyncpa [#allocation3], 1 }
0x1b71   :  { %4326 = vsyncpa [#allocation3 + $0x1], 1 }

</bundles_post_ra>
